<compile_context>
chip_gen: v7x
topology: tpu7x:2x2x1
jax: 0.10.0
libtpu: 0.0.40
codegen_flags: <defaults>
</compile_context>

<pallas_src>
import math

import numpy as np
import jax
import jax.numpy as jnp
from jax import lax
from jax.experimental import pallas as pl
from jax.experimental.pallas import tpu as pltpu


# ----------------------------------------------------------------------------
# Fused encoder kernel (built by a factory so the static layer config is closed over)
# ----------------------------------------------------------------------------
def _gelu_exact(v):
    # torch.nn.GELU() default (approximate='none')
    return 0.5 * v * (1.0 + lax.erf(v * (2.0 ** -0.5)))


def _make_encoder_kernel(layers, batch_tile):
    """layers: tuple of (Hin, Win, Cin, Ho, Wo, Cout, stride) static ints per conv."""
    Bt = batch_tile
    n_conv = len(layers)

    def kernel(x_ref, *refs):
        w_refs = refs[:2 * n_conv + 2]          # (G, bias_row) per conv + (WLr, bl_row)
        out_ref = refs[2 * n_conv + 2]
        pad_refs = refs[2 * n_conv + 3:]        # one zero-padded staging scratch per conv

        a = x_ref[0]                            # (H0*Bt, W0*C0) f32, row = h*Bt + b
        for l, (Hin, Win, Cin, Ho, Wo, Cout, s) in enumerate(layers):
            g_ref, b_ref = w_refs[2 * l], w_refs[2 * l + 1]
            pad = pad_refs[l]                   # ((Hin+2)*Bt, Win*Cin)
            wc = Win * Cin

            # Stage activation into the halo-padded scratch: row (h+1)*Bt + b.
            zero_band = jnp.zeros((Bt, wc), jnp.float32)
            pad[pl.ds(0, Bt), :] = zero_band                  # h = -1 halo
            pad[pl.ds((Hin + 1) * Bt, Bt), :] = zero_band     # h = Hin halo
            pad[pl.ds(Bt, Hin * Bt), :] = a                   # interior rows

            # Build the fused LHS: lane-concat of the 3 h-tap row sets.
            taps = []
            for kh in range(3):
                if s == 1:
                    # Output row (ho,b) needs pad row (kh + ho)*Bt + b -> one contiguous slice.
                    taps.append(pad[pl.ds(kh * Bt, Ho * Bt), :])
                else:
                    # Output row (ho,b) needs pad row (kh + s*ho)*Bt + b -> Bt-row slabs.
                    slabs = [pad[pl.ds((kh + s * ho) * Bt, Bt), :] for ho in range(Ho)]
                    taps.append(jnp.concatenate(slabs, axis=0))
            lhs = jnp.concatenate(taps, axis=1).astype(g_ref.dtype)    # (Ho*Bt, 3*Win*Cin)

            # Single MXU matmul per conv layer (K = 3*Win*Cin), f32 accumulate.
            y = jnp.dot(lhs, g_ref[...], preferred_element_type=jnp.float32)
            a = _gelu_exact(y + b_ref[...])                            # (Ho*Bt, Wo*Cout) f32

        # Flatten (PyTorch NCHW order folded into WLr) + Linear: one matmul.
        Hf = layers[-1][3]
        wl_ref, bl_ref = w_refs[2 * n_conv], w_refs[2 * n_conv + 1]
        groups = [a[h * Bt:(h + 1) * Bt, :] for h in range(Hf)]        # each (Bt, Wf*Cf)
        lhs_l = jnp.concatenate(groups, axis=1).astype(wl_ref.dtype)   # (Bt, Hf*Wf*Cf)
        z = jnp.dot(lhs_l, wl_ref[...], preferred_element_type=jnp.float32)
        out_ref[0] = (z + bl_ref[...]).astype(out_ref.dtype)

    return kernel


# ----------------------------------------------------------------------------
# One-time lowering of PyTorch-layout weights into fused-kernel operands.
# Batch-tile independent (no selection matrices anymore).
# ----------------------------------------------------------------------------
def precompute_kernel_params(params, *, compute_dtype=jnp.bfloat16, in_hw=32):
    convs = [(params["w1"], params["b1"], 2),
             (params["w2"], params["b2"], 1),
             (params["w3"], params["b3"], 2),
             (params["w4"], params["b4"], 1),
             (params["w5"], params["b5"], 2)]
    tensors, layer_cfg = [], []
    H = in_hw
    for l, (w, b, s) in enumerate(convs):
        w = np.asarray(w, np.float32)            # (Cout, Cin, 3, 3) PyTorch layout
        b = np.asarray(b, np.float32)
        Cout, Cin, K, _ = w.shape
        # Pad layer-1 input channels so the lane width Win*Cin is 128-aligned
        # (layout-only; padded channels carry zero data and zero weights).
        Cp = Cin + (-Cin) % 4 if (l == 0 and (H * Cin) % 128 != 0) else Cin
        Hin = Win = H
        Ho = Wo = (Hin + 2 - K) // s + 1          # padding = 1
        # kh-stacked G: rows = kh*Win*Cp + wi*Cp + ci, cols = wo*Cout + co.
        G = np.zeros((K * Win * Cp, Wo * Cout), np.float32)
        for kh in range(K):
            for kw in range(K):
                wt = w[:, :, kh, kw].T            # (Cin, Cout)
                for wo in range(Wo):
                    wi = s * wo + kw - 1
                    if 0 <= wi < Win:             # w-padding handled by omission
                        r0 = kh * Win * Cp + wi * Cp
                        G[r0:r0 + Cin, wo * Cout:(wo + 1) * Cout] += wt
        brow = np.tile(b, Wo)[None, :]            # (1, Wo*Cout): lane = wo*Cout + co
        tensors += [jnp.asarray(G, compute_dtype), jnp.asarray(brow, jnp.float32)]
        layer_cfg.append((Hin, Win, Cp, Ho, Wo, Cout, s))
        H = Ho

    # Final Linear: PyTorch flattens NCHW -> feature index c*Hf*Wf + h*Wf + w.
    WL = np.asarray(params["wl"], np.float32)     # (latent, Cf*Hf*Wf)
    bl = np.asarray(params["bl"], np.float32)
    Cf, Hf, Wf = layer_cfg[-1][5], H, H
    latent = WL.shape[0]
    assert Cf * Hf * Wf == WL.shape[1], (Cf, Hf, Wf, WL.shape)
    WLr = np.zeros((Hf * Wf * Cf, latent), np.float32)   # rows ordered (h, w, c)
    for h in range(Hf):
        for w_ in range(Wf):
            for c in range(Cf):
                WLr[h * Wf * Cf + w_ * Cf + c, :] = WL[:, c * Hf * Wf + h * Wf + w_]
    tensors += [jnp.asarray(WLr, compute_dtype), jnp.asarray(bl[None, :], jnp.float32)]
    return {"tensors": tuple(tensors), "layers": tuple(layer_cfg), "latent": int(latent)}


# ----------------------------------------------------------------------------
# Wrapper: one pallas_call for the whole encoder, grid over batch tiles.
# ----------------------------------------------------------------------------
def _encoder_forward_impl(x_nchw, tensors, layers, latent, batch_tile):
    B, C, H, W = x_nchw.shape
    Hin, Win, Cp = layers[0][0], layers[0][1], layers[0][2]
    assert H == Hin and W == Win, "Linear(2*16*c_hid) fixes the spatial input to 32x32"
    assert B % batch_tile == 0
    Bt = batch_tile
    nt = B // Bt

    x = x_nchw.astype(jnp.float32)
    if Cp > C:
        x = jnp.concatenate([x, jnp.zeros((B, Cp - C, H, W), jnp.float32)], axis=1)
    # NCHW -> folded h-major rows per batch tile: x_rows[i, h*Bt + b, w*Cp + c].
    xr = jnp.transpose(x, (2, 0, 3, 1))                       # (H, B, W, Cp)
    xr = xr.reshape(H, nt, Bt, W * Cp)
    xr = jnp.transpose(xr, (1, 0, 2, 3)).reshape(nt, H * Bt, W * Cp)

    kernel = _make_encoder_kernel(layers, Bt)
    in_specs = [pl.BlockSpec((1, H * Bt, W * Cp), lambda i: (i, 0, 0))]
    in_specs += [pl.BlockSpec(t.shape, lambda i: (0, 0)) for t in tensors]
    scratch = [pltpu.VMEM(((hin + 2) * Bt, win * cin), jnp.float32)
               for (hin, win, cin, _, _, _, _) in layers]

    out = pl.pallas_call(
        kernel,
        grid_spec=pltpu.PrefetchScalarGridSpec(
            num_scalar_prefetch=0,
            grid=(nt,),
            in_specs=in_specs,
            out_specs=pl.BlockSpec((1, Bt, latent), lambda i: (i, 0, 0)),
            scratch_shapes=scratch),
        out_shape=jax.ShapeDtypeStruct((nt, Bt, latent), jnp.float32),
        compiler_params=pltpu.CompilerParams(
            dimension_semantics=("parallel",),            # both TCs on v7x
            vmem_limit_bytes=32 * 1024 * 1024),
    )(xr, *tensors)
    return out.reshape(B, latent)


_encoder_forward_jit = jax.jit(_encoder_forward_impl,
                               static_argnames=("layers", "latent", "batch_tile"))


def encoder_forward(x_nchw, kernel_params, *, batch_tile=8):
    """x_nchw: (B, C, 32, 32) float32 (PyTorch NCHW). Returns (B, latent_dim)."""
    return _encoder_forward_jit(x_nchw, kernel_params["tensors"],
                                kernel_params["layers"], kernel_params["latent"],
                                batch_tile)


# ----------------------------------------------------------------------------
# Deterministic parameter construction (PyTorch-convention shapes)
# ----------------------------------------------------------------------------
def make_params(key, num_input_channels, c_hid, latent_dim):
    ks = jax.random.split(key, 12)

    def conv(k, cout, cin):
        fan_in = cin * 9
        return jax.random.normal(k, (cout, cin, 3, 3), jnp.float32) / math.sqrt(fan_in)

    return {
        "w1": conv(ks[0], c_hid, num_input_channels),
        "b1": jax.random.normal(ks[1], (c_hid,), jnp.float32) * 0.01,
        "w2": conv(ks[2], c_hid, c_hid),
        "b2": jax.random.normal(ks[3], (c_hid,), jnp.float32) * 0.01,
        "w3": conv(ks[4], 2 * c_hid, c_hid),
        "b3": jax.random.normal(ks[5], (2 * c_hid,), jnp.float32) * 0.01,
        "w4": conv(ks[6], 2 * c_hid, 2 * c_hid),
        "b4": jax.random.normal(ks[7], (2 * c_hid,), jnp.float32) * 0.01,
        "w5": conv(ks[8], 2 * c_hid, 2 * c_hid),
        "b5": jax.random.normal(ks[9], (2 * c_hid,), jnp.float32) * 0.01,
        "wl": jax.random.normal(ks[10], (latent_dim, 2 * 16 * c_hid), jnp.float32)
              / math.sqrt(2 * 16 * c_hid),
        "bl": jax.random.normal(ks[11], (latent_dim,), jnp.float32) * 0.01,
    }


# ----------------------------------------------------------------------------
# Pure-JAX reference (numerical sanity check)
# ----------------------------------------------------------------------------
def encoder_reference(x_nchw, params):
    def conv_ref(x, w, b, stride):
        y = lax.conv_general_dilated(
            x, w, window_strides=(stride, stride), padding=((1, 1), (1, 1)),
            dimension_numbers=("NCHW", "OIHW", "NCHW"))
        y = y + b.reshape(1, -1, 1, 1)
        return jax.nn.gelu(y, approximate=False)

    x = conv_ref(x_nchw, params["w1"], params["b1"], 2)
    x = conv_ref(x, params["w2"], params["b2"], 1)
    x = conv_ref(x, params["w3"], params["b3"], 2)
    x = conv_ref(x, params["w4"], params["b4"], 1)
    x = conv_ref(x, params["w5"], params["b5"], 2)
    x = x.reshape(x.shape[0], -1)
    return x @ params["wl"].T + params["bl"]


if __name__ == "__main__":
    # Spatial size is fixed to 32x32 by the module's Linear(2*16*c_hid, latent).
    B, C_IN, HW = 16, 3, 32
    C_HID, LATENT = 8, 16
    BATCH_TILE = 8          # multiple of 8 (sublane tile); use 32 for peak MXU fill

    key = jax.random.PRNGKey(0)
    kx, kp = jax.random.split(key)
    x = jax.random.normal(kx, (B, C_IN, HW, HW), jnp.float32)
    params = make_params(kp, C_IN, C_HID, LATENT)
    z_ref = jax.block_until_ready(encoder_reference(x, params))

    # f32-operand mode: strict numerics check vs the pure-JAX reference.
    kp32 = precompute_kernel_params(params, compute_dtype=jnp.float32)
    z32 = jax.block_until_ready(encoder_forward(x, kp32, batch_tile=BATCH_TILE))
    assert z32.shape == (B, LATENT), z32.shape
    err32 = float(jnp.max(jnp.abs(z32 - z_ref)))
    assert jnp.allclose(z32, z_ref, rtol=2e-4, atol=2e-4), err32

    # bf16-operand mode (performance configuration): loose tolerance.
    kpbf = precompute_kernel_params(params, compute_dtype=jnp.bfloat16)
    zbf = jax.block_until_ready(encoder_forward(x, kpbf, batch_tile=BATCH_TILE))
    assert zbf.shape == (B, LATENT), zbf.shape
    errbf = float(jnp.max(jnp.abs(zbf - z_ref)))
    assert errbf < 0.1, errbf

    print("KERNEL_OK")
</pallas_src>

<mosaic_0001>
module attributes {stable_mosaic.version = 11 : i64} {
  func.func @kernel(%arg0: i32, %arg1: memref<1x256x128xf32, #tpu.memory_space<vmem>>, %arg2: memref<384x128xf32, #tpu.memory_space<vmem>>, %arg3: memref<1x128xf32, #tpu.memory_space<vmem>>, %arg4: memref<384x128xf32, #tpu.memory_space<vmem>>, %arg5: memref<1x128xf32, #tpu.memory_space<vmem>>, %arg6: memref<384x128xf32, #tpu.memory_space<vmem>>, %arg7: memref<1x128xf32, #tpu.memory_space<vmem>>, %arg8: memref<384x128xf32, #tpu.memory_space<vmem>>, %arg9: memref<1x128xf32, #tpu.memory_space<vmem>>, %arg10: memref<384x64xf32, #tpu.memory_space<vmem>>, %arg11: memref<1x64xf32, #tpu.memory_space<vmem>>, %arg12: memref<256x16xf32, #tpu.memory_space<vmem>>, %arg13: memref<1x16xf32, #tpu.memory_space<vmem>>, %arg14: memref<1x8x16xf32, #tpu.memory_space<vmem>>, %arg15: memref<272x128xf32, #tpu.memory_space<vmem>>, %arg16: memref<144x128xf32, #tpu.memory_space<vmem>>, %arg17: memref<144x128xf32, #tpu.memory_space<vmem>>, %arg18: memref<80x128xf32, #tpu.memory_space<vmem>>, %arg19: memref<80x128xf32, #tpu.memory_space<vmem>>) attributes {dimension_semantics = [#tpu.dimension_semantics<parallel>], iteration_bounds = array<i64: 2>, scalar_prefetch = 0 : i64, scratch_operands = 5 : i64, tpu.core_type = #tpu.core_type<tc>, window_params = [{transform_indices = @transform_0, window_bounds = array<i64: 1, 256, 128>}, {pipeline_mode = #tpu.pipeline_mode<synchronous>, transform_indices = @transform_1, window_bounds = array<i64: 384, 128>}, {pipeline_mode = #tpu.pipeline_mode<synchronous>, transform_indices = @transform_2, window_bounds = array<i64: 1, 128>}, {pipeline_mode = #tpu.pipeline_mode<synchronous>, transform_indices = @transform_3, window_bounds = array<i64: 384, 128>}, {pipeline_mode = #tpu.pipeline_mode<synchronous>, transform_indices = @transform_4, window_bounds = array<i64: 1, 128>}, {pipeline_mode = #tpu.pipeline_mode<synchronous>, transform_indices = @transform_5, window_bounds = array<i64: 384, 128>}, {pipeline_mode = #tpu.pipeline_mode<synchronous>, transform_indices = @transform_6, window_bounds = array<i64: 1, 128>}, {pipeline_mode = #tpu.pipeline_mode<synchronous>, transform_indices = @transform_7, window_bounds = array<i64: 384, 128>}, {pipeline_mode = #tpu.pipeline_mode<synchronous>, transform_indices = @transform_8, window_bounds = array<i64: 1, 128>}, {pipeline_mode = #tpu.pipeline_mode<synchronous>, transform_indices = @transform_9, window_bounds = array<i64: 384, 64>}, {pipeline_mode = #tpu.pipeline_mode<synchronous>, transform_indices = @transform_10, window_bounds = array<i64: 1, 64>}, {pipeline_mode = #tpu.pipeline_mode<synchronous>, transform_indices = @transform_11, window_bounds = array<i64: 256, 16>}, {pipeline_mode = #tpu.pipeline_mode<synchronous>, transform_indices = @transform_12, window_bounds = array<i64: 1, 16>}, {transform_indices = @transform_13, window_bounds = array<i64: 1, 8, 16>}]} {
    %c0 = arith.constant 0 : index
    %c0_0 = arith.constant 0 : index
    %c0_1 = arith.constant 0 : index
    %0 = vector.load %arg1[%c0, %c0_0, %c0_1] : memref<1x256x128xf32, #tpu.memory_space<vmem>>, vector<1x256x128xf32>
    %1 = vector.shape_cast %0 : vector<1x256x128xf32> to vector<256x128xf32>
    %cst = arith.constant 0.000000e+00 : f32
    %2 = vector.broadcast %cst : f32 to vector<8x128xf32>
    %c0_2 = arith.constant 0 : index
    %c0_3 = arith.constant 0 : index
    %3 = vector.load %arg15[%c0_2, %c0_3] : memref<272x128xf32, #tpu.memory_space<vmem>>, vector<8x128xf32>
    tpu.vector_store %arg15[%c0_2, %c0_3], %2 {strides = array<i32>} : memref<272x128xf32, #tpu.memory_space<vmem>>, vector<8x128xf32>,
    %c264 = arith.constant 264 : index
    %c0_4 = arith.constant 0 : index
    %4 = vector.load %arg15[%c264, %c0_4] : memref<272x128xf32, #tpu.memory_space<vmem>>, vector<8x128xf32>
    tpu.vector_store %arg15[%c264, %c0_4], %2 {strides = array<i32>} : memref<272x128xf32, #tpu.memory_space<vmem>>, vector<8x128xf32>,
    %c8 = arith.constant 8 : index
    %c0_5 = arith.constant 0 : index
    %5 = vector.load %arg15[%c8, %c0_5] : memref<272x128xf32, #tpu.memory_space<vmem>>, vector<256x128xf32>
    tpu.vector_store %arg15[%c8, %c0_5], %1 {strides = array<i32>} : memref<272x128xf32, #tpu.memory_space<vmem>>, vector<256x128xf32>,
    %c0_6 = arith.constant 0 : index
    %c0_7 = arith.constant 0 : index
    %6 = vector.load %arg15[%c0_6, %c0_7] : memref<272x128xf32, #tpu.memory_space<vmem>>, vector<8x128xf32>
    %c16 = arith.constant 16 : index
    %c0_8 = arith.constant 0 : index
    %7 = vector.load %arg15[%c16, %c0_8] : memref<272x128xf32, #tpu.memory_space<vmem>>, vector<8x128xf32>
    %c32 = arith.constant 32 : index
    %c0_9 = arith.constant 0 : index
    %8 = vector.load %arg15[%c32, %c0_9] : memref<272x128xf32, #tpu.memory_space<vmem>>, vector<8x128xf32>
    %c48 = arith.constant 48 : index
    %c0_10 = arith.constant 0 : index
    %9 = vector.load %arg15[%c48, %c0_10] : memref<272x128xf32, #tpu.memory_space<vmem>>, vector<8x128xf32>
    %c64 = arith.constant 64 : index
    %c0_11 = arith.constant 0 : index
    %10 = vector.load %arg15[%c64, %c0_11] : memref<272x128xf32, #tpu.memory_space<vmem>>, vector<8x128xf32>
    %c80 = arith.constant 80 : index
    %c0_12 = arith.constant 0 : index
    %11 = vector.load %arg15[%c80, %c0_12] : memref<272x128xf32, #tpu.memory_space<vmem>>, vector<8x128xf32>
    %c96 = arith.constant 96 : index
    %c0_13 = arith.constant 0 : index
    %12 = vector.load %arg15[%c96, %c0_13] : memref<272x128xf32, #tpu.memory_space<vmem>>, vector<8x128xf32>
    %c112 = arith.constant 112 : index
    %c0_14 = arith.constant 0 : index
    %13 = vector.load %arg15[%c112, %c0_14] : memref<272x128xf32, #tpu.memory_space<vmem>>, vector<8x128xf32>
    %c128 = arith.constant 128 : index
    %c0_15 = arith.constant 0 : index
    %14 = vector.load %arg15[%c128, %c0_15] : memref<272x128xf32, #tpu.memory_space<vmem>>, vector<8x128xf32>
    %c144 = arith.constant 144 : index
    %c0_16 = arith.constant 0 : index
    %15 = vector.load %arg15[%c144, %c0_16] : memref<272x128xf32, #tpu.memory_space<vmem>>, vector<8x128xf32>
    %c160 = arith.constant 160 : index
    %c0_17 = arith.constant 0 : index
    %16 = vector.load %arg15[%c160, %c0_17] : memref<272x128xf32, #tpu.memory_space<vmem>>, vector<8x128xf32>
    %c176 = arith.constant 176 : index
    %c0_18 = arith.constant 0 : index
    %17 = vector.load %arg15[%c176, %c0_18] : memref<272x128xf32, #tpu.memory_space<vmem>>, vector<8x128xf32>
    %c192 = arith.constant 192 : index
    %c0_19 = arith.constant 0 : index
    %18 = vector.load %arg15[%c192, %c0_19] : memref<272x128xf32, #tpu.memory_space<vmem>>, vector<8x128xf32>
    %c208 = arith.constant 208 : index
    %c0_20 = arith.constant 0 : index
    %19 = vector.load %arg15[%c208, %c0_20] : memref<272x128xf32, #tpu.memory_space<vmem>>, vector<8x128xf32>
    %c224 = arith.constant 224 : index
    %c0_21 = arith.constant 0 : index
    %20 = vector.load %arg15[%c224, %c0_21] : memref<272x128xf32, #tpu.memory_space<vmem>>, vector<8x128xf32>
    %c240 = arith.constant 240 : index
    %c0_22 = arith.constant 0 : index
    %21 = vector.load %arg15[%c240, %c0_22] : memref<272x128xf32, #tpu.memory_space<vmem>>, vector<8x128xf32>
    %22 = tpu.concatenate %6, %7, %8, %9, %10, %11, %12, %13, %14, %15, %16, %17, %18, %19, %20, %21 in 0 : vector<8x128xf32>, vector<8x128xf32>, vector<8x128xf32>, vector<8x128xf32>, vector<8x128xf32>, vector<8x128xf32>, vector<8x128xf32>, vector<8x128xf32>, vector<8x128xf32>, vector<8x128xf32>, vector<8x128xf32>, vector<8x128xf32>, vector<8x128xf32>, vector<8x128xf32>, vector<8x128xf32>, vector<8x128xf32> -> vector<128x128xf32>
    %c8_23 = arith.constant 8 : index
    %c0_24 = arith.constant 0 : index
    %23 = vector.load %arg15[%c8_23, %c0_24] : memref<272x128xf32, #tpu.memory_space<vmem>>, vector<8x128xf32>
    %c24 = arith.constant 24 : index
    %c0_25 = arith.constant 0 : index
    %24 = vector.load %arg15[%c24, %c0_25] : memref<272x128xf32, #tpu.memory_space<vmem>>, vector<8x128xf32>
    %c40 = arith.constant 40 : index
    %c0_26 = arith.constant 0 : index
    %25 = vector.load %arg15[%c40, %c0_26] : memref<272x128xf32, #tpu.memory_space<vmem>>, vector<8x128xf32>
    %c56 = arith.constant 56 : index
    %c0_27 = arith.constant 0 : index
    %26 = vector.load %arg15[%c56, %c0_27] : memref<272x128xf32, #tpu.memory_space<vmem>>, vector<8x128xf32>
    %c72 = arith.constant 72 : index
    %c0_28 = arith.constant 0 : index
    %27 = vector.load %arg15[%c72, %c0_28] : memref<272x128xf32, #tpu.memory_space<vmem>>, vector<8x128xf32>
    %c88 = arith.constant 88 : index
    %c0_29 = arith.constant 0 : index
    %28 = vector.load %arg15[%c88, %c0_29] : memref<272x128xf32, #tpu.memory_space<vmem>>, vector<8x128xf32>
    %c104 = arith.constant 104 : index
    %c0_30 = arith.constant 0 : index
    %29 = vector.load %arg15[%c104, %c0_30] : memref<272x128xf32, #tpu.memory_space<vmem>>, vector<8x128xf32>
    %c120 = arith.constant 120 : index
    %c0_31 = arith.constant 0 : index
    %30 = vector.load %arg15[%c120, %c0_31] : memref<272x128xf32, #tpu.memory_space<vmem>>, vector<8x128xf32>
    %c136 = arith.constant 136 : index
    %c0_32 = arith.constant 0 : index
    %31 = vector.load %arg15[%c136, %c0_32] : memref<272x128xf32, #tpu.memory_space<vmem>>, vector<8x128xf32>
    %c152 = arith.constant 152 : index
    %c0_33 = arith.constant 0 : index
    %32 = vector.load %arg15[%c152, %c0_33] : memref<272x128xf32, #tpu.memory_space<vmem>>, vector<8x128xf32>
    %c168 = arith.constant 168 : index
    %c0_34 = arith.constant 0 : index
    %33 = vector.load %arg15[%c168, %c0_34] : memref<272x128xf32, #tpu.memory_space<vmem>>, vector<8x128xf32>
    %c184 = arith.constant 184 : index
    %c0_35 = arith.constant 0 : index
    %34 = vector.load %arg15[%c184, %c0_35] : memref<272x128xf32, #tpu.memory_space<vmem>>, vector<8x128xf32>
    %c200 = arith.constant 200 : index
    %c0_36 = arith.constant 0 : index
    %35 = vector.load %arg15[%c200, %c0_36] : memref<272x128xf32, #tpu.memory_space<vmem>>, vector<8x128xf32>
    %c216 = arith.constant 216 : index
    %c0_37 = arith.constant 0 : index
    %36 = vector.load %arg15[%c216, %c0_37] : memref<272x128xf32, #tpu.memory_space<vmem>>, vector<8x128xf32>
    %c232 = arith.constant 232 : index
    %c0_38 = arith.constant 0 : index
    %37 = vector.load %arg15[%c232, %c0_38] : memref<272x128xf32, #tpu.memory_space<vmem>>, vector<8x128xf32>
    %c248 = arith.constant 248 : index
    %c0_39 = arith.constant 0 : index
    %38 = vector.load %arg15[%c248, %c0_39] : memref<272x128xf32, #tpu.memory_space<vmem>>, vector<8x128xf32>
    %39 = tpu.concatenate %23, %24, %25, %26, %27, %28, %29, %30, %31, %32, %33, %34, %35, %36, %37, %38 in 0 : vector<8x128xf32>, vector<8x128xf32>, vector<8x128xf32>, vector<8x128xf32>, vector<8x128xf32>, vector<8x128xf32>, vector<8x128xf32>, vector<8x128xf32>, vector<8x128xf32>, vector<8x128xf32>, vector<8x128xf32>, vector<8x128xf32>, vector<8x128xf32>, vector<8x128xf32>, vector<8x128xf32>, vector<8x128xf32> -> vector<128x128xf32>
    %c16_40 = arith.constant 16 : index
    %c0_41 = arith.constant 0 : index
    %40 = vector.load %arg15[%c16_40, %c0_41] : memref<272x128xf32, #tpu.memory_space<vmem>>, vector<8x128xf32>
    %c32_42 = arith.constant 32 : index
    %c0_43 = arith.constant 0 : index
    %41 = vector.load %arg15[%c32_42, %c0_43] : memref<272x128xf32, #tpu.memory_space<vmem>>, vector<8x128xf32>
    %c48_44 = arith.constant 48 : index
    %c0_45 = arith.constant 0 : index
    %42 = vector.load %arg15[%c48_44, %c0_45] : memref<272x128xf32, #tpu.memory_space<vmem>>, vector<8x128xf32>
    %c64_46 = arith.constant 64 : index
    %c0_47 = arith.constant 0 : index
    %43 = vector.load %arg15[%c64_46, %c0_47] : memref<272x128xf32, #tpu.memory_space<vmem>>, vector<8x128xf32>
    %c80_48 = arith.constant 80 : index
    %c0_49 = arith.constant 0 : index
    %44 = vector.load %arg15[%c80_48, %c0_49] : memref<272x128xf32, #tpu.memory_space<vmem>>, vector<8x128xf32>
    %c96_50 = arith.constant 96 : index
    %c0_51 = arith.constant 0 : index
    %45 = vector.load %arg15[%c96_50, %c0_51] : memref<272x128xf32, #tpu.memory_space<vmem>>, vector<8x128xf32>
    %c112_52 = arith.constant 112 : index
    %c0_53 = arith.constant 0 : index
    %46 = vector.load %arg15[%c112_52, %c0_53] : memref<272x128xf32, #tpu.memory_space<vmem>>, vector<8x128xf32>
    %c128_54 = arith.constant 128 : index
    %c0_55 = arith.constant 0 : index
    %47 = vector.load %arg15[%c128_54, %c0_55] : memref<272x128xf32, #tpu.memory_space<vmem>>, vector<8x128xf32>
    %c144_56 = arith.constant 144 : index
    %c0_57 = arith.constant 0 : index
    %48 = vector.load %arg15[%c144_56, %c0_57] : memref<272x128xf32, #tpu.memory_space<vmem>>, vector<8x128xf32>
    %c160_58 = arith.constant 160 : index
    %c0_59 = arith.constant 0 : index
    %49 = vector.load %arg15[%c160_58, %c0_59] : memref<272x128xf32, #tpu.memory_space<vmem>>, vector<8x128xf32>
    %c176_60 = arith.constant 176 : index
    %c0_61 = arith.constant 0 : index
    %50 = vector.load %arg15[%c176_60, %c0_61] : memref<272x128xf32, #tpu.memory_space<vmem>>, vector<8x128xf32>
    %c192_62 = arith.constant 192 : index
    %c0_63 = arith.constant 0 : index
    %51 = vector.load %arg15[%c192_62, %c0_63] : memref<272x128xf32, #tpu.memory_space<vmem>>, vector<8x128xf32>
    %c208_64 = arith.constant 208 : index
    %c0_65 = arith.constant 0 : index
    %52 = vector.load %arg15[%c208_64, %c0_65] : memref<272x128xf32, #tpu.memory_space<vmem>>, vector<8x128xf32>
    %c224_66 = arith.constant 224 : index
    %c0_67 = arith.constant 0 : index
    %53 = vector.load %arg15[%c224_66, %c0_67] : memref<272x128xf32, #tpu.memory_space<vmem>>, vector<8x128xf32>
    %c240_68 = arith.constant 240 : index
    %c0_69 = arith.constant 0 : index
    %54 = vector.load %arg15[%c240_68, %c0_69] : memref<272x128xf32, #tpu.memory_space<vmem>>, vector<8x128xf32>
    %c256 = arith.constant 256 : index
    %c0_70 = arith.constant 0 : index
    %55 = vector.load %arg15[%c256, %c0_70] : memref<272x128xf32, #tpu.memory_space<vmem>>, vector<8x128xf32>
    %56 = tpu.concatenate %40, %41, %42, %43, %44, %45, %46, %47, %48, %49, %50, %51, %52, %53, %54, %55 in 0 : vector<8x128xf32>, vector<8x128xf32>, vector<8x128xf32>, vector<8x128xf32>, vector<8x128xf32>, vector<8x128xf32>, vector<8x128xf32>, vector<8x128xf32>, vector<8x128xf32>, vector<8x128xf32>, vector<8x128xf32>, vector<8x128xf32>, vector<8x128xf32>, vector<8x128xf32>, vector<8x128xf32>, vector<8x128xf32> -> vector<128x128xf32>
    %57 = tpu.concatenate %22, %39, %56 in 1 : vector<128x128xf32>, vector<128x128xf32>, vector<128x128xf32> -> vector<128x384xf32>
    %c0_71 = arith.constant 0 : index
    %c0_72 = arith.constant 0 : index
    %58 = vector.load %arg2[%c0_71, %c0_72] : memref<384x128xf32, #tpu.memory_space<vmem>>, vector<384x128xf32>
    %cst_73 = arith.constant dense<0.000000e+00> : vector<128x128xf32>
    %59 = tpu.matmul %57, %58, %cst_73 {dimension_numbers = #tpu.dot_dimension_numbers<[1], [0], [0], [1], [0, 0, 1, 1], [], []>} : vector<128x384xf32>, vector<384x128xf32>, vector<128x128xf32> -> vector<128x128xf32>
    %c0_74 = arith.constant 0 : index
    %c0_75 = arith.constant 0 : index
    %60 = vector.load %arg3[%c0_74, %c0_75] : memref<1x128xf32, #tpu.memory_space<vmem>>, vector<1x128xf32>
    %61 = vector.broadcast %60 : vector<1x128xf32> to vector<128x128xf32>
    %62 = arith.addf %59, %61 : vector<128x128xf32>
    %cst_76 = arith.constant 5.000000e-01 : f32
    %63 = vector.broadcast %cst_76 : f32 to vector<128x128xf32>
    %64 = arith.mulf %63, %62 : vector<128x128xf32>
    %cst_77 = arith.constant 0.707106769 : f32
    %65 = vector.broadcast %cst_77 : f32 to vector<128x128xf32>
    %66 = arith.mulf %62, %65 : vector<128x128xf32>
    %67 = math.erf %66 : vector<128x128xf32>
    %cst_78 = arith.constant 1.000000e+00 : f32
    %68 = vector.broadcast %cst_78 : f32 to vector<128x128xf32>
    %69 = arith.addf %68, %67 : vector<128x128xf32>
    %70 = arith.mulf %64, %69 : vector<128x128xf32>
    %cst_79 = arith.constant 0.000000e+00 : f32
    %71 = vector.broadcast %cst_79 : f32 to vector<8x128xf32>
    %c0_80 = arith.constant 0 : index
    %c0_81 = arith.constant 0 : index
    %72 = vector.load %arg16[%c0_80, %c0_81] : memref<144x128xf32, #tpu.memory_space<vmem>>, vector<8x128xf32>
    tpu.vector_store %arg16[%c0_80, %c0_81], %71 {strides = array<i32>} : memref<144x128xf32, #tpu.memory_space<vmem>>, vector<8x128xf32>,
    %c136_82 = arith.constant 136 : index
    %c0_83 = arith.constant 0 : index
    %73 = vector.load %arg16[%c136_82, %c0_83] : memref<144x128xf32, #tpu.memory_space<vmem>>, vector<8x128xf32>
    tpu.vector_store %arg16[%c136_82, %c0_83], %71 {strides = array<i32>} : memref<144x128xf32, #tpu.memory_space<vmem>>, vector<8x128xf32>,
    %c8_84 = arith.constant 8 : index
    %c0_85 = arith.constant 0 : index
    %74 = vector.load %arg16[%c8_84, %c0_85] : memref<144x128xf32, #tpu.memory_space<vmem>>, vector<128x128xf32>
    tpu.vector_store %arg16[%c8_84, %c0_85], %70 {strides = array<i32>} : memref<144x128xf32, #tpu.memory_space<vmem>>, vector<128x128xf32>,
    %c0_86 = arith.constant 0 : index
    %c0_87 = arith.constant 0 : index
    %75 = vector.load %arg16[%c0_86, %c0_87] : memref<144x128xf32, #tpu.memory_space<vmem>>, vector<128x128xf32>
    %c8_88 = arith.constant 8 : index
    %c0_89 = arith.constant 0 : index
    %76 = vector.load %arg16[%c8_88, %c0_89] : memref<144x128xf32, #tpu.memory_space<vmem>>, vector<128x128xf32>
    %c16_90 = arith.constant 16 : index
    %c0_91 = arith.constant 0 : index
    %77 = vector.load %arg16[%c16_90, %c0_91] : memref<144x128xf32, #tpu.memory_space<vmem>>, vector<128x128xf32>
    %78 = tpu.concatenate %75, %76, %77 in 1 : vector<128x128xf32>, vector<128x128xf32>, vector<128x128xf32> -> vector<128x384xf32>
    %c0_92 = arith.constant 0 : index
    %c0_93 = arith.constant 0 : index
    %79 = vector.load %arg4[%c0_92, %c0_93] : memref<384x128xf32, #tpu.memory_space<vmem>>, vector<384x128xf32>
    %cst_94 = arith.constant dense<0.000000e+00> : vector<128x128xf32>
    %80 = tpu.matmul %78, %79, %cst_94 {dimension_numbers = #tpu.dot_dimension_numbers<[1], [0], [0], [1], [0, 0, 1, 1], [], []>} : vector<128x384xf32>, vector<384x128xf32>, vector<128x128xf32> -> vector<128x128xf32>
    %c0_95 = arith.constant 0 : index
    %c0_96 = arith.constant 0 : index
    %81 = vector.load %arg5[%c0_95, %c0_96] : memref<1x128xf32, #tpu.memory_space<vmem>>, vector<1x128xf32>
    %82 = vector.broadcast %81 : vector<1x128xf32> to vector<128x128xf32>
    %83 = arith.addf %80, %82 : vector<128x128xf32>
    %cst_97 = arith.constant 5.000000e-01 : f32
    %84 = vector.broadcast %cst_97 : f32 to vector<128x128xf32>
    %85 = arith.mulf %84, %83 : vector<128x128xf32>
    %cst_98 = arith.constant 0.707106769 : f32
    %86 = vector.broadcast %cst_98 : f32 to vector<128x128xf32>
    %87 = arith.mulf %83, %86 : vector<128x128xf32>
    %88 = math.erf %87 : vector<128x128xf32>
    %cst_99 = arith.constant 1.000000e+00 : f32
    %89 = vector.broadcast %cst_99 : f32 to vector<128x128xf32>
    %90 = arith.addf %89, %88 : vector<128x128xf32>
    %91 = arith.mulf %85, %90 : vector<128x128xf32>
    %cst_100 = arith.constant 0.000000e+00 : f32
    %92 = vector.broadcast %cst_100 : f32 to vector<8x128xf32>
    %c0_101 = arith.constant 0 : index
    %c0_102 = arith.constant 0 : index
    %93 = vector.load %arg17[%c0_101, %c0_102] : memref<144x128xf32, #tpu.memory_space<vmem>>, vector<8x128xf32>
    tpu.vector_store %arg17[%c0_101, %c0_102], %92 {strides = array<i32>} : memref<144x128xf32, #tpu.memory_space<vmem>>, vector<8x128xf32>,
    %c136_103 = arith.constant 136 : index
    %c0_104 = arith.constant 0 : index
    %94 = vector.load %arg17[%c136_103, %c0_104] : memref<144x128xf32, #tpu.memory_space<vmem>>, vector<8x128xf32>
    tpu.vector_store %arg17[%c136_103, %c0_104], %92 {strides = array<i32>} : memref<144x128xf32, #tpu.memory_space<vmem>>, vector<8x128xf32>,
    %c8_105 = arith.constant 8 : index
    %c0_106 = arith.constant 0 : index
    %95 = vector.load %arg17[%c8_105, %c0_106] : memref<144x128xf32, #tpu.memory_space<vmem>>, vector<128x128xf32>
    tpu.vector_store %arg17[%c8_105, %c0_106], %91 {strides = array<i32>} : memref<144x128xf32, #tpu.memory_space<vmem>>, vector<128x128xf32>,
    %c0_107 = arith.constant 0 : index
    %c0_108 = arith.constant 0 : index
    %96 = vector.load %arg17[%c0_107, %c0_108] : memref<144x128xf32, #tpu.memory_space<vmem>>, vector<8x128xf32>
    %c16_109 = arith.constant 16 : index
    %c0_110 = arith.constant 0 : index
    %97 = vector.load %arg17[%c16_109, %c0_110] : memref<144x128xf32, #tpu.memory_space<vmem>>, vector<8x128xf32>
    %c32_111 = arith.constant 32 : index
    %c0_112 = arith.constant 0 : index
    %98 = vector.load %arg17[%c32_111, %c0_112] : memref<144x128xf32, #tpu.memory_space<vmem>>, vector<8x128xf32>
    %c48_113 = arith.constant 48 : index
    %c0_114 = arith.constant 0 : index
    %99 = vector.load %arg17[%c48_113, %c0_114] : memref<144x128xf32, #tpu.memory_space<vmem>>, vector<8x128xf32>
    %c64_115 = arith.constant 64 : index
    %c0_116 = arith.constant 0 : index
    %100 = vector.load %arg17[%c64_115, %c0_116] : memref<144x128xf32, #tpu.memory_space<vmem>>, vector<8x128xf32>
    %c80_117 = arith.constant 80 : index
    %c0_118 = arith.constant 0 : index
    %101 = vector.load %arg17[%c80_117, %c0_118] : memref<144x128xf32, #tpu.memory_space<vmem>>, vector<8x128xf32>
    %c96_119 = arith.constant 96 : index
    %c0_120 = arith.constant 0 : index
    %102 = vector.load %arg17[%c96_119, %c0_120] : memref<144x128xf32, #tpu.memory_space<vmem>>, vector<8x128xf32>
    %c112_121 = arith.constant 112 : index
    %c0_122 = arith.constant 0 : index
    %103 = vector.load %arg17[%c112_121, %c0_122] : memref<144x128xf32, #tpu.memory_space<vmem>>, vector<8x128xf32>
    %104 = tpu.concatenate %96, %97, %98, %99, %100, %101, %102, %103 in 0 : vector<8x128xf32>, vector<8x128xf32>, vector<8x128xf32>, vector<8x128xf32>, vector<8x128xf32>, vector<8x128xf32>, vector<8x128xf32>, vector<8x128xf32> -> vector<64x128xf32>
    %c8_123 = arith.constant 8 : index
    %c0_124 = arith.constant 0 : index
    %105 = vector.load %arg17[%c8_123, %c0_124] : memref<144x128xf32, #tpu.memory_space<vmem>>, vector<8x128xf32>
    %c24_125 = arith.constant 24 : index
    %c0_126 = arith.constant 0 : index
    %106 = vector.load %arg17[%c24_125, %c0_126] : memref<144x128xf32, #tpu.memory_space<vmem>>, vector<8x128xf32>
    %c40_127 = arith.constant 40 : index
    %c0_128 = arith.constant 0 : index
    %107 = vector.load %arg17[%c40_127, %c0_128] : memref<144x128xf32, #tpu.memory_space<vmem>>, vector<8x128xf32>
    %c56_129 = arith.constant 56 : index
    %c0_130 = arith.constant 0 : index
    %108 = vector.load %arg17[%c56_129, %c0_130] : memref<144x128xf32, #tpu.memory_space<vmem>>, vector<8x128xf32>
    %c72_131 = arith.constant 72 : index
    %c0_132 = arith.constant 0 : index
    %109 = vector.load %arg17[%c72_131, %c0_132] : memref<144x128xf32, #tpu.memory_space<vmem>>, vector<8x128xf32>
    %c88_133 = arith.constant 88 : index
    %c0_134 = arith.constant 0 : index
    %110 = vector.load %arg17[%c88_133, %c0_134] : memref<144x128xf32, #tpu.memory_space<vmem>>, vector<8x128xf32>
    %c104_135 = arith.constant 104 : index
    %c0_136 = arith.constant 0 : index
    %111 = vector.load %arg17[%c104_135, %c0_136] : memref<144x128xf32, #tpu.memory_space<vmem>>, vector<8x128xf32>
    %c120_137 = arith.constant 120 : index
    %c0_138 = arith.constant 0 : index
    %112 = vector.load %arg17[%c120_137, %c0_138] : memref<144x128xf32, #tpu.memory_space<vmem>>, vector<8x128xf32>
    %113 = tpu.concatenate %105, %106, %107, %108, %109, %110, %111, %112 in 0 : vector<8x128xf32>, vector<8x128xf32>, vector<8x128xf32>, vector<8x128xf32>, vector<8x128xf32>, vector<8x128xf32>, vector<8x128xf32>, vector<8x128xf32> -> vector<64x128xf32>
    %c16_139 = arith.constant 16 : index
    %c0_140 = arith.constant 0 : index
    %114 = vector.load %arg17[%c16_139, %c0_140] : memref<144x128xf32, #tpu.memory_space<vmem>>, vector<8x128xf32>
    %c32_141 = arith.constant 32 : index
    %c0_142 = arith.constant 0 : index
    %115 = vector.load %arg17[%c32_141, %c0_142] : memref<144x128xf32, #tpu.memory_space<vmem>>, vector<8x128xf32>
    %c48_143 = arith.constant 48 : index
    %c0_144 = arith.constant 0 : index
    %116 = vector.load %arg17[%c48_143, %c0_144] : memref<144x128xf32, #tpu.memory_space<vmem>>, vector<8x128xf32>
    %c64_145 = arith.constant 64 : index
    %c0_146 = arith.constant 0 : index
    %117 = vector.load %arg17[%c64_145, %c0_146] : memref<144x128xf32, #tpu.memory_space<vmem>>, vector<8x128xf32>
    %c80_147 = arith.constant 80 : index
    %c0_148 = arith.constant 0 : index
    %118 = vector.load %arg17[%c80_147, %c0_148] : memref<144x128xf32, #tpu.memory_space<vmem>>, vector<8x128xf32>
    %c96_149 = arith.constant 96 : index
    %c0_150 = arith.constant 0 : index
    %119 = vector.load %arg17[%c96_149, %c0_150] : memref<144x128xf32, #tpu.memory_space<vmem>>, vector<8x128xf32>
    %c112_151 = arith.constant 112 : index
    %c0_152 = arith.constant 0 : index
    %120 = vector.load %arg17[%c112_151, %c0_152] : memref<144x128xf32, #tpu.memory_space<vmem>>, vector<8x128xf32>
    %c128_153 = arith.constant 128 : index
    %c0_154 = arith.constant 0 : index
    %121 = vector.load %arg17[%c128_153, %c0_154] : memref<144x128xf32, #tpu.memory_space<vmem>>, vector<8x128xf32>
    %122 = tpu.concatenate %114, %115, %116, %117, %118, %119, %120, %121 in 0 : vector<8x128xf32>, vector<8x128xf32>, vector<8x128xf32>, vector<8x128xf32>, vector<8x128xf32>, vector<8x128xf32>, vector<8x128xf32>, vector<8x128xf32> -> vector<64x128xf32>
    %123 = tpu.concatenate %104, %113, %122 in 1 : vector<64x128xf32>, vector<64x128xf32>, vector<64x128xf32> -> vector<64x384xf32>
    %c0_155 = arith.constant 0 : index
    %c0_156 = arith.constant 0 : index
    %124 = vector.load %arg6[%c0_155, %c0_156] : memref<384x128xf32, #tpu.memory_space<vmem>>, vector<384x128xf32>
    %cst_157 = arith.constant dense<0.000000e+00> : vector<64x128xf32>
    %125 = tpu.matmul %123, %124, %cst_157 {dimension_numbers = #tpu.dot_dimension_numbers<[1], [0], [0], [1], [0, 0, 1, 1], [], []>} : vector<64x384xf32>, vector<384x128xf32>, vector<64x128xf32> -> vector<64x128xf32>
    %c0_158 = arith.constant 0 : index
    %c0_159 = arith.constant 0 : index
    %126 = vector.load %arg7[%c0_158, %c0_159] : memref<1x128xf32, #tpu.memory_space<vmem>>, vector<1x128xf32>
    %127 = vector.broadcast %126 : vector<1x128xf32> to vector<64x128xf32>
    %128 = arith.addf %125, %127 : vector<64x128xf32>
    %cst_160 = arith.constant 5.000000e-01 : f32
    %129 = vector.broadcast %cst_160 : f32 to vector<64x128xf32>
    %130 = arith.mulf %129, %128 : vector<64x128xf32>
    %cst_161 = arith.constant 0.707106769 : f32
    %131 = vector.broadcast %cst_161 : f32 to vector<64x128xf32>
    %132 = arith.mulf %128, %131 : vector<64x128xf32>
    %133 = math.erf %132 : vector<64x128xf32>
    %cst_162 = arith.constant 1.000000e+00 : f32
    %134 = vector.broadcast %cst_162 : f32 to vector<64x128xf32>
    %135 = arith.addf %134, %133 : vector<64x128xf32>
    %136 = arith.mulf %130, %135 : vector<64x128xf32>
    %cst_163 = arith.constant 0.000000e+00 : f32
    %137 = vector.broadcast %cst_163 : f32 to vector<8x128xf32>
    %c0_164 = arith.constant 0 : index
    %c0_165 = arith.constant 0 : index
    %138 = vector.load %arg18[%c0_164, %c0_165] : memref<80x128xf32, #tpu.memory_space<vmem>>, vector<8x128xf32>
    tpu.vector_store %arg18[%c0_164, %c0_165], %137 {strides = array<i32>} : memref<80x128xf32, #tpu.memory_space<vmem>>, vector<8x128xf32>,
    %c72_166 = arith.constant 72 : index
    %c0_167 = arith.constant 0 : index
    %139 = vector.load %arg18[%c72_166, %c0_167] : memref<80x128xf32, #tpu.memory_space<vmem>>, vector<8x128xf32>
    tpu.vector_store %arg18[%c72_166, %c0_167], %137 {strides = array<i32>} : memref<80x128xf32, #tpu.memory_space<vmem>>, vector<8x128xf32>,
    %c8_168 = arith.constant 8 : index
    %c0_169 = arith.constant 0 : index
    %140 = vector.load %arg18[%c8_168, %c0_169] : memref<80x128xf32, #tpu.memory_space<vmem>>, vector<64x128xf32>
    tpu.vector_store %arg18[%c8_168, %c0_169], %136 {strides = array<i32>} : memref<80x128xf32, #tpu.memory_space<vmem>>, vector<64x128xf32>,
    %c0_170 = arith.constant 0 : index
    %c0_171 = arith.constant 0 : index
    %141 = vector.load %arg18[%c0_170, %c0_171] : memref<80x128xf32, #tpu.memory_space<vmem>>, vector<64x128xf32>
    %c8_172 = arith.constant 8 : index
    %c0_173 = arith.constant 0 : index
    %142 = vector.load %arg18[%c8_172, %c0_173] : memref<80x128xf32, #tpu.memory_space<vmem>>, vector<64x128xf32>
    %c16_174 = arith.constant 16 : index
    %c0_175 = arith.constant 0 : index
    %143 = vector.load %arg18[%c16_174, %c0_175] : memref<80x128xf32, #tpu.memory_space<vmem>>, vector<64x128xf32>
    %144 = tpu.concatenate %141, %142, %143 in 1 : vector<64x128xf32>, vector<64x128xf32>, vector<64x128xf32> -> vector<64x384xf32>
    %c0_176 = arith.constant 0 : index
    %c0_177 = arith.constant 0 : index
    %145 = vector.load %arg8[%c0_176, %c0_177] : memref<384x128xf32, #tpu.memory_space<vmem>>, vector<384x128xf32>
    %cst_178 = arith.constant dense<0.000000e+00> : vector<64x128xf32>
    %146 = tpu.matmul %144, %145, %cst_178 {dimension_numbers = #tpu.dot_dimension_numbers<[1], [0], [0], [1], [0, 0, 1, 1], [], []>} : vector<64x384xf32>, vector<384x128xf32>, vector<64x128xf32> -> vector<64x128xf32>
    %c0_179 = arith.constant 0 : index
    %c0_180 = arith.constant 0 : index
    %147 = vector.load %arg9[%c0_179, %c0_180] : memref<1x128xf32, #tpu.memory_space<vmem>>, vector<1x128xf32>
    %148 = vector.broadcast %147 : vector<1x128xf32> to vector<64x128xf32>
    %149 = arith.addf %146, %148 : vector<64x128xf32>
    %cst_181 = arith.constant 5.000000e-01 : f32
    %150 = vector.broadcast %cst_181 : f32 to vector<64x128xf32>
    %151 = arith.mulf %150, %149 : vector<64x128xf32>
    %cst_182 = arith.constant 0.707106769 : f32
    %152 = vector.broadcast %cst_182 : f32 to vector<64x128xf32>
    %153 = arith.mulf %149, %152 : vector<64x128xf32>
    %154 = math.erf %153 : vector<64x128xf32>
    %cst_183 = arith.constant 1.000000e+00 : f32
    %155 = vector.broadcast %cst_183 : f32 to vector<64x128xf32>
    %156 = arith.addf %155, %154 : vector<64x128xf32>
    %157 = arith.mulf %151, %156 : vector<64x128xf32>
    %cst_184 = arith.constant 0.000000e+00 : f32
    %158 = vector.broadcast %cst_184 : f32 to vector<8x128xf32>
    %c0_185 = arith.constant 0 : index
    %c0_186 = arith.constant 0 : index
    %159 = vector.load %arg19[%c0_185, %c0_186] : memref<80x128xf32, #tpu.memory_space<vmem>>, vector<8x128xf32>
    tpu.vector_store %arg19[%c0_185, %c0_186], %158 {strides = array<i32>} : memref<80x128xf32, #tpu.memory_space<vmem>>, vector<8x128xf32>,
    %c72_187 = arith.constant 72 : index
    %c0_188 = arith.constant 0 : index
    %160 = vector.load %arg19[%c72_187, %c0_188] : memref<80x128xf32, #tpu.memory_space<vmem>>, vector<8x128xf32>
    tpu.vector_store %arg19[%c72_187, %c0_188], %158 {strides = array<i32>} : memref<80x128xf32, #tpu.memory_space<vmem>>, vector<8x128xf32>,
    %c8_189 = arith.constant 8 : index
    %c0_190 = arith.constant 0 : index
    %161 = vector.load %arg19[%c8_189, %c0_190] : memref<80x128xf32, #tpu.memory_space<vmem>>, vector<64x128xf32>
    tpu.vector_store %arg19[%c8_189, %c0_190], %157 {strides = array<i32>} : memref<80x128xf32, #tpu.memory_space<vmem>>, vector<64x128xf32>,
    %c0_191 = arith.constant 0 : index
    %c0_192 = arith.constant 0 : index
    %162 = vector.load %arg19[%c0_191, %c0_192] : memref<80x128xf32, #tpu.memory_space<vmem>>, vector<8x128xf32>
    %c16_193 = arith.constant 16 : index
    %c0_194 = arith.constant 0 : index
    %163 = vector.load %arg19[%c16_193, %c0_194] : memref<80x128xf32, #tpu.memory_space<vmem>>, vector<8x128xf32>
    %c32_195 = arith.constant 32 : index
    %c0_196 = arith.constant 0 : index
    %164 = vector.load %arg19[%c32_195, %c0_196] : memref<80x128xf32, #tpu.memory_space<vmem>>, vector<8x128xf32>
    %c48_197 = arith.constant 48 : index
    %c0_198 = arith.constant 0 : index
    %165 = vector.load %arg19[%c48_197, %c0_198] : memref<80x128xf32, #tpu.memory_space<vmem>>, vector<8x128xf32>
    %166 = tpu.concatenate %162, %163, %164, %165 in 0 : vector<8x128xf32>, vector<8x128xf32>, vector<8x128xf32>, vector<8x128xf32> -> vector<32x128xf32>
    %c8_199 = arith.constant 8 : index
    %c0_200 = arith.constant 0 : index
    %167 = vector.load %arg19[%c8_199, %c0_200] : memref<80x128xf32, #tpu.memory_space<vmem>>, vector<8x128xf32>
    %c24_201 = arith.constant 24 : index
    %c0_202 = arith.constant 0 : index
    %168 = vector.load %arg19[%c24_201, %c0_202] : memref<80x128xf32, #tpu.memory_space<vmem>>, vector<8x128xf32>
    %c40_203 = arith.constant 40 : index
    %c0_204 = arith.constant 0 : index
    %169 = vector.load %arg19[%c40_203, %c0_204] : memref<80x128xf32, #tpu.memory_space<vmem>>, vector<8x128xf32>
    %c56_205 = arith.constant 56 : index
    %c0_206 = arith.constant 0 : index
    %170 = vector.load %arg19[%c56_205, %c0_206] : memref<80x128xf32, #tpu.memory_space<vmem>>, vector<8x128xf32>
    %171 = tpu.concatenate %167, %168, %169, %170 in 0 : vector<8x128xf32>, vector<8x128xf32>, vector<8x128xf32>, vector<8x128xf32> -> vector<32x128xf32>
    %c16_207 = arith.constant 16 : index
    %c0_208 = arith.constant 0 : index
    %172 = vector.load %arg19[%c16_207, %c0_208] : memref<80x128xf32, #tpu.memory_space<vmem>>, vector<8x128xf32>
    %c32_209 = arith.constant 32 : index
    %c0_210 = arith.constant 0 : index
    %173 = vector.load %arg19[%c32_209, %c0_210] : memref<80x128xf32, #tpu.memory_space<vmem>>, vector<8x128xf32>
    %c48_211 = arith.constant 48 : index
    %c0_212 = arith.constant 0 : index
    %174 = vector.load %arg19[%c48_211, %c0_212] : memref<80x128xf32, #tpu.memory_space<vmem>>, vector<8x128xf32>
    %c64_213 = arith.constant 64 : index
    %c0_214 = arith.constant 0 : index
    %175 = vector.load %arg19[%c64_213, %c0_214] : memref<80x128xf32, #tpu.memory_space<vmem>>, vector<8x128xf32>
    %176 = tpu.concatenate %172, %173, %174, %175 in 0 : vector<8x128xf32>, vector<8x128xf32>, vector<8x128xf32>, vector<8x128xf32> -> vector<32x128xf32>
    %177 = tpu.concatenate %166, %171, %176 in 1 : vector<32x128xf32>, vector<32x128xf32>, vector<32x128xf32> -> vector<32x384xf32>
    %c0_215 = arith.constant 0 : index
    %c0_216 = arith.constant 0 : index
    %178 = vector.load %arg10[%c0_215, %c0_216] : memref<384x64xf32, #tpu.memory_space<vmem>>, vector<384x64xf32>
    %cst_217 = arith.constant dense<0.000000e+00> : vector<32x64xf32>
    %179 = tpu.matmul %177, %178, %cst_217 {dimension_numbers = #tpu.dot_dimension_numbers<[1], [0], [0], [1], [0, 0, 1, 1], [], []>} : vector<32x384xf32>, vector<384x64xf32>, vector<32x64xf32> -> vector<32x64xf32>
    %c0_218 = arith.constant 0 : index
    %c0_219 = arith.constant 0 : index
    %180 = vector.load %arg11[%c0_218, %c0_219] : memref<1x64xf32, #tpu.memory_space<vmem>>, vector<1x64xf32>
    %181 = vector.broadcast %180 : vector<1x64xf32> to vector<32x64xf32>
    %182 = arith.addf %179, %181 : vector<32x64xf32>
    %cst_220 = arith.constant 5.000000e-01 : f32
    %183 = vector.broadcast %cst_220 : f32 to vector<32x64xf32>
    %184 = arith.mulf %183, %182 : vector<32x64xf32>
    %cst_221 = arith.constant 0.707106769 : f32
    %185 = vector.broadcast %cst_221 : f32 to vector<32x64xf32>
    %186 = arith.mulf %182, %185 : vector<32x64xf32>
    %187 = math.erf %186 : vector<32x64xf32>
    %cst_222 = arith.constant 1.000000e+00 : f32
    %188 = vector.broadcast %cst_222 : f32 to vector<32x64xf32>
    %189 = arith.addf %188, %187 : vector<32x64xf32>
    %190 = arith.mulf %184, %189 : vector<32x64xf32>
    %191 = vector.extract_strided_slice %190 {offsets = [0, 0], sizes = [8, 64], strides = [1, 1]} : vector<32x64xf32> to vector<8x64xf32>
    %192 = vector.extract_strided_slice %190 {offsets = [8, 0], sizes = [8, 64], strides = [1, 1]} : vector<32x64xf32> to vector<8x64xf32>
    %193 = vector.extract_strided_slice %190 {offsets = [16, 0], sizes = [8, 64], strides = [1, 1]} : vector<32x64xf32> to vector<8x64xf32>
    %194 = vector.extract_strided_slice %190 {offsets = [24, 0], sizes = [8, 64], strides = [1, 1]} : vector<32x64xf32> to vector<8x64xf32>
    %195 = tpu.concatenate %191, %192, %193, %194 in 1 : vector<8x64xf32>, vector<8x64xf32>, vector<8x64xf32>, vector<8x64xf32> -> vector<8x256xf32>
    %c0_223 = arith.constant 0 : index
    %c0_224 = arith.constant 0 : index
    %196 = vector.load %arg12[%c0_223, %c0_224] : memref<256x16xf32, #tpu.memory_space<vmem>>, vector<256x16xf32>
    %cst_225 = arith.constant dense<0.000000e+00> : vector<8x16xf32>
    %197 = tpu.matmul %195, %196, %cst_225 {dimension_numbers = #tpu.dot_dimension_numbers<[1], [0], [0], [1], [0, 0, 1, 1], [], []>} : vector<8x256xf32>, vector<256x16xf32>, vector<8x16xf32> -> vector<8x16xf32>
    %c0_226 = arith.constant 0 : index
    %c0_227 = arith.constant 0 : index
    %198 = vector.load %arg13[%c0_226, %c0_227] : memref<1x16xf32, #tpu.memory_space<vmem>>, vector<1x16xf32>
    %199 = vector.broadcast %198 : vector<1x16xf32> to vector<8x16xf32>
    %200 = arith.addf %197, %199 : vector<8x16xf32>
    %c0_228 = arith.constant 0 : index
    %c0_229 = arith.constant 0 : index
    %c0_230 = arith.constant 0 : index
    %201 = vector.load %arg14[%c0_228, %c0_229, %c0_230] : memref<1x8x16xf32, #tpu.memory_space<vmem>>, vector<1x8x16xf32>
    %202 = vector.shape_cast %201 : vector<1x8x16xf32> to vector<8x16xf32>
    %203 = vector.shape_cast %200 : vector<8x16xf32> to vector<1x8x16xf32>
    tpu.vector_store %arg14[%c0_228, %c0_229, %c0_230], %203 {strides = array<i32>} : memref<1x8x16xf32, #tpu.memory_space<vmem>>, vector<1x8x16xf32>,
    return
  }
  func.func @transform_0(%arg0: i32) -> (i32, i32, i32) {
    %c0_i32 = arith.constant 0 : i32
    %c0_i32_0 = arith.constant 0 : i32
    %c0_i32_1 = arith.constant 0 : i32
    return %arg0, %c0_i32, %c0_i32_0 : i32, i32, i32
  }
  func.func @transform_1(%arg0: i32) -> (i32, i32) {
    %c0_i32 = arith.constant 0 : i32
    %c0_i32_0 = arith.constant 0 : i32
    %c0_i32_1 = arith.constant 0 : i32
    return %c0_i32, %c0_i32_0 : i32, i32
  }
  func.func @transform_2(%arg0: i32) -> (i32, i32) {
    %c0_i32 = arith.constant 0 : i32
    %c0_i32_0 = arith.constant 0 : i32
    %c0_i32_1 = arith.constant 0 : i32
    return %c0_i32, %c0_i32_0 : i32, i32
  }
  func.func @transform_3(%arg0: i32) -> (i32, i32) {
    %c0_i32 = arith.constant 0 : i32
    %c0_i32_0 = arith.constant 0 : i32
    %c0_i32_1 = arith.constant 0 : i32
    return %c0_i32, %c0_i32_0 : i32, i32
  }
  func.func @transform_4(%arg0: i32) -> (i32, i32) {
    %c0_i32 = arith.constant 0 : i32
    %c0_i32_0 = arith.constant 0 : i32
    %c0_i32_1 = arith.constant 0 : i32
    return %c0_i32, %c0_i32_0 : i32, i32
  }
  func.func @transform_5(%arg0: i32) -> (i32, i32) {
    %c0_i32 = arith.constant 0 : i32
    %c0_i32_0 = arith.constant 0 : i32
    %c0_i32_1 = arith.constant 0 : i32
    return %c0_i32, %c0_i32_0 : i32, i32
  }
  func.func @transform_6(%arg0: i32) -> (i32, i32) {
    %c0_i32 = arith.constant 0 : i32
    %c0_i32_0 = arith.constant 0 : i32
    %c0_i32_1 = arith.constant 0 : i32
    return %c0_i32, %c0_i32_0 : i32, i32
  }
  func.func @transform_7(%arg0: i32) -> (i32, i32) {
    %c0_i32 = arith.constant 0 : i32
    %c0_i32_0 = arith.constant 0 : i32
    %c0_i32_1 = arith.constant 0 : i32
    return %c0_i32, %c0_i32_0 : i32, i32
  }
  func.func @transform_8(%arg0: i32) -> (i32, i32) {
    %c0_i32 = arith.constant 0 : i32
    %c0_i32_0 = arith.constant 0 : i32
    %c0_i32_1 = arith.constant 0 : i32
    return %c0_i32, %c0_i32_0 : i32, i32
  }
  func.func @transform_9(%arg0: i32) -> (i32, i32) {
    %c0_i32 = arith.constant 0 : i32
    %c0_i32_0 = arith.constant 0 : i32
    %c0_i32_1 = arith.constant 0 : i32
    return %c0_i32, %c0_i32_0 : i32, i32
  }
  func.func @transform_10(%arg0: i32) -> (i32, i32) {
    %c0_i32 = arith.constant 0 : i32
    %c0_i32_0 = arith.constant 0 : i32
    %c0_i32_1 = arith.constant 0 : i32
    return %c0_i32, %c0_i32_0 : i32, i32
  }
  func.func @transform_11(%arg0: i32) -> (i32, i32) {
    %c0_i32 = arith.constant 0 : i32
    %c0_i32_0 = arith.constant 0 : i32
    %c0_i32_1 = arith.constant 0 : i32
    return %c0_i32, %c0_i32_0 : i32, i32
  }
  func.func @transform_12(%arg0: i32) -> (i32, i32) {
    %c0_i32 = arith.constant 0 : i32
    %c0_i32_0 = arith.constant 0 : i32
    %c0_i32_1 = arith.constant 0 : i32
    return %c0_i32, %c0_i32_0 : i32, i32
  }
  func.func @transform_13(%arg0: i32) -> (i32, i32, i32) {
    %c0_i32 = arith.constant 0 : i32
    %c0_i32_0 = arith.constant 0 : i32
    %c0_i32_1 = arith.constant 0 : i32
    return %arg0, %c0_i32, %c0_i32_0 : i32, i32, i32
  }
}

</mosaic_0001>

<bundles_post_ra>
// kernel: _encoder_forward_impl.1
= control target key start
LH: loop header
LB: loop body
LE: loop exit
PB: predicated region body
PF: predicated region fallthrough
CT: control target
= control target key end

     0   :  { %18 = vsyncpa [#allocation8], 0  ;;  %s5016_s0 = inlined_call_operand.vmem [shape: f32[2,256,128], index: 0, kind: input, shape index: {}]   ;;  %s5017_s1 = inlined_call_operand.vmem [shape: f32[384,128], index: 1, kind: input, shape index: {}]   ;;  %s5018_s2 = inlined_call_operand.vmem [shape: f32[1,128], index: 2, kind: input, shape index: {}]   ;;  %s5019_s3 = inlined_call_operand.vmem [shape: f32[384,128], index: 3, kind: input, shape index: {}]   ;;  %s5020_s4 = inlined_call_operand.vmem [shape: f32[1,128], index: 4, kind: input, shape index: {}]   ;;  %s5021_s5 = inlined_call_operand.vmem [shape: f32[384,128], index: 5, kind: input, shape index: {}]   ;;  %s5022_s6 = inlined_call_operand.vmem [shape: f32[1,128], index: 6, kind: input, shape index: {}]   ;;  %s5023_s7 = inlined_call_operand.vmem [shape: f32[384,128], index: 7, kind: input, shape index: {}]   ;;  %s5024_s8 = inlined_call_operand.vmem [shape: f32[1,128], index: 8, kind: input, shape index: {}]   ;;  %s5025_s9 = inlined_call_operand.vmem [shape: f32[384,64], index: 9, kind: input, shape index: {}]   ;;  %s5026_s10 = inlined_call_operand.vmem [shape: f32[1,64], index: 10, kind: input, shape index: {}]   ;;  %s5027_s11 = inlined_call_operand.vmem [shape: f32[256,16], index: 11, kind: input, shape index: {}]   ;;  %s5028_s12 = inlined_call_operand.vmem [shape: f32[1,16], index: 12, kind: input, shape index: {}]   ;;  %s5029_s13 = inlined_call_operand.hbm [shape: f32[2,8,16], index: 13, kind: output, shape index: {}]  }
   0x1   :  { %20 = vsyncpa [#allocation8 + $0x1], 0  ;;  %s3948_s25 = smov 0   ;;  %s3950_s26 = smov 0  }
   0x2   :  { %s3952_s27 = smov 0   ;;  %s3954_s28 = smov 0  }
   0x3 LB: > { %5034 = sst [smem:[#allocation10_spill]] %s3869_s27  ;;  %s3969_s29 = sadd.s32 4294967295, %s3873_s28   ;;  %s3873_s28 = sphi %s3954_s28, %s5041_s28   ;;  %s3869_s27 = sphi %s3952_s27, %s5043_s27   ;;  %s3865_s26 = sphi %s3950_s26, %s5045_s26   ;;  %s3861_s25 = sphi %s3948_s25, %s5044_s25  }
   0x4   : > { %s2570_s30 = sadd.s32 4294967294, %s3873_s28   ;;  %s3973_s14 = sadd.s32 1, %s3873_s28  }
   0x5   : > { %5035 = sst [smem:[#allocation11_spill]] %s3973_s14  ;;  %s311_s15 = sadd.s32 1, %s3869_s27 }
   0x6   : > { %s308_s16 = ssub.s32 %s3873_s28, %s3973_s14  ;;  %p321_p0 = scmp.ne.s32.totalorder %s3869_s27, %s3865_s26 }
   0x7   : > { %p309_p1 = scmp.eq.s32.totalorder %s308_s16, 0  ;;  %p322_p2 = scmp.eq.s32.totalorder %s3969_s29, 1 }
   0x8   : > { %p327_p3 = scmp.ne.s32.totalorder %s3865_s26, %s3861_s25  ;;  %p328_p4 = scmp.eq.s32.totalorder %s2570_s30, 1 }
   0x9   : > { %s3984_s17 = scalar_select %p309_p1, %s3869_s27, %s311_s15  }
   0xa   : > { %p3986_p5 = por %p322_p2, %p321_p0  ;;  %p3990_p6 = por %p328_p4, %p327_p3 }
   0xb   : > { %5036 = sst [smem:[#allocation12_spill]] %s3984_s17  ;;  %p2573_p7 = scmp.ge.s32.totalorder %s3873_s28, 1 }
   0xc   : > { %s5038_s19 = scalar_select %p3990_p6, 1, 0 }
   0xd   : > { %p390_p8 = scmp.lt.s32.totalorder %s3873_s28, 3 }
   0xe   : > { %5039 = sst [smem:[#allocation13_spill]] %s5038_s19 }
   0xf   : > { %p391_p9 = pnand %p2573_p7, %p390_p8 }
  0x10   : > { %v554_v0 = vld [vmem:[%s5017_s1 + $0x80] sm:$0xff] (!%p391_p9)  ;;  %v555_v1 = vld [vmem:[%s5017_s1 + $0x88] sm:$0xff] (!%p391_p9)  ;;  %p434_p10 = scmp.lt.s32.totalorder (!%p391_p9), %s3969_s29, 1  ;;  %v556_v9 = vld [vmem:[%s5017_s1 + $0x90] sm:$0xff] (!%p391_p9)  ;;  %s3876_s17 = smov (!%p391_p9), 64   ;;  %vm2383_vm0 = vcmask (!%p391_p9), 523264  }
  0x11   : > { %394 = sbr.rel (%p391_p9) target bundleno = 1643 (0x66b), region = 72  ;;  %v538_v2 = vld [vmem:[%s5017_s1] sm:$0xff] (!%p391_p9)  ;;  %v3309_v3 = vpack.c.bf16 (!%p391_p9), %v555_v1, %v554_v0  ;;  %v539_v4 = vld [vmem:[%s5017_s1 + $0x8] sm:$0xff] (!%p391_p9)  ;;  %v557_v10 = vld [vmem:[%s5017_s1 + $0x98] sm:$0xff] (!%p391_p9)  ;;  %s431_s20 = sand.u32 (!%p391_p9), 1, %s3865_s26   ;;  %vm2495_vm1 = vcmask (!%p391_p9), 130048  }
  0x12   : > { %v570_v5 = vld [vmem:[%s5017_s1 + $0x100] sm:$0xff] (!%p391_p9)  ;;  %v571_v6 = vld [vmem:[%s5017_s1 + $0x108] sm:$0xff] (!%p391_p9)  ;;  %v3311_v7 = vpack.c.bf16 (!%p391_p9), %v539_v4, %v538_v2  ;;  %v540_v11 = vld [vmem:[%s5017_s1 + $0x10] sm:$0xff] (!%p391_p9)  ;;  %v3313_v12 = vpack.c.bf16 (!%p391_p9), %v557_v10, %v556_v9  ;;  %s2584_s22 = sshll.u32 (!%p391_p9), %s3969_s29, 7  ;;  %s2498_s16 = scalar_lea.sflag (!%p391_p9), [#allocation8], %s431_s20 }
  0x13   : > { %v3341_v8 = vpack.c.bf16 (!%p391_p9), %v571_v6, %v570_v5  ;;  %3310 = vmatprep.subr.bf16.mxu0 (!%p391_p9), %v3309_v3  ;;  %v541_v13 = vld [vmem:[%s5017_s1 + $0x18] sm:$0xff] (!%p391_p9)  ;;  %v572_v14 = vld [vmem:[%s5017_s1 + $0x110] sm:$0xff] (!%p391_p9)  ;;  %v558_v18 = vld [vmem:[%s5017_s1 + $0xa0] sm:$0xff] (!%p391_p9) }
  0x14   : > { %v573_v15 = vld [vmem:[%s5017_s1 + $0x118] sm:$0xff] (!%p391_p9)  ;;  %3312 = vmatpush3.bf16.msra.mxu0 (!%p391_p9), %v3311_v7  ;;  %v3315_v16 = vpack.c.bf16 (!%p391_p9), %v541_v13, %v540_v11  ;;  %v559_v19 = vld [vmem:[%s5017_s1 + $0xa8] sm:$0xff] (!%p391_p9)  ;;  %v542_v20 = vld [vmem:[%s5017_s1 + $0x20] sm:$0xff] (!%p391_p9) }
  0x15   : > { %3342 = vmatprep.subr.bf16.mxu1 (!%p391_p9), %v3341_v8  ;;  %v3345_v17 = vpack.c.bf16 (!%p391_p9), %v573_v15, %v572_v14  ;;  %3314 = vmatprep.subr.bf16.mxu0 (!%p391_p9), %v3313_v12  ;;  %v3317_v21 = vpack.c.bf16 (!%p391_p9), %v559_v19, %v558_v18  ;;  %v543_v22 = vld [vmem:[%s5017_s1 + $0x28] sm:$0xff] (!%p391_p9)  ;;  %v574_v23 = vld [vmem:[%s5017_s1 + $0x120] sm:$0xff] (!%p391_p9)  ;;  %v560_v26 = vld [vmem:[%s5017_s1 + $0xb0] sm:$0xff] (!%p391_p9) }
  0x16   : > { %3344 = vmatpush3.bf16.msra.mxu1 (!%p391_p9), %v3341_v8  ;;  %v575_v24 = vld [vmem:[%s5017_s1 + $0x128] sm:$0xff] (!%p391_p9)  ;;  %v561_v27 = vld [vmem:[%s5017_s1 + $0xb8] sm:$0xff] (!%p391_p9)  ;;  %v576_v28 = vld [vmem:[%s5017_s1 + $0x130] sm:$0xff] (!%p391_p9)  ;;  %v3319_v30 = vpack.c.bf16 (!%p391_p9), %v543_v22, %v542_v20 }
  0x17   : > { %3346 = vmatprep.subr.bf16.mxu1 (!%p391_p9), %v3345_v17  ;;  %v3349_v25 = vpack.c.bf16 (!%p391_p9), %v575_v24, %v574_v23  ;;  %v577_v29 = vld [vmem:[%s5017_s1 + $0x138] sm:$0xff] (!%p391_p9)  ;;  %v3321_v31 = vpack.c.bf16 (!%p391_p9), %v561_v27, %v560_v26  ;;  %v544_v32 = vld [vmem:[%s5017_s1 + $0x30] sm:$0xff] (!%p391_p9)  ;;  %v562_v35 = vld [vmem:[%s5017_s1 + $0xc0] sm:$0xff] (!%p391_p9)  ;;  %v3875_v27 = vmov (!%p391_p9), 0.0  }
  0x18   : > { %s435_s15 = scalar_select %p434_p10, %s3969_s29, 1  ;;  %3316 = vmatpush3.bf16.msra.mxu0 %v3315_v16  ;;  %v545_v33 = vld [vmem:[%s5017_s1 + $0x38] sm:$0xff]  ;;  %v3353_v34 = vpack.c.bf16 %v577_v29, %v576_v28  ;;  %v563_v36 = vld [vmem:[%s5017_s1 + $0xc8] sm:$0xff]  ;;  %v578_v37 = vld [vmem:[%s5017_s1 + $0x140] sm:$0xff] }
  0x19   : > { %3318 = vmatprep.subr.bf16.mxu0 %v3317_v21  ;;  %v579_v38 = vld [vmem:[%s5017_s1 + $0x148] sm:$0xff]  ;;  %v3323_v39 = vpack.c.bf16 %v545_v33, %v544_v32  ;;  %v3325_v40 = vpack.c.bf16 %v563_v36, %v562_v35  ;;  %v546_v41 = vld [vmem:[%s5017_s1 + $0x40] sm:$0xff]  ;;  %v564_v44 = vld [vmem:[%s5017_s1 + $0xd0] sm:$0xff]  ;;  %s3877_s29 = smov [#allocation7]  }
  0x1a   : > { %3348 = vmatpush3.bf16.msra.mxu1 %v3345_v17  ;;  %s2587_s27 = sshll.u32 %s435_s15, 8  ;;  %v547_v42 = vld [vmem:[%s5017_s1 + $0x48] sm:$0xff]  ;;  %v3357_v43 = vpack.c.bf16 %v579_v38, %v578_v37  ;;  %v565_v45 = vld [vmem:[%s5017_s1 + $0xd8] sm:$0xff]  ;;  %v580_v46 = vld [vmem:[%s5017_s1 + $0x150] sm:$0xff]  ;;  %s4974_s15 = scalar_lea.hbm %s5029_s13, %s2584_s22 }
  0x1b   : > { %3350 = vmatprep.subr.bf16.mxu1 %v3349_v25  ;;  %s4087_s14 = scalar_lea.vmem %s5016_s0, %s2587_s27  ;;  %v581_v47 = vld [vmem:[%s5017_s1 + $0x158] sm:$0xff]  ;;  %v3327_v49 = vpack.c.bf16 %v547_v42, %v546_v41  ;;  %v3329_v51 = vpack.c.bf16 %v565_v45, %v564_v44  ;;  %v548_v52 = vld [vmem:[%s5017_s1 + $0x50] sm:$0xff]  ;;  %v566_v55 = vld [vmem:[%s5017_s1 + $0xe0] sm:$0xff] }
  0x1c   : > { %3320 = vmatpush3.bf16.msra.mxu0 %v3319_v30  ;;  %v439_v48 = vld [vmem:[%s4087_s14] sm:$0xff]  ;;  %v4109_v50 = vld [vmem:[%s4087_s14 + $0x8] sm:$0xff]  ;;  %v549_v53 = vld [vmem:[%s5017_s1 + $0x58] sm:$0xff]  ;;  %v3361_v54 = vpack.c.bf16 %v581_v47, %v580_v46 }
  0x1d   : > { %3322 = vmatprep.subr.bf16.mxu0 %v3321_v31  ;;  %657 = vmatprep.mubr.f32.mxu0 %v439_v48  ;;  %v567_v56 = vld [vmem:[%s5017_s1 + $0xe8] sm:$0xff]  ;;  %v582_v57 = vld [vmem:[%s5017_s1 + $0x160] sm:$0xff]  ;;  %v3331_v59 = vpack.c.bf16 %v549_v53, %v548_v52  ;;  %v568_v0 = vld [vmem:[%s5017_s1 + $0xf0] sm:$0xff] }
  0x1e   : > { %3352 = vmatpush3.bf16.msra.mxu1 %v3349_v25  ;;  %3103 = vmatprep.mubr.f32.mxu1 %v4109_v50  ;;  %v583_v58 = vld [vmem:[%s5017_s1 + $0x168] sm:$0xff]  ;;  %v3333_v60 = vpack.c.bf16 %v567_v56, %v566_v55  ;;  %v550_v61 = vld [vmem:[%s5017_s1 + $0x60] sm:$0xff]  ;;  %v569_v1 = vld [vmem:[%s5017_s1 + $0xf8] sm:$0xff] }
  0x1f   : > { %3354 = vmatprep.subr.bf16.mxu1 %v3353_v34  ;;  %v551_v62 = vld [vmem:[%s5017_s1 + $0x68] sm:$0xff]  ;;  %v3365_v63 = vpack.c.bf16 %v583_v58, %v582_v57  ;;  %v584_v2 = vld [vmem:[%s5017_s1 + $0x170] sm:$0xff]  ;;  %v585_v3 = vld [vmem:[%s5017_s1 + $0x178] sm:$0xff]  ;;  %v3337_v5 = vpack.c.bf16 %v569_v1, %v568_v0 }
  0x20   : > { %3324 = vmatpush3.bf16.msra.mxu0 %v3323_v39  ;;  %v3335_v4 = vpack.c.bf16 %v551_v62, %v550_v61  ;;  %v552_v6 = vld [vmem:[%s5017_s1 + $0x70] sm:$0xff]  ;;  %v553_v7 = vld [vmem:[%s5017_s1 + $0x78] sm:$0xff]  ;;  %v3369_v8 = vpack.c.bf16 %v585_v3, %v584_v2  ;;  %v1030_v9 = vld [vmem:[%s5019_s3 + $0x80] sm:$0xff] }
  0x21   : > { %3326 = vmatprep.subr.bf16.mxu0 %v3325_v40  ;;  %v1031_v10 = vld [vmem:[%s5019_s3 + $0x88] sm:$0xff]  ;;  %v3339_v11 = vpack.c.bf16 %v553_v7, %v552_v6  ;;  %v1046_v12 = vld [vmem:[%s5019_s3 + $0x100] sm:$0xff]  ;;  %v1032_v18 = vld [vmem:[%s5019_s3 + $0x90] sm:$0xff] }
  0x22   : > { %3356 = vmatpush3.bf16.msra.mxu1 %v3353_v34  ;;  %v1047_v13 = vld [vmem:[%s5019_s3 + $0x108] sm:$0xff]  ;;  %v3373_v15 = vpack.c.bf16 %v1031_v10, %v1030_v9  ;;  %v1014_v16 = vld [vmem:[%s5019_s3] sm:$0xff]  ;;  %v1033_v19 = vld [vmem:[%s5019_s3 + $0x98] sm:$0xff] }
  0x23   : > { %3358 = vmatprep.subr.bf16.mxu1 %v3357_v43  ;;  %v3405_v14 = vpack.c.bf16 %v1047_v13, %v1046_v12  ;;  %v1015_v17 = vld [vmem:[%s5019_s3 + $0x8] sm:$0xff]  ;;  %v441_v20 = vld [vmem:[%s4087_s14 + $0x10] sm:$0xff]  ;;  %v442_v21 = vld [vmem:[%s4087_s14 + $0x18] sm:$0xff]  ;;  %v3377_v24 = vpack.c.bf16 %v1033_v19, %v1032_v18 }
  0x24   : > { %3328 = vmatpush3.bf16.msra.mxu0 %v3327_v49  ;;  %v3375_v22 = vpack.c.bf16 %v1015_v17, %v1014_v16  ;;  %v444_v23 = vld [vmem:[%s4087_s14 + $0x28] sm:$0xff]  ;;  %v1016_v25 = vld [vmem:[%s5019_s3 + $0x10] sm:$0xff]  ;;  %v1017_v26 = vld [vmem:[%s5019_s3 + $0x18] sm:$0xff] }
  0x25   : > { %3330 = vmatprep.subr.bf16.mxu0 %v3329_v51  ;;  %v443_v28 = vld [vmem:[%s4087_s14 + $0x20] sm:$0xff]  ;;  %v446_v29 = vld [vmem:[%s4087_s14 + $0x38] sm:$0xff]  ;;  %v3379_v30 = vpack.c.bf16 %v1017_v26, %v1016_v25  ;;  %v448_v31 = vld [vmem:[%s4087_s14 + $0x48] sm:$0xff] }
  0x26   : > { %3360 = vmatpush3.bf16.msra.mxu1 %v3357_v43  ;;  %v445_v32 = vld [vmem:[%s4087_s14 + $0x30] sm:$0xff]  ;;  %v450_v33 = vld [vmem:[%s4087_s14 + $0x58] sm:$0xff]  ;;  %v452_v34 = vld [vmem:[%s4087_s14 + $0x68] sm:$0xff] }
  0x27   : > { %3362 = vmatprep.subr.bf16.mxu1 %v3361_v54  ;;  %v447_v35 = vld [vmem:[%s4087_s14 + $0x40] sm:$0xff]  ;;  %v454_v36 = vld [vmem:[%s4087_s14 + $0x78] sm:$0xff]  ;;  %v456_v37 = vld [vmem:[%s4087_s14 + $0x88] sm:$0xff] }
  0x28   : > { %3332 = vmatpush3.bf16.msra.mxu0 %v3331_v59  ;;  %v449_v38 = vld [vmem:[%s4087_s14 + $0x50] sm:$0xff]  ;;  %v458_v39 = vld [vmem:[%s4087_s14 + $0x98] sm:$0xff]  ;;  %v460_v40 = vld [vmem:[%s4087_s14 + $0xa8] sm:$0xff] }
  0x29   : > { %3334 = vmatprep.subr.bf16.mxu0 %v3333_v60  ;;  %v451_v41 = vld [vmem:[%s4087_s14 + $0x60] sm:$0xff]  ;;  %v462_v42 = vld [vmem:[%s4087_s14 + $0xb8] sm:$0xff]  ;;  %v464_v43 = vld [vmem:[%s4087_s14 + $0xc8] sm:$0xff] }
  0x2a   : > { %3364 = vmatpush3.bf16.msra.mxu1 %v3361_v54  ;;  %v453_v44 = vld [vmem:[%s4087_s14 + $0x70] sm:$0xff]  ;;  %v466_v45 = vld [vmem:[%s4087_s14 + $0xd8] sm:$0xff]  ;;  %v468_v46 = vld [vmem:[%s4087_s14 + $0xe8] sm:$0xff] }
  0x2b   : > { %3366 = vmatprep.subr.bf16.mxu1 %v3365_v63  ;;  %v455_v47 = vld [vmem:[%s4087_s14 + $0x80] sm:$0xff]  ;;  %v470_v48 = vld [vmem:[%s4087_s14 + $0xf8] sm:$0xff]  ;;  %v457_v49 = vld [vmem:[%s4087_s14 + $0x90] sm:$0xff] }
  0x2c   : > { %3336 = vmatpush3.bf16.msra.mxu0 %v3335_v4  ;;  %v461_v51 = vld [vmem:[%s4087_s14 + $0xb0] sm:$0xff]  ;;  %v463_v52 = vld [vmem:[%s4087_s14 + $0xc0] sm:$0xff]  ;;  %v1035_v57 = vld [vmem:[%s5019_s3 + $0xa8] sm:$0xff] }
  0x2d   : > { %3338 = vmatprep.subr.bf16.mxu0 %v3337_v5  ;;  %v465_v53 = vld [vmem:[%s4087_s14 + $0xd0] sm:$0xff]  ;;  %v467_v54 = vld [vmem:[%s4087_s14 + $0xe0] sm:$0xff]  ;;  %v1019_v60 = vld [vmem:[%s5019_s3 + $0x28] sm:$0xff] }
  0x2e   : > { %3368 = vmatpush3.bf16.msra.mxu1 %v3365_v63  ;;  %v469_v55 = vld [vmem:[%s4087_s14 + $0xf0] sm:$0xff]  ;;  %v1034_v56 = vld [vmem:[%s5019_s3 + $0xa0] sm:$0xff]  ;;  %v1049_v63 = vld [vmem:[%s5019_s3 + $0x118] sm:$0xff] }
  0x2f   : > { %3370 = vmatprep.subr.bf16.mxu1 %v3369_v8  ;;  %v3381_v58 = vpack.c.bf16 %v1035_v57, %v1034_v56  ;;  %v1018_v59 = vld [vmem:[%s5019_s3 + $0x20] sm:$0xff]  ;;  %v1048_v62 = vld [vmem:[%s5019_s3 + $0x110] sm:$0xff]  ;;  %v1037_v2 = vld [vmem:[%s5019_s3 + $0xb8] sm:$0xff] }
  0x30   : > { %3340 = vmatpush3.bf16.msra.mxu0 %v3339_v11  ;;  %v3383_v61 = vpack.c.bf16 %v1019_v60, %v1018_v59  ;;  %v3409_v0 = vpack.c.bf16 %v1049_v63, %v1048_v62  ;;  %v1036_v1 = vld [vmem:[%s5019_s3 + $0xb0] sm:$0xff]  ;;  %v1021_v5 = vld [vmem:[%s5019_s3 + $0x38] sm:$0xff]  ;;  %v1050_v7 = vld [vmem:[%s5019_s3 + $0x120] sm:$0xff] }
  0x31   : > { %3406 = vmatprep.subr.bf16.mxu0 %v3405_v14  ;;  %v3385_v3 = vpack.c.bf16 %v1037_v2, %v1036_v1  ;;  %v1020_v4 = vld [vmem:[%s5019_s3 + $0x30] sm:$0xff]  ;;  %v1038_v9 = vld [vmem:[%s5019_s3 + $0xc0] sm:$0xff]  ;;  %v1039_v10 = vld [vmem:[%s5019_s3 + $0xc8] sm:$0xff] }
  0x32   : > { %3372 = vmatpush3.bf16.msra.mxu1 %v3369_v8  ;;  %v3387_v6 = vpack.c.bf16 %v1021_v5, %v1020_v4  ;;  %v1051_v8 = vld [vmem:[%s5019_s3 + $0x128] sm:$0xff]  ;;  %v3389_v12 = vpack.c.bf16 %v1039_v10, %v1038_v9  ;;  %v1022_v13 = vld [vmem:[%s5019_s3 + $0x40] sm:$0xff]  ;;  %v1052_v16 = vld [vmem:[%s5019_s3 + $0x130] sm:$0xff] }
  0x33   : > { %3374 = vmatprep.subr.bf16.mxu1 %v3373_v15  ;;  %658 = vmatmul.mubr.f32.vlgmr.msra.gmra.mrb[0].mxu0 %v3875_v27  ;;  %v3413_v11 = vpack.c.bf16 %v1051_v8, %v1050_v7  ;;  %v1053_v17 = vld [vmem:[%s5019_s3 + $0x138] sm:$0xff]  ;;  %v1040_v18 = vld [vmem:[%s5019_s3 + $0xd0] sm:$0xff]  ;;  %v1054_v25 = vld [vmem:[%s5019_s3 + $0x140] sm:$0xff] }
  0x34   : > { %662 = vmatprep.mubr.f32.mxu0 %v441_v20  ;;  %3408 = vmatpush3.bf16.msra.mxu0 %v3405_v14  ;;  %v1023_v14 = vld [vmem:[%s5019_s3 + $0x48] sm:$0xff]  ;;  %v1041_v19 = vld [vmem:[%s5019_s3 + $0xd8] sm:$0xff]  ;;  %v3417_v20 = vpack.c.bf16 %v1053_v17, %v1052_v16  ;;  %v4342_v56 = vld [vmem:[%s5018_s2] ss:$0 sm:$0xff] }
  0x35   : > { %3104 = vmatmul.mubr.f32.vlgmr.msra.gmra.mrb[0].mxu1 %v442_v21  ;;  %3410 = vmatprep.subr.bf16.mxu0 %v3409_v0  ;;  %v3391_v15 = vpack.c.bf16 %v1023_v14, %v1022_v13  ;;  %v1055_v26 = vld [vmem:[%s5019_s3 + $0x148] sm:$0xff] }
  0x36   : > { %3106 = vmatprep.mubr.f32.mxu1 %v444_v23  ;;  %3376 = vmatpush3.bf16.msra.mxu1 %v3375_v22  ;;  %v1024_v22 = vld [vmem:[%s5019_s3 + $0x50] sm:$0xff] }
  0x37   : > { %3378 = vmatprep.subr.bf16.mxu1 %v3377_v24  ;;  %663 = vmatmul.mubr.f32.gmra.mrb[2].mxu0 %v4109_v50  ;;  %v459_v50 = vld [vmem:[%s4087_s14 + $0xa0] sm:$0xff]  ;;  %s2574_s14 = sshll.u32 %s431_s20, 3 }
  0x38   : > { %667 = vmatprep.mubr.f32.mxu0 %v443_v28  ;;  %3412 = vmatpush3.bf16.msra.mxu0 %v3409_v0  ;;  %v1042_v28 = vld [vmem:[%s5019_s3 + $0xe0] sm:$0xff]  ;;  %s433_s23 = scalar_lea.vmem [#allocation7], %s2574_s14  ;;  %s3815_s14 = sshll.u32 %s3877_s29, 4  ;;  %s3816_s14 = int_to_ptr.vmem [resolvable:$false] %s3815_s14 }
  0x39   : > { %3107 = vmatmul.mubr.f32.gmra.mrb[2].mxu1 %v446_v29  ;;  %3414 = vmatprep.subr.bf16.mxu0 %v3413_v11  ;;  %s2511_s27 = sshll.u32 %s433_s23, 4  ;;  %s3817_s19 = scalar_lea.vmem %s3816_s14, 256  ;;  %s4976_s27 = int_to_ptr.vmem [resolvable:$true] %s2511_s27 }
  0x3a   : > { %3109 = vmatprep.mubr.f32.mxu1 %v448_v31  ;;  %3380 = vmatpush3.bf16.msra.mxu1 %v3379_v30  ;;  %v3421_v30 = vpack.c.bf16 %v1055_v26, %v1054_v25  ;;  %p3818_p0 = scmp.lt.s32.totalorder %s4976_s27, %s3816_s14 }
  0x3b   : > { %668 = vmatmul.mubr.f32.gmra.mrb[4].mxu0 %v442_v21  ;;  %3382 = vmatprep.subr.bf16.mxu1 %v3381_v58  ;;  %v3393_v21 = vpack.c.bf16 %v1041_v19, %v1040_v18 }
  0x3c   : > { %672 = vmatprep.mubr.f32.mxu0 %v445_v32  ;;  %3416 = vmatpush3.bf16.msra.mxu0 %v3413_v11  ;;  %v1026_v32 = vld [vmem:[%s5019_s3 + $0x60] sm:$0xff] }
  0x3d   : > { %3110 = vmatmul.mubr.f32.gmra.mrb[4].mxu1 %v450_v33  ;;  %3418 = vmatprep.subr.bf16.mxu0 %v3417_v20 }
  0x3e   : > { %3112 = vmatprep.mubr.f32.mxu1 %v452_v34  ;;  %3384 = vmatpush3.bf16.msra.mxu1 %v3383_v61 }
  0x3f   : > { %673 = vmatmul.mubr.f32.gmra.mrb[6].mxu0 %v444_v23  ;;  %3386 = vmatprep.subr.bf16.mxu1 %v3385_v3  ;;  %v1025_v23 = vld [vmem:[%s5019_s3 + $0x58] sm:$0xff] }
  0x40   : > { %677 = vmatprep.mubr.f32.mxu0 %v447_v35  ;;  %v3395_v24 = vpack.c.bf16 %v1025_v23, %v1024_v22  ;;  %3420 = vmatpush3.bf16.msra.mxu0 %v3417_v20  ;;  %v1056_v35 = vld [vmem:[%s5019_s3 + $0x150] sm:$0xff] }
  0x41   : > { %3113 = vmatmul.mubr.f32.gmra.mrb[6].mxu1 %v454_v36  ;;  %3422 = vmatprep.subr.bf16.mxu0 %v3421_v30 }
  0x42   : > { %3115 = vmatprep.mubr.f32.mxu1 %v456_v37  ;;  %3388 = vmatpush3.bf16.msra.mxu1 %v3387_v6 }
  0x43   : > { %678 = vmatmul.mubr.f32.gmra.mrb[8].mxu0 %v446_v29  ;;  %3390 = vmatprep.subr.bf16.mxu1 %v3389_v12  ;;  %v1043_v29 = vld [vmem:[%s5019_s3 + $0xe8] sm:$0xff] }
  0x44   : > { %682 = vmatprep.mubr.f32.mxu0 %v449_v38  ;;  %3424 = vmatpush3.bf16.msra.mxu0 %v3421_v30  ;;  %v1045_v38 = vld [vmem:[%s5019_s3 + $0xf8] sm:$0xff] }
  0x45   : > { %3116 = vmatmul.mubr.f32.gmra.mrb[8].mxu1 %v458_v39 }
  0x46   : > { %3118 = vmatprep.mubr.f32.mxu1 %v460_v40  ;;  %3392 = vmatpush3.bf16.msra.mxu1 %v3391_v15 }
  0x47   : > { %683 = vmatmul.mubr.f32.gmra.mrb[10].mxu0 %v448_v31  ;;  %3394 = vmatprep.subr.bf16.mxu1 %v3393_v21  ;;  %v3397_v31 = vpack.c.bf16 %v1043_v29, %v1042_v28 }
  0x48   : > { %687 = vmatprep.mubr.f32.mxu0 %v451_v41  ;;  %v1028_v41 = vld [vmem:[%s5019_s3 + $0x70] sm:$0xff] }
  0x49   : > { %3119 = vmatmul.mubr.f32.gmra.mrb[10].mxu1 %v462_v42 }
  0x4a   : > { %3121 = vmatprep.mubr.f32.mxu1 %v464_v43  ;;  %3396 = vmatpush3.bf16.msra.mxu1 %v3395_v24 }
  0x4b   : > { %688 = vmatmul.mubr.f32.gmra.mrb[12].mxu0 %v450_v33  ;;  %v1027_v33 = vld [vmem:[%s5019_s3 + $0x68] sm:$0xff]  ;;  %3398 = vmatprep.subr.bf16.mxu1 %v3397_v31 }
  0x4c   : > { %692 = vmatprep.mubr.f32.mxu0 %v453_v44  ;;  %v1058_v44 = vld [vmem:[%s5019_s3 + $0x160] sm:$0xff] }
  0x4d   : > { %3122 = vmatmul.mubr.f32.gmra.mrb[12].mxu1 %v466_v45 }
  0x4e   : > { %3124 = vmatprep.mubr.f32.mxu1 %v468_v46 }
  0x4f   : > { %693 = vmatmul.mubr.f32.gmra.mrb[14].mxu0 %v452_v34  ;;  %v3399_v34 = vpack.c.bf16 %v1027_v33, %v1026_v32 }
  0x50   : > { %697 = vmatprep.mubr.f32.mxu0 %v455_v47  ;;  %v1060_v47 = vld [vmem:[%s5019_s3 + $0x170] sm:$0xff] }
  0x51   : > { %3125 = vmatmul.mubr.f32.gmra.mrb[14].mxu1 %v470_v48  ;;  %v1061_v48 = vld [vmem:[%s5019_s3 + $0x178] sm:$0xff] }
  0x52   : > { %3400 = vmatpush3.bf16.msra.mxu1 %v3399_v34 }
  0x53   : > { %698 = vmatmul.mubr.f32.gmra.mrb[16].mxu0 %v454_v36  ;;  %v1057_v36 = vld [vmem:[%s5019_s3 + $0x158] sm:$0xff] }
  0x54   : > { %702 = vmatprep.mubr.f32.mxu0 %v457_v49  ;;  %v3433_v49 = vpack.c.bf16 %v1061_v48, %v1060_v47 }
  0x57   : > { %703 = vmatmul.mubr.f32.gmra.mrb[18].mxu0 %v456_v37  ;;  %v1044_v37 = vld [vmem:[%s5019_s3 + $0xf0] sm:$0xff] }
  0x58   : > { %707 = vmatprep.mubr.f32.mxu0 %v459_v50  ;;  %v1506_v50 = vld [vmem:[%s5021_s5 + $0x100] sm:$0xff] }
  0x5b   : > { %708 = vmatmul.mubr.f32.gmra.mrb[20].mxu0 %v458_v39  ;;  %v3425_v39 = vpack.c.bf16 %v1057_v36, %v1056_v35 }
  0x5c   : > { %712 = vmatprep.mubr.f32.mxu0 %v461_v51  ;;  %v1507_v51 = vld [vmem:[%s5021_s5 + $0x108] sm:$0xff] }
  0x5d   : > { %3426 = vmatprep.subr.bf16.mxu0 %v3425_v39 }
  0x5e   : > { %3428 = vmatpush3.bf16.msra.mxu0 %v3425_v39 }
  0x5f   : > { %713 = vmatmul.mubr.f32.gmra.mrb[22].mxu0 %v460_v40  ;;  %v3401_v40 = vpack.c.bf16 %v1045_v38, %v1044_v37 }
  0x60   : > { %717 = vmatprep.mubr.f32.mxu0 %v463_v52  ;;  %v4336_v52 = vpack.c.bf16 %v1507_v51, %v1506_v50 }
  0x61   : > { %3402 = vmatprep.subr.bf16.mxu1 %v3401_v40 }
  0x63   : > { %718 = vmatmul.mubr.f32.gmra.mrb[24].mxu0 %v462_v42  ;;  %v1029_v42 = vld [vmem:[%s5019_s3 + $0x78] sm:$0xff] }
  0x64   : > { %722 = vmatprep.mubr.f32.mxu0 %v465_v53 }
  0x67   : > { %723 = vmatmul.mubr.f32.gmra.mrb[26].mxu0 %v464_v43  ;;  %v3403_v43 = vpack.c.bf16 %v1029_v42, %v1028_v41 }
  0x68   : > { %727 = vmatprep.mubr.f32.mxu0 %v467_v54 }
  0x69   : > { %3404 = vmatpush3.bf16.msra.mxu1 %v3403_v43 }
  0x6a   : > { %3470 = vmatprep.subr.bf16.mxu1 %v4336_v52 }
  0x6b   : > { %728 = vmatmul.mubr.f32.gmra.mrb[28].mxu0 %v466_v45  ;;  %v1059_v45 = vld [vmem:[%s5019_s3 + $0x168] sm:$0xff] }
  0x6c   : > { %732 = vmatprep.mubr.f32.mxu0 %v469_v55 }
  0x6f   : > { %733 = vmatmul.mubr.f32.gmra.mrb[30].mxu0 %v468_v46  ;;  %v3429_v46 = vpack.c.bf16 %v1059_v45, %v1058_v44 }
  0x71   : > { %3430 = vmatprep.subr.bf16.mxu0 %v3429_v46 }
  0x72   : > { %3432 = vmatpush3.bf16.msra.mxu0 %v3429_v46 }
  0x73   : > { %3434 = vmatprep.subr.bf16.mxu0 %v3433_v49 }
  0x76   : > { %3436 = vmatpush3.bf16.msra.mxu0 %v3433_v49 }
 0x106   : > { %v2620_v53 = vpop.f32.mrb[0].mxu0 }
 0x107   : > { %v2621_v54 = vpop.f32.mrb[1].mxu0 }
 0x108   : > { %v3105_v55 = vpop.f32.mrb[0].mxu1  ;;  %v2622_v57 = vadd.f32 %v2621_v54, %v2620_v53 }
 0x109   : > { %v804_v58 = vpop.f32.mrb[1].mxu1 }
 0x10a   : > { %v2623_v59 = vpop.f32.mrb[2].mxu0  ;;  %v660_v60 = vadd.f32 %v2622_v57, %v4342_v56 }
 0x10b   : > { %v2624_v61 = vpop.f32.mrb[3].mxu0 }
 0x10c   : > { %v3108_v62 = vpop.f32.mrb[2].mxu1  ;;  %v805_v63 = vadd.f32 %v804_v58, %v660_v60  ;;  %v2625_v0 = vadd.f32 %v2624_v61, %v2623_v59 }
 0x10d   : > { %v814_v1 = vpop.f32.mrb[3].mxu1 }
 0x10e   : > { %v899_v2 = vmul.f32 0.70710677, %v805_v63  ;;  %v665_v3 = vadd.f32 %v2625_v0, %v4342_v56  ;;  %v2626_v4 = vpop.f32.mrb[4].mxu0  ;;  %v883_v31 = vmul.f32 0.5, %v805_v63 }
 0x10f   : > { %v2627_v5 = vpop.f32.mrb[5].mxu0 }
 0x110   : > { %v3111_v6 = vpop.f32.mrb[4].mxu1  ;;  %3707 = verf.f32 %v899_v2  ;;  %v810_v7 = vadd.f32 %v3105_v55, %v665_v3  ;;  %v2628_v8 = vadd.f32 %v2627_v5, %v2626_v4 }
 0x111   : > { %v824_v9 = vpop.f32.mrb[5].mxu1 }
 0x112   : > { %v900_v10 = vmul.f32 0.70710677, %v810_v7  ;;  %v2629_v11 = vpop.f32.mrb[6].mxu0  ;;  %v670_v12 = vadd.f32 %v2628_v8, %v4342_v56  ;;  %v884_v44 = vmul.f32 0.5, %v810_v7 }
 0x113   : > { %v2630_v13 = vpop.f32.mrb[7].mxu0 }
 0x114   : > { %v4347_v14 = vpop.f32.mrb[6].mxu1  ;;  %3709 = verf.f32 %v900_v10  ;;  %v815_v15 = vadd.f32 %v814_v1, %v670_v12  ;;  %v2631_v16 = vadd.f32 %v2630_v13, %v2629_v11 }
 0x115   : > { %v834_v17 = vpop.f32.mrb[7].mxu1 }
 0x116   : > { %v901_v18 = vmul.f32 0.70710677, %v815_v15  ;;  %v675_v19 = vadd.f32 %v2631_v16, %v4342_v56  ;;  %v2632_v20 = vpop.f32.mrb[8].mxu0  ;;  %v885_v57 = vmul.f32 0.5, %v815_v15 }
 0x117   : > { %v2633_v21 = vpop.f32.mrb[9].mxu0 }
 0x118   : > { %v4350_v22 = vpop.f32.mrb[8].mxu1  ;;  %3711 = verf.f32 %v901_v18  ;;  %v820_v23 = vadd.f32 %v3108_v62, %v675_v19  ;;  %v2634_v24 = vadd.f32 %v2633_v21, %v2632_v20 }
 0x119   : > { %v4352_v25 = vpop.f32.mrb[9].mxu1 }
 0x11a   : > { %v3708_v26 = vpop.eup %3707  ;;  %v902_v28 = vmul.f32 0.70710677, %v820_v23  ;;  %v2635_v29 = vpop.f32.mrb[10].mxu0  ;;  %v680_v30 = vadd.f32 %v2634_v24, %v4342_v56  ;;  %v886_v5 = vmul.f32 0.5, %v820_v23 }
 0x11b   : > { %v931_v32 = vadd.f32 1.0, %v3708_v26  ;;  %v2636_v33 = vpop.f32.mrb[11].mxu0 }
 0x11c   : > { %v4355_v34 = vpop.f32.mrb[10].mxu1  ;;  %3713 = verf.f32 %v902_v28  ;;  %v825_v35 = vadd.f32 %v824_v9, %v680_v30  ;;  %v2637_v36 = vadd.f32 %v2636_v33, %v2635_v29 }
 0x11d   : > { %v4357_v37 = vpop.f32.mrb[11].mxu1  ;;  %v947_v38 = vmul.f32 %v931_v32, %v883_v31 }
 0x11e   : > { %v3710_v39 = vpop.eup %3709  ;;  %v903_v40 = vmul.f32 0.70710677, %v825_v35  ;;  %v685_v41 = vadd.f32 %v2637_v36, %v4342_v56  ;;  %v2638_v42 = vpop.f32.mrb[12].mxu0  ;;  %v887_v15 = vmul.f32 0.5, %v825_v35 }
 0x11f   : > { %v2639_v43 = vpop.f32.mrb[13].mxu0  ;;  %1133 = vmatprep.mubr.f32.mxu1 %v947_v38  ;;  %v932_v45 = vadd.f32 1.0, %v3710_v39 }
 0x120   : > { %v4360_v46 = vpop.f32.mrb[12].mxu1  ;;  %3715 = verf.f32 %v903_v40  ;;  %v830_v47 = vadd.f32 %v3111_v6, %v685_v41  ;;  %v2640_v48 = vadd.f32 %v2639_v43, %v2638_v42  ;;  %1134 = vmatmul.mubr.f32.vlgmr.msra.gmra.mrb[16].mxu1 %v3875_v27 }
 0x121   : > { %v4363_v49 = vpop.f32.mrb[13].mxu1  ;;  %v948_v50 = vmul.f32 %v932_v45, %v884_v44  ;;  %3472 = vmatpush3.bf16.msra.mxu1 %v4336_v52 }
 0x122   : > { %v3712_v51 = vpop.eup %3711  ;;  %v904_v53 = vmul.f32 0.70710677, %v830_v47  ;;  %v2641_v54 = vpop.f32.mrb[14].mxu0  ;;  %v690_v55 = vadd.f32 %v2640_v48, %v4342_v56  ;;  %v888_v28 = vmul.f32 0.5, %v830_v47 }
 0x123   : > { %v933_v58 = vadd.f32 1.0, %v3712_v51  ;;  %v2642_v59 = vpop.f32.mrb[15].mxu0  ;;  %1138 = vmatprep.mubr.f32.mxu1 %v948_v50  ;;  %3159 = vmatprep.mubr.f32.mxu0 %v948_v50 }
 0x124   : > { %v4367_v60 = vpop.f32.mrb[14].mxu1  ;;  %3717 = verf.f32 %v904_v53  ;;  %v835_v61 = vadd.f32 %v834_v17, %v690_v55  ;;  %v2643_v62 = vadd.f32 %v2642_v59, %v2641_v54  ;;  %1139 = vmatmul.mubr.f32.gmra.mrb[18].mxu1 %v947_v38 }
 0x125   : > { %v4369_v63 = vpop.f32.mrb[15].mxu1  ;;  %v949_v0 = vmul.f32 %v933_v58, %v885_v57 }
 0x126   : > { %v3714_v52 = vpop.eup %3713  ;;  %v905_v1 = vmul.f32 0.70710677, %v835_v61  ;;  %v695_v2 = vadd.f32 %v2643_v62, %v4342_v56  ;;  %v2644_v3 = vpop.f32.mrb[16].mxu0  ;;  %v889_v38 = vmul.f32 0.5, %v835_v61 }
 0x127   : > { %v2645_v4 = vpop.f32.mrb[17].mxu0  ;;  %1143 = vmatprep.mubr.f32.mxu1 %v949_v0  ;;  %3160 = vmatmul.mubr.f32.vlgmr.msra.gmra.mrb[32].mxu0 %v949_v0  ;;  %v934_v6 = vadd.f32 1.0, %v3714_v52 }
 0x128   : > { %3719 = verf.f32 %v905_v1  ;;  %v840_v7 = vadd.f32 %v4347_v14, %v695_v2  ;;  %v2646_v8 = vadd.f32 %v2645_v4, %v2644_v3  ;;  %1144 = vmatmul.mubr.f32.gmra.mrb[20].mxu1 %v948_v50 }
 0x129   : > { %v950_v9 = vmul.f32 %v934_v6, %v886_v5 }
 0x12a   : > { %v3716_v10 = vpop.eup %3715  ;;  %v906_v11 = vmul.f32 0.70710677, %v840_v7  ;;  %v2647_v12 = vpop.f32.mrb[18].mxu0  ;;  %v700_v13 = vadd.f32 %v2646_v8, %v4342_v56  ;;  %v890_v50 = vmul.f32 0.5, %v840_v7 }
 0x12b   : > { %v935_v16 = vadd.f32 1.0, %v3716_v10  ;;  %v2648_v17 = vpop.f32.mrb[19].mxu0  ;;  %1148 = vmatprep.mubr.f32.mxu1 %v950_v9  ;;  %3162 = vmatprep.mubr.f32.mxu0 %v950_v9 }
 0x12c   : > { %3721 = verf.f32 %v906_v11  ;;  %v845_v18 = vadd.f32 %v4352_v25, %v700_v13  ;;  %v2649_v19 = vadd.f32 %v2648_v17, %v2647_v12  ;;  %1149 = vmatmul.mubr.f32.gmra.mrb[22].mxu1 %v949_v0 }
 0x12d   : > { %v951_v20 = vmul.f32 %v935_v16, %v887_v15 }
 0x12e   : > { %v3718_v14 = vpop.eup %3717  ;;  %v907_v21 = vmul.f32 0.70710677, %v845_v18  ;;  %v705_v23 = vadd.f32 %v2649_v19, %v4342_v56  ;;  %v2650_v24 = vpop.f32.mrb[20].mxu0  ;;  %v891_v61 = vmul.f32 0.5, %v845_v18 }
 0x12f   : > { %v2651_v26 = vpop.f32.mrb[21].mxu0  ;;  %1153 = vmatprep.mubr.f32.mxu1 %v951_v20  ;;  %3163 = vmatmul.mubr.f32.gmra.mrb[34].mxu0 %v951_v20  ;;  %v936_v29 = vadd.f32 1.0, %v3718_v14 }
 0x130   : > { %3723 = verf.f32 %v907_v21  ;;  %v850_v30 = vadd.f32 %v4350_v22, %v705_v23  ;;  %v2652_v31 = vadd.f32 %v2651_v26, %v2650_v24  ;;  %1154 = vmatmul.mubr.f32.gmra.mrb[24].mxu1 %v950_v9 }
 0x131   : > { %v952_v32 = vmul.f32 %v936_v29, %v888_v28 }
 0x132   : > { %v3720_v25 = vpop.eup %3719  ;;  %v908_v33 = vmul.f32 0.70710677, %v850_v30  ;;  %v2653_v35 = vpop.f32.mrb[22].mxu0  ;;  %v710_v36 = vadd.f32 %v2652_v31, %v4342_v56  ;;  %v892_v7 = vmul.f32 0.5, %v850_v30 }
 0x133   : > { %v937_v39 = vadd.f32 1.0, %v3720_v25  ;;  %v2654_v40 = vpop.f32.mrb[23].mxu0  ;;  %1158 = vmatprep.mubr.f32.mxu1 %v952_v32  ;;  %3165 = vmatprep.mubr.f32.mxu0 %v952_v32 }
 0x134   : > { %3725 = verf.f32 %v908_v33  ;;  %v855_v41 = vadd.f32 %v4357_v37, %v710_v36  ;;  %v2655_v42 = vadd.f32 %v2654_v40, %v2653_v35  ;;  %1159 = vmatmul.mubr.f32.gmra.mrb[26].mxu1 %v951_v20 }
 0x135   : > { %v953_v43 = vmul.f32 %v937_v39, %v889_v38 }
 0x136   : > { %v3722_v22 = vpop.eup %3721  ;;  %v909_v44 = vmul.f32 0.70710677, %v855_v41  ;;  %v715_v45 = vadd.f32 %v2655_v42, %v4342_v56  ;;  %v2656_v47 = vpop.f32.mrb[24].mxu0  ;;  %v893_v16 = vmul.f32 0.5, %v855_v41 }
 0x137   : > { %v2657_v48 = vpop.f32.mrb[25].mxu0  ;;  %1163 = vmatprep.mubr.f32.mxu1 %v953_v43  ;;  %3166 = vmatmul.mubr.f32.gmra.mrb[36].mxu0 %v953_v43  ;;  %v938_v51 = vadd.f32 1.0, %v3722_v22 }
 0x138   : > { %3727 = verf.f32 %v909_v44  ;;  %v860_v53 = vadd.f32 %v4355_v34, %v715_v45  ;;  %v2658_v54 = vadd.f32 %v2657_v48, %v2656_v47  ;;  %1164 = vmatmul.mubr.f32.gmra.mrb[28].mxu1 %v952_v32  ;;  %v1490_v44 = vld [vmem:[%s5021_s5 + $0x80] sm:$0xff]  ;;  %v1491_v45 = vld [vmem:[%s5021_s5 + $0x88] sm:$0xff] }
 0x139   : > { %v954_v55 = vmul.f32 %v938_v51, %v890_v50  ;;  %v3437_v47 = vpack.c.bf16 %v1491_v45, %v1490_v44  ;;  %v1474_v48 = vld [vmem:[%s5021_s5] sm:$0xff]  ;;  %v1475_v50 = vld [vmem:[%s5021_s5 + $0x8] sm:$0xff]  ;;  %v1489_v44 = vld [vmem:[%s5021_s5 + $0x78] sm:$0xff] }
 0x13a   : > { %v3724_v37 = vpop.eup %3723  ;;  %v910_v57 = vmul.f32 0.70710677, %v860_v53  ;;  %v2659_v58 = vpop.f32.mrb[26].mxu0  ;;  %v720_v59 = vadd.f32 %v2658_v54, %v4342_v56  ;;  %v894_v24 = vmul.f32 0.5, %v860_v53  ;;  %v3439_v51 = vpack.c.bf16 %v1475_v50, %v1474_v48  ;;  %v1492_v53 = vld [vmem:[%s5021_s5 + $0x90] sm:$0xff]  ;;  %v1493_v54 = vld [vmem:[%s5021_s5 + $0x98] sm:$0xff] }
 0x13b   : > { %v939_v62 = vadd.f32 1.0, %v3724_v37  ;;  %v2660_v0 = vpop.f32.mrb[27].mxu0  ;;  %1168 = vmatprep.mubr.f32.mxu1 %v954_v55  ;;  %3168 = vmatprep.mubr.f32.mxu0 %v954_v55  ;;  %v1476_v37 = vld [vmem:[%s5021_s5 + $0x10] sm:$0xff]  ;;  %v1521_v50 = vld [vmem:[%s5021_s5 + $0x178] sm:$0xff] }
 0x13c   : > { %3729 = verf.f32 %v910_v57  ;;  %v865_v52 = vadd.f32 %v4363_v49, %v720_v59  ;;  %v2661_v1 = vadd.f32 %v2660_v0, %v2659_v58  ;;  %1169 = vmatmul.mubr.f32.gmra.mrb[30].mxu1 %v953_v43  ;;  %3438 = vmatprep.subr.bf16.mxu0 %v3437_v47  ;;  %v1477_v57 = vld [vmem:[%s5021_s5 + $0x18] sm:$0xff]  ;;  %v1508_v58 = vld [vmem:[%s5021_s5 + $0x110] sm:$0xff]  ;;  %v1494_v0 = vld [vmem:[%s5021_s5 + $0xa0] sm:$0xff] }
 0x13d   : > { %v955_v2 = vmul.f32 %v939_v62, %v891_v61  ;;  %3440 = vmatpush3.bf16.msra.mxu0 %v3439_v51  ;;  %v1509_v59 = vld [vmem:[%s5021_s5 + $0x118] sm:$0xff]  ;;  %v3443_v61 = vpack.c.bf16 %v1477_v57, %v1476_v37  ;;  %v1520_v48 = vld [vmem:[%s5021_s5 + $0x170] sm:$0xff] }
 0x13e   : > { %v3726_v34 = vpop.eup %3725  ;;  %v911_v3 = vmul.f32 0.70710677, %v865_v52  ;;  %v725_v4 = vadd.f32 %v2661_v1, %v4342_v56  ;;  %v2662_v5 = vpop.f32.mrb[28].mxu0  ;;  %v895_v32 = vmul.f32 0.5, %v865_v52  ;;  %v3473_v62 = vpack.c.bf16 %v1509_v59, %v1508_v58  ;;  %v1495_v52 = vld [vmem:[%s5021_s5 + $0xa8] sm:$0xff] }
 0x13f   : > { %v2663_v6 = vpop.f32.mrb[29].mxu0  ;;  %1173 = vmatprep.mubr.f32.mxu1 %v955_v2  ;;  %3169 = vmatmul.mubr.f32.gmra.mrb[38].mxu0 %v955_v2  ;;  %v940_v8 = vadd.f32 1.0, %v3726_v34  ;;  %v3445_v1 = vpack.c.bf16 %v1495_v52, %v1494_v0  ;;  %v1479_v34 = vld [vmem:[%s5021_s5 + $0x28] sm:$0xff]  ;;  %v3497_v51 = vpack.c.bf16 %v1521_v50, %v1520_v48 }
 0x140   : > { %3731 = verf.f32 %v911_v3  ;;  %v870_v9 = vadd.f32 %v4360_v46, %v725_v4  ;;  %v2664_v10 = vadd.f32 %v2663_v6, %v2662_v5  ;;  %1174 = vmatmul.mubr.f32.gmra.mrb[32].mxu1 %v954_v55  ;;  %v3441_v55 = vpack.c.bf16 %v1493_v54, %v1492_v53  ;;  %3474 = vmatprep.subr.bf16.mxu1 %v3473_v62  ;;  %v1510_v4 = vld [vmem:[%s5021_s5 + $0x120] sm:$0xff]  ;;  %v1511_v5 = vld [vmem:[%s5021_s5 + $0x128] sm:$0xff]  ;;  %v1496_v6 = vld [vmem:[%s5021_s5 + $0xb0] sm:$0xff] }
 0x141   : > { %v956_v11 = vmul.f32 %v940_v8, %v892_v7  ;;  %3476 = vmatpush3.bf16.msra.mxu1 %v3473_v62  ;;  %v3477_v7 = vpack.c.bf16 %v1511_v5, %v1510_v4  ;;  %v1497_v8 = vld [vmem:[%s5021_s5 + $0xb8] sm:$0xff]  ;;  %v1822_v53 = vld [vmem:[%s5023_s7 + $0x80] sm:$0xff]  ;;  %v1823_v54 = vld [vmem:[%s5023_s7 + $0x88] sm:$0xff] }
 0x142   : > { %v3728_v49 = vpop.eup %3727  ;;  %v912_v12 = vmul.f32 0.70710677, %v870_v9  ;;  %v2665_v13 = vpop.f32.mrb[30].mxu0  ;;  %v730_v15 = vadd.f32 %v2664_v10, %v4342_v56  ;;  %3442 = vmatprep.subr.bf16.mxu0 %v3441_v55  ;;  %v1481_v10 = vld [vmem:[%s5021_s5 + $0x38] sm:$0xff]  ;;  %v3501_v55 = vpack.c.bf16 %v1823_v54, %v1822_v53 }
 0x143   : > { %v941_v17 = vadd.f32 1.0, %v3728_v49  ;;  %v2666_v18 = vpop.f32.mrb[31].mxu0  ;;  %1178 = vmatprep.mubr.f32.mxu1 %v956_v11  ;;  %3171 = vmatprep.mubr.f32.mxu0 %v956_v11  ;;  %v1809_v53 = vld [vmem:[%s5023_s7 + $0x18] sm:$0xff] }
 0x144   : > { %3733 = verf.f32 %v912_v12  ;;  %v875_v19 = vadd.f32 %v4369_v63, %v730_v15  ;;  %v2667_v20 = vadd.f32 %v2666_v18, %v2665_v13  ;;  %1179 = vmatmul.mubr.f32.gmra.mrb[34].mxu1 %v955_v2  ;;  %3444 = vmatpush3.bf16.msra.mxu0 %v3443_v61  ;;  %v1478_v2 = vld [vmem:[%s5021_s5 + $0x20] sm:$0xff]  ;;  %v1499_v13 = vld [vmem:[%s5021_s5 + $0xc8] sm:$0xff]  ;;  %v1512_v15 = vld [vmem:[%s5021_s5 + $0x130] sm:$0xff] }
 0x145   : > { %v957_v14 = vmul.f32 %v941_v17, %v893_v16  ;;  %v3447_v3 = vpack.c.bf16 %v1479_v34, %v1478_v2  ;;  %3446 = vmatprep.subr.bf16.mxu0 %v3445_v1  ;;  %3478 = vmatprep.subr.bf16.mxu1 %v3477_v7  ;;  %v1498_v12 = vld [vmem:[%s5021_s5 + $0xc0] sm:$0xff]  ;;  %v1513_v17 = vld [vmem:[%s5021_s5 + $0x138] sm:$0xff] }
 0x146   : > { %v3730_v46 = vpop.eup %3729  ;;  %v913_v21 = vmul.f32 0.70710677, %v875_v19  ;;  %v735_v23 = vadd.f32 %v2667_v20, %v4342_v56  ;;  %v896_v56 = vmul.f32 0.5, %v870_v9  ;;  %v1480_v9 = vld [vmem:[%s5021_s5 + $0x30] sm:$0xff]  ;;  %3480 = vmatpush3.bf16.msra.mxu1 %v3477_v7  ;;  %v3453_v16 = vpack.c.bf16 %v1499_v13, %v1498_v12  ;;  %v1482_v18 = vld [vmem:[%s5021_s5 + $0x40] sm:$0xff] }
 0x147   : > { %1183 = vmatprep.mubr.f32.mxu1 %v957_v14  ;;  %3172 = vmatmul.mubr.f32.gmra.mrb[40].mxu0 %v957_v14  ;;  %v942_v26 = vadd.f32 1.0, %v3730_v46  ;;  %v3451_v49 = vpack.c.bf16 %v1481_v10, %v1480_v9  ;;  %v3481_v20 = vpack.c.bf16 %v1513_v17, %v1512_v15  ;;  %v1500_v46 = vld [vmem:[%s5021_s5 + $0xd0] sm:$0xff]  ;;  %v4537_v61 = vld [vmem:[%s5020_s4] ss:$0 sm:$0xff] }
 0x148   : > { %3735 = verf.f32 %v913_v21  ;;  %v880_v28 = vadd.f32 %v4367_v60, %v735_v23  ;;  %1184 = vmatmul.mubr.f32.gmra.mrb[36].mxu1 %v956_v11  ;;  %v897_v60 = vmul.f32 0.5, %v875_v19  ;;  %3448 = vmatpush3.bf16.msra.mxu0 %v3447_v3  ;;  %v3449_v11 = vpack.c.bf16 %v1497_v8, %v1496_v6  ;;  %v1483_v19 = vld [vmem:[%s5021_s5 + $0x48] sm:$0xff]  ;;  %v1501_v21 = vld [vmem:[%s5021_s5 + $0xd8] sm:$0xff]  ;;  %v1514_v23 = vld [vmem:[%s5021_s5 + $0x140] sm:$0xff] }
 0x149   : > { %v958_v29 = vmul.f32 %v942_v26, %v894_v24  ;;  %3482 = vmatprep.subr.bf16.mxu1 %v3481_v20  ;;  %v3457_v24 = vpack.c.bf16 %v1501_v21, %v1500_v46  ;;  %v1515_v26 = vld [vmem:[%s5021_s5 + $0x148] sm:$0xff] }
 0x14a   : > { %v3732_v30 = vpop.eup %3731  ;;  %v914_v31 = vmul.f32 0.70710677, %v880_v28  ;;  %v898_v42 = vmul.f32 0.5, %v880_v28  ;;  %3450 = vmatprep.subr.bf16.mxu0 %v3449_v11  ;;  %3484 = vmatpush3.bf16.msra.mxu1 %v3481_v20  ;;  %v1484_v28 = vld [vmem:[%s5021_s5 + $0x50] sm:$0xff] }
 0x14b   : > { %v943_v63 = vadd.f32 1.0, %v3732_v30  ;;  %1188 = vmatprep.mubr.f32.mxu1 %v958_v29  ;;  %3174 = vmatprep.mubr.f32.mxu0 %v958_v29  ;;  %v3485_v30 = vpack.c.bf16 %v1515_v26, %v1514_v23 }
 0x14c   : > { %3737 = verf.f32 %v914_v31  ;;  %1189 = vmatmul.mubr.f32.gmra.mrb[38].mxu1 %v957_v14  ;;  %3452 = vmatpush3.bf16.msra.mxu0 %v3451_v49  ;;  %v3455_v14 = vpack.c.bf16 %v1483_v19, %v1482_v18 }
 0x14d   : > { %v959_v25 = vmul.f32 %v943_v63, %v895_v32  ;;  %3454 = vmatprep.subr.bf16.mxu0 %v3453_v16  ;;  %3486 = vmatprep.subr.bf16.mxu1 %v3485_v30  ;;  %v1502_v32 = vld [vmem:[%s5021_s5 + $0xe0] sm:$0xff]  ;;  %v1503_v63 = vld [vmem:[%s5021_s5 + $0xe8] sm:$0xff] }
 0x14e   : > { %v3734_v33 = vpop.eup %3733  ;;  %3488 = vmatpush3.bf16.msra.mxu1 %v3485_v30 }
 0x14f   : > { %1193 = vmatprep.mubr.f32.mxu1 %v959_v25  ;;  %3175 = vmatmul.mubr.f32.gmra.mrb[42].mxu0 %v959_v25  ;;  %v944_v35 = vadd.f32 1.0, %v3734_v33  ;;  %v3461_v33 = vpack.c.bf16 %v1503_v63, %v1502_v32  ;;  %v1807_v32 = vld [vmem:[%s5023_s7 + $0x8] sm:$0xff] }
 0x150   : > { %1194 = vmatmul.mubr.f32.gmra.mrb[40].mxu1 %v958_v29  ;;  %3456 = vmatpush3.bf16.msra.mxu0 %v3455_v14  ;;  %v1485_v29 = vld [vmem:[%s5021_s5 + $0x58] sm:$0xff] }
 0x151   : > { %v960_v36 = vmul.f32 %v944_v35, %v896_v56  ;;  %v3459_v31 = vpack.c.bf16 %v1485_v29, %v1484_v28  ;;  %3458 = vmatprep.subr.bf16.mxu0 %v3457_v24  ;;  %v1517_v56 = vld [vmem:[%s5021_s5 + $0x158] sm:$0xff]  ;;  %v1486_v35 = vld [vmem:[%s5021_s5 + $0x60] sm:$0xff] }
 0x152   : > { %v3736_v38 = vpop.eup %3735 }
 0x153   : > { %v945_v39 = vadd.f32 1.0, %v3736_v38  ;;  %1198 = vmatprep.mubr.f32.mxu1 %v960_v36  ;;  %3177 = vmatprep.mubr.f32.mxu0 %v960_v36 }
 0x154   : > { %1199 = vmatmul.mubr.f32.gmra.mrb[42].mxu1 %v959_v25  ;;  %v1516_v25 = vld [vmem:[%s5021_s5 + $0x150] sm:$0xff]  ;;  %3460 = vmatpush3.bf16.msra.mxu0 %v3459_v31  ;;  %v1806_v31 = vld [vmem:[%s5023_s7] sm:$0xff] }
 0x155   : > { %v961_v40 = vmul.f32 %v945_v39, %v897_v60  ;;  %v3489_v38 = vpack.c.bf16 %v1517_v56, %v1516_v25  ;;  %3462 = vmatprep.subr.bf16.mxu0 %v3461_v33  ;;  %v1504_v39 = vld [vmem:[%s5021_s5 + $0xf0] sm:$0xff] }
 0x156   : > { %v3738_v41 = vpop.eup %3737 }
 0x157   : > { %1203 = vmatprep.mubr.f32.mxu1 %v961_v40  ;;  %3178 = vmatmul.mubr.f32.gmra.mrb[44].mxu0 %v961_v40  ;;  %v946_v43 = vadd.f32 1.0, %v3738_v41  ;;  %v1518_v41 = vld [vmem:[%s5021_s5 + $0x160] sm:$0xff] }
 0x158   : > { %1204 = vmatmul.mubr.f32.gmra.mrb[44].mxu1 %v960_v36  ;;  %v1487_v36 = vld [vmem:[%s5021_s5 + $0x68] sm:$0xff]  ;;  %3490 = vmatprep.subr.bf16.mxu1 %v3489_v38 }
 0x159   : > { %v962_v22 = vmul.f32 %v946_v43, %v898_v42  ;;  %v3463_v60 = vpack.c.bf16 %v1487_v36, %v1486_v35  ;;  %3492 = vmatpush3.bf16.msra.mxu1 %v3489_v38  ;;  %v1519_v43 = vld [vmem:[%s5021_s5 + $0x168] sm:$0xff]  ;;  %v1824_v38 = vld [vmem:[%s5023_s7 + $0x90] sm:$0xff] }
 0x15a   : > { %v3493_v45 = vpack.c.bf16 %v1519_v43, %v1518_v41 }
 0x15b   : > { %1208 = vmatprep.mubr.f32.mxu1 %v962_v22  ;;  %3180 = vmatprep.mubr.f32.mxu0 %v962_v22  ;;  %v1488_v22 = vld [vmem:[%s5021_s5 + $0x70] sm:$0xff] }
 0x15c   : > { %1209 = vmatmul.mubr.f32.gmra.mrb[46].mxu1 %v961_v40  ;;  %3181 = vmatmul.mubr.f32.gmra.mrb[46].mxu0 %v3875_v27  ;;  %v1505_v40 = vld [vmem:[%s5021_s5 + $0xf8] sm:$0xff]  ;;  %v3467_v47 = vpack.c.bf16 %v1489_v44, %v1488_v22 }
 0x15d   : > { %3464 = vmatpush3.bf16.msra.mxu0 %v3463_v60  ;;  %v3465_v42 = vpack.c.bf16 %v1505_v40, %v1504_v39  ;;  %3494 = vmatprep.subr.bf16.mxu1 %v3493_v45  ;;  %v1825_v60 = vld [vmem:[%s5023_s7 + $0x98] sm:$0xff] }
 0x15e   : > { %3496 = vmatpush3.bf16.msra.mxu1 %v3493_v45  ;;  %v3503_v45 = vpack.c.bf16 %v1807_v32, %v1806_v31  ;;  %v3505_v50 = vpack.c.bf16 %v1825_v60, %v1824_v38 }
 0x15f   : > { %3466 = vmatprep.subr.bf16.mxu0 %v3465_v42  ;;  %3498 = vmatprep.subr.bf16.mxu1 %v3497_v51 }
 0x161   : > { %3468 = vmatpush3.bf16.msra.mxu0 %v3467_v47 }
 0x162   : > { %3500 = vmatpush3.bf16.msra.mxu1 %v3497_v51  ;;  %3502 = vmatprep.subr.bf16.mxu0 %v3501_v55  ;;  %v1808_v51 = vld [vmem:[%s5023_s7 + $0x10] sm:$0xff] }
 0x1f3   : > { %v2732_v37 = vpop.f32.mrb[16].mxu1 }
 0x1f4   : > { %v2733_v57 = vpop.f32.mrb[17].mxu1 }
 0x1f5   : > { %v2734_v58 = vadd.f32 %v2733_v57, %v2732_v37 }
 0x1f7   : > { %v2735_v59 = vpop.f32.mrb[18].mxu1  ;;  %v1136_v1 = vadd.f32 %v2734_v58, %v4537_v61  ;;  %v3507_v58 = vpack.c.bf16 %v1809_v53, %v1808_v51 }
 0x1f8   : > { %v2736_v62 = vpop.f32.mrb[19].mxu1 }
 0x1f9   : > { %v2737_v0 = vadd.f32 %v2736_v62, %v2735_v59 }
 0x1fa   : > { %v3161_v52 = vpop.f32.mrb[32].mxu0 }
 0x1fb   : > { %v1141_v2 = vadd.f32 %v2737_v0, %v4537_v61  ;;  %v2738_v34 = vpop.f32.mrb[20].mxu1  ;;  %v1280_v3 = vpop.f32.mrb[33].mxu0 }
 0x1fc   : > { %v1281_v4 = vadd.f32 %v1280_v3, %v1136_v1  ;;  %v2739_v5 = vpop.f32.mrb[21].mxu1 }
 0x1fd   : > { %v1286_v6 = vadd.f32 %v3161_v52, %v1141_v2  ;;  %v2740_v7 = vadd.f32 %v2739_v5, %v2738_v34 }
 0x1fe   : > { %v1375_v8 = vmul.f32 0.70710677, %v1281_v4  ;;  %v1359_v25 = vmul.f32 0.5, %v1281_v4 }
 0x1ff   : > { %v1376_v9 = vmul.f32 0.70710677, %v1286_v6  ;;  %v2741_v10 = vpop.f32.mrb[22].mxu1  ;;  %v1146_v13 = vadd.f32 %v2740_v7, %v4537_v61  ;;  %v1360_v39 = vmul.f32 0.5, %v1286_v6 }
 0x200   : > { %3739 = verf.f32 %v1375_v8  ;;  %v2742_v11 = vpop.f32.mrb[23].mxu1 }
 0x201   : > { %3741 = verf.f32 %v1376_v9  ;;  %v2743_v49 = vadd.f32 %v2742_v11, %v2741_v10 }
 0x202   : > { %v3164_v12 = vpop.f32.mrb[34].mxu0 }
 0x203   : > { %v1151_v15 = vadd.f32 %v2743_v49, %v4537_v61  ;;  %v2744_v16 = vpop.f32.mrb[24].mxu1  ;;  %v1290_v17 = vpop.f32.mrb[35].mxu0 }
 0x204   : > { %v1291_v18 = vadd.f32 %v1290_v17, %v1146_v13  ;;  %v2745_v19 = vpop.f32.mrb[25].mxu1 }
 0x205   : > { %v1296_v20 = vadd.f32 %v3164_v12, %v1151_v15  ;;  %v2746_v14 = vadd.f32 %v2745_v19, %v2744_v16 }
 0x206   : > { %v1377_v46 = vmul.f32 0.70710677, %v1291_v18  ;;  %v1361_v1 = vmul.f32 0.5, %v1291_v18 }
 0x207   : > { %v1378_v21 = vmul.f32 0.70710677, %v1296_v20  ;;  %v2747_v23 = vpop.f32.mrb[26].mxu1  ;;  %v1156_v30 = vadd.f32 %v2746_v14, %v4537_v61  ;;  %v1362_v5 = vmul.f32 0.5, %v1296_v20 }
 0x208   : > { %3743 = verf.f32 %v1377_v46  ;;  %v2748_v24 = vpop.f32.mrb[27].mxu1 }
 0x209   : > { %3745 = verf.f32 %v1378_v21  ;;  %v2749_v26 = vadd.f32 %v2748_v24, %v2747_v23 }
 0x20a   : > { %v3740_v28 = vpop.eup %3739  ;;  %v3167_v29 = vpop.f32.mrb[36].mxu0 }
 0x20b   : > { %v3742_v63 = vpop.eup %3741  ;;  %v1407_v33 = vadd.f32 1.0, %v3740_v28  ;;  %v1161_v56 = vadd.f32 %v2749_v26, %v4537_v61  ;;  %v2750_v35 = vpop.f32.mrb[28].mxu1 }
 0x20c   : > { %v1300_v36 = vpop.f32.mrb[37].mxu0  ;;  %v1408_v40 = vadd.f32 1.0, %v3742_v63  ;;  %v2751_v42 = vpop.f32.mrb[29].mxu1 }
 0x20d   : > { %v1301_v41 = vadd.f32 %v1300_v36, %v1156_v30  ;;  %v1306_v43 = vadd.f32 %v3167_v29, %v1161_v56  ;;  %v2752_v22 = vadd.f32 %v2751_v42, %v2750_v35  ;;  %v1423_v44 = vmul.f32 %v1407_v33, %v1359_v25 }
 0x20e   : > { %v1424_v48 = vmul.f32 %v1408_v40, %v1360_v39 }
 0x20f   : > { %v1379_v47 = vmul.f32 0.70710677, %v1301_v41  ;;  %v1380_v54 = vmul.f32 0.70710677, %v1306_v43  ;;  %v2753_v55 = vpop.f32.mrb[30].mxu1  ;;  %1593 = vmatprep.mubr.f32.mxu0 %v1423_v44  ;;  %v1166_v0 = vadd.f32 %v2752_v22, %v4537_v61  ;;  %v1363_v46 = vmul.f32 0.5, %v1301_v41 }
 0x210   : > { %v2754_v37 = vpop.f32.mrb[31].mxu1  ;;  %3215 = vmatprep.mubr.f32.mxu1 %v1424_v48  ;;  %1594 = vmatmul.mubr.f32.vlgmr.msra.gmra.mrb[48].mxu0 %v3875_v27  ;;  %v1364_v28 = vmul.f32 0.5, %v1306_v43 }
 0x211   : > { %3747 = verf.f32 %v1379_v47  ;;  %v2755_v57 = vadd.f32 %v2754_v37, %v2753_v55  ;;  %3504 = vmatpush3.bf16.msra.mxu0 %v3503_v45 }
 0x212   : > { %3749 = verf.f32 %v1380_v54  ;;  %v3744_v59 = vpop.eup %3743  ;;  %v3170_v62 = vpop.f32.mrb[38].mxu0  ;;  %3506 = vmatprep.subr.bf16.mxu0 %v3505_v50 }
 0x213   : > { %v3746_v52 = vpop.eup %3745  ;;  %v1409_v2 = vadd.f32 1.0, %v3744_v59  ;;  %v1171_v34 = vadd.f32 %v2755_v57, %v4537_v61  ;;  %v2756_v3 = vpop.f32.mrb[32].mxu1 }
 0x214   : > { %v1310_v4 = vpop.f32.mrb[39].mxu0  ;;  %v1410_v6 = vadd.f32 1.0, %v3746_v52  ;;  %v2757_v8 = vpop.f32.mrb[33].mxu1 }
 0x215   : > { %v1311_v7 = vadd.f32 %v1310_v4, %v1166_v0  ;;  %v1316_v9 = vadd.f32 %v3170_v62, %v1171_v34  ;;  %v2758_v10 = vadd.f32 %v2757_v8, %v2756_v3  ;;  %v1425_v11 = vmul.f32 %v1409_v2, %v1361_v1  ;;  %3508 = vmatpush3.bf16.msra.mxu0 %v3507_v58 }
 0x216   : > { %v1426_v49 = vmul.f32 %v1410_v6, %v1362_v5 }
 0x217   : > { %v1381_v12 = vmul.f32 0.70710677, %v1311_v7  ;;  %v1382_v13 = vmul.f32 0.70710677, %v1316_v9  ;;  %v2759_v15 = vpop.f32.mrb[34].mxu1  ;;  %1598 = vmatprep.mubr.f32.mxu0 %v1425_v11  ;;  %v1176_v20 = vadd.f32 %v2758_v10, %v4537_v61  ;;  %v1365_v43 = vmul.f32 0.5, %v1311_v7 }
 0x218   : > { %v2760_v16 = vpop.f32.mrb[35].mxu1  ;;  %1599 = vmatmul.mubr.f32.gmra.mrb[50].mxu0 %v1424_v48  ;;  %3216 = vmatmul.mubr.f32.vlgmr.msra.gmra.mrb[48].mxu1 %v1426_v49  ;;  %v1366_v48 = vmul.f32 0.5, %v1316_v9 }
 0x219   : > { %3751 = verf.f32 %v1381_v12  ;;  %v2761_v17 = vadd.f32 %v2760_v16, %v2759_v15 }
 0x21a   : > { %3753 = verf.f32 %v1382_v13  ;;  %v3173_v19 = vpop.f32.mrb[40].mxu0 }
 0x21b   : > { %v3748_v18 = vpop.eup %3747  ;;  %v1181_v23 = vadd.f32 %v2761_v17, %v4537_v61  ;;  %v2762_v24 = vpop.f32.mrb[36].mxu1 }
 0x21c   : > { %v3750_v14 = vpop.eup %3749  ;;  %v1411_v21 = vadd.f32 1.0, %v3748_v18  ;;  %v1320_v26 = vpop.f32.mrb[41].mxu0 }
 0x21d   : > { %v1412_v29 = vadd.f32 1.0, %v3750_v14  ;;  %v1321_v30 = vadd.f32 %v1320_v26, %v1176_v20  ;;  %v2763_v31 = vpop.f32.mrb[37].mxu1  ;;  %v1326_v32 = vadd.f32 %v3173_v19, %v1181_v23 }
 0x21e   : > { %v2764_v63 = vadd.f32 %v2763_v31, %v2762_v24  ;;  %v1427_v25 = vmul.f32 %v1411_v21, %v1363_v46 }
 0x21f   : > { %v1383_v33 = vmul.f32 0.70710677, %v1321_v30  ;;  %v1428_v56 = vmul.f32 %v1412_v29, %v1364_v28  ;;  %v1384_v35 = vmul.f32 0.70710677, %v1326_v32  ;;  %v2765_v36 = vpop.f32.mrb[38].mxu1  ;;  %v1367_v4 = vmul.f32 0.5, %v1321_v30 }
 0x220   : > { %1603 = vmatprep.mubr.f32.mxu0 %v1427_v25  ;;  %v2766_v38 = vpop.f32.mrb[39].mxu1  ;;  %v1186_v41 = vadd.f32 %v2764_v63, %v4537_v61  ;;  %v1368_v9 = vmul.f32 0.5, %v1326_v32 }
 0x221   : > { %3755 = verf.f32 %v1383_v33  ;;  %1604 = vmatmul.mubr.f32.gmra.mrb[52].mxu0 %v1426_v49  ;;  %3218 = vmatprep.mubr.f32.mxu1 %v1428_v56  ;;  %v2767_v60 = vadd.f32 %v2766_v38, %v2765_v36 }
 0x222   : > { %3757 = verf.f32 %v1384_v35  ;;  %v3176_v40 = vpop.f32.mrb[42].mxu0 }
 0x223   : > { %v3752_v39 = vpop.eup %3751  ;;  %v1191_v44 = vadd.f32 %v2767_v60, %v4537_v61  ;;  %v2768_v45 = vpop.f32.mrb[40].mxu1 }
 0x224   : > { %v3754_v42 = vpop.eup %3753  ;;  %v1413_v22 = vadd.f32 1.0, %v3752_v39  ;;  %v1330_v47 = vpop.f32.mrb[43].mxu0 }
 0x225   : > { %v1414_v50 = vadd.f32 1.0, %v3754_v42  ;;  %v1331_v51 = vadd.f32 %v1330_v47, %v1186_v41  ;;  %v2769_v53 = vpop.f32.mrb[41].mxu1  ;;  %v1336_v54 = vadd.f32 %v3176_v40, %v1191_v44 }
 0x226   : > { %v2770_v55 = vadd.f32 %v2769_v53, %v2768_v45  ;;  %v1429_v37 = vmul.f32 %v1413_v22, %v1365_v43 }
 0x227   : > { %v1385_v57 = vmul.f32 0.70710677, %v1331_v51  ;;  %v1430_v58 = vmul.f32 %v1414_v50, %v1366_v48  ;;  %v1386_v59 = vmul.f32 0.70710677, %v1336_v54  ;;  %v2771_v62 = vpop.f32.mrb[42].mxu1  ;;  %v1369_v29 = vmul.f32 0.5, %v1331_v51 }
 0x228   : > { %1608 = vmatprep.mubr.f32.mxu0 %v1429_v37  ;;  %v2772_v0 = vpop.f32.mrb[43].mxu1  ;;  %v1196_v34 = vadd.f32 %v2770_v55, %v4537_v61  ;;  %v1370_v63 = vmul.f32 0.5, %v1336_v54  ;;  %v1826_v54 = vld [vmem:[%s5023_s7 + $0xa0] sm:$0xff]  ;;  %v1827_v55 = vld [vmem:[%s5023_s7 + $0xa8] sm:$0xff] }
 0x229   : > { %3759 = verf.f32 %v1385_v57  ;;  %1609 = vmatmul.mubr.f32.gmra.mrb[54].mxu0 %v1428_v56  ;;  %3219 = vmatmul.mubr.f32.gmra.mrb[50].mxu1 %v1430_v58  ;;  %v2773_v52 = vadd.f32 %v2772_v0, %v2771_v62  ;;  %v1810_v37 = vld [vmem:[%s5023_s7 + $0x20] sm:$0xff]  ;;  %v3509_v57 = vpack.c.bf16 %v1827_v55, %v1826_v54  ;;  %v1828_v62 = vld [vmem:[%s5023_s7 + $0xb0] sm:$0xff]  ;;  %v1829_v0 = vld [vmem:[%s5023_s7 + $0xb8] sm:$0xff] }
 0x22a   : > { %3761 = verf.f32 %v1386_v59  ;;  %v3179_v2 = vpop.f32.mrb[44].mxu0  ;;  %v4697_v54 = vld [vmem:[%s5022_s6] ss:$0 sm:$0xff] }
 0x22b   : > { %v3756_v1 = vpop.eup %3755  ;;  %v1201_v6 = vadd.f32 %v2773_v52, %v4537_v61  ;;  %v2774_v7 = vpop.f32.mrb[44].mxu1  ;;  %3510 = vmatprep.subr.bf16.mxu0 %v3509_v57  ;;  %v3513_v52 = vpack.c.bf16 %v1829_v0, %v1828_v62 }
 0x22c   : > { %v3758_v3 = vpop.eup %3757  ;;  %v1415_v5 = vadd.f32 1.0, %v3756_v1  ;;  %v1340_v8 = vpop.f32.mrb[45].mxu0  ;;  %v1812_v1 = vld [vmem:[%s5023_s7 + $0x30] sm:$0xff] }
 0x22d   : > { %v1416_v10 = vadd.f32 1.0, %v3758_v3  ;;  %v1341_v11 = vadd.f32 %v1340_v8, %v1196_v34  ;;  %v2775_v49 = vpop.f32.mrb[45].mxu1  ;;  %v1346_v12 = vadd.f32 %v3179_v2, %v1201_v6  ;;  %v1813_v2 = vld [vmem:[%s5023_s7 + $0x38] sm:$0xff]  ;;  %v1838_v3 = vld [vmem:[%s5023_s7 + $0x100] sm:$0xff] }
 0x22e   : > { %v2776_v13 = vadd.f32 %v2775_v49, %v2774_v7  ;;  %v1431_v15 = vmul.f32 %v1415_v5, %v1367_v4  ;;  %v3515_v34 = vpack.c.bf16 %v1813_v2, %v1812_v1  ;;  %v1839_v4 = vld [vmem:[%s5023_s7 + $0x108] sm:$0xff]  ;;  %v1830_v6 = vld [vmem:[%s5023_s7 + $0xc0] sm:$0xff]  ;;  %v1840_v49 = vld [vmem:[%s5023_s7 + $0x110] sm:$0xff] }
 0x22f   : > { %v1387_v16 = vmul.f32 0.70710677, %v1341_v11  ;;  %v1432_v17 = vmul.f32 %v1416_v10, %v1368_v9  ;;  %v1388_v18 = vmul.f32 0.70710677, %v1346_v12  ;;  %v2777_v19 = vpop.f32.mrb[46].mxu1  ;;  %v3182_v20 = vpop.f32.mrb[46].mxu0  ;;  %v3533_v5 = vpack.c.bf16 %v1839_v4, %v1838_v3 }
 0x230   : > { %1613 = vmatprep.mubr.f32.mxu0 %v1431_v15  ;;  %v1206_v14 = vadd.f32 %v2776_v13, %v4537_v61  ;;  %v2778_v46 = vpop.f32.mrb[47].mxu1  ;;  %v1350_v21 = vpop.f32.mrb[47].mxu0  ;;  %v1371_v39 = vmul.f32 0.5, %v1341_v11  ;;  %v1372_v41 = vmul.f32 0.5, %v1346_v12  ;;  %v1831_v7 = vld [vmem:[%s5023_s7 + $0xc8] sm:$0xff]  ;;  %v1814_v9 = vld [vmem:[%s5023_s7 + $0x40] sm:$0xff] }
 0x231   : > { %3763 = verf.f32 %v1387_v16  ;;  %1614 = vmatmul.mubr.f32.gmra.mrb[56].mxu0 %v1430_v58  ;;  %3221 = vmatprep.mubr.f32.mxu1 %v1432_v17  ;;  %v2779_v23 = vadd.f32 %v2778_v46, %v2777_v19  ;;  %v1811_v58 = vld [vmem:[%s5023_s7 + $0x28] sm:$0xff]  ;;  %v3517_v8 = vpack.c.bf16 %v1831_v7, %v1830_v6  ;;  %v1841_v12 = vld [vmem:[%s5023_s7 + $0x118] sm:$0xff]  ;;  %v1832_v15 = vld [vmem:[%s5023_s7 + $0xd0] sm:$0xff] }
 0x232   : > { %3765 = verf.f32 %v1388_v18  ;;  %v1351_v24 = vadd.f32 %v1350_v21, %v1206_v14  ;;  %v3511_v59 = vpack.c.bf16 %v1811_v58, %v1810_v37  ;;  %v1815_v10 = vld [vmem:[%s5023_s7 + $0x48] sm:$0xff]  ;;  %3534 = vmatprep.subr.bf16.mxu1 %v3533_v5  ;;  %v3537_v13 = vpack.c.bf16 %v1841_v12, %v1840_v49  ;;  %v1833_v16 = vld [vmem:[%s5023_s7 + $0xd8] sm:$0xff]  ;;  %v1816_v18 = vld [vmem:[%s5023_s7 + $0x50] sm:$0xff] }
 0x233   : > { %v3760_v26 = vpop.eup %3759  ;;  %v1211_v31 = vadd.f32 %v2779_v23, %v4537_v61  ;;  %v3519_v11 = vpack.c.bf16 %v1815_v10, %v1814_v9  ;;  %3536 = vmatpush3.bf16.msra.mxu1 %v3533_v5  ;;  %v1817_v19 = vld [vmem:[%s5023_s7 + $0x58] sm:$0xff]  ;;  %v1842_v14 = vld [vmem:[%s5023_s7 + $0x120] sm:$0xff]  ;;  %v1843_v46 = vld [vmem:[%s5023_s7 + $0x128] sm:$0xff] }
 0x234   : > { %v3762_v28 = vpop.eup %3761  ;;  %v1417_v30 = vadd.f32 1.0, %v3760_v26  ;;  %v1389_v32 = vmul.f32 0.70710677, %v1351_v24  ;;  %v1373_v44 = vmul.f32 0.5, %v1351_v24  ;;  %3512 = vmatpush3.bf16.msra.mxu0 %v3511_v59  ;;  %3538 = vmatprep.subr.bf16.mxu1 %v3537_v13  ;;  %v3541_v21 = vpack.c.bf16 %v1843_v46, %v1842_v14  ;;  %v1834_v23 = vld [vmem:[%s5023_s7 + $0xe0] sm:$0xff]  ;;  %v1835_v24 = vld [vmem:[%s5023_s7 + $0xe8] sm:$0xff] }
 0x235   : > { %v1418_v25 = vadd.f32 1.0, %v3762_v28  ;;  %v1356_v33 = vadd.f32 %v3182_v20, %v1211_v31  ;;  %3514 = vmatprep.subr.bf16.mxu0 %v3513_v52  ;;  %v3523_v20 = vpack.c.bf16 %v1817_v19, %v1816_v18  ;;  %v3525_v26 = vpack.c.bf16 %v1835_v24, %v1834_v23  ;;  %v1818_v28 = vld [vmem:[%s5023_s7 + $0x60] sm:$0xff]  ;;  %v1844_v31 = vld [vmem:[%s5023_s7 + $0x130] sm:$0xff] }
 0x236   : > { %3767 = verf.f32 %v1389_v32  ;;  %v1433_v56 = vmul.f32 %v1417_v30, %v1369_v29  ;;  %v1819_v29 = vld [vmem:[%s5023_s7 + $0x68] sm:$0xff]  ;;  %v1845_v32 = vld [vmem:[%s5023_s7 + $0x138] sm:$0xff] }
 0x237   : > { %v1434_v35 = vmul.f32 %v1418_v25, %v1370_v63  ;;  %v1390_v36 = vmul.f32 0.70710677, %v1356_v33  ;;  %v1374_v50 = vmul.f32 0.5, %v1356_v33  ;;  %3540 = vmatpush3.bf16.msra.mxu1 %v3537_v13  ;;  %v3527_v30 = vpack.c.bf16 %v1819_v29, %v1818_v28  ;;  %v1836_v25 = vld [vmem:[%s5023_s7 + $0xf0] sm:$0xff]  ;;  %v1837_v33 = vld [vmem:[%s5023_s7 + $0xf8] sm:$0xff] }
 0x238   : > { %1618 = vmatprep.mubr.f32.mxu0 %v1433_v56  ;;  %3516 = vmatpush3.bf16.msra.mxu0 %v3515_v34  ;;  %v3545_v63 = vpack.c.bf16 %v1845_v32, %v1844_v31  ;;  %v3529_v56 = vpack.c.bf16 %v1837_v33, %v1836_v25 }
 0x239   : > { %1619 = vmatmul.mubr.f32.gmra.mrb[58].mxu0 %v1432_v17  ;;  %3222 = vmatmul.mubr.f32.gmra.mrb[52].mxu1 %v1434_v35  ;;  %3769 = verf.f32 %v1390_v36  ;;  %v3521_v17 = vpack.c.bf16 %v1833_v16, %v1832_v15  ;;  %v1821_v36 = vld [vmem:[%s5023_s7 + $0x78] sm:$0xff] }
 0x23a   : > { %3518 = vmatprep.subr.bf16.mxu0 %v3517_v8  ;;  %3542 = vmatprep.subr.bf16.mxu1 %v3541_v21 }
 0x23b   : > { %v3764_v38 = vpop.eup %3763  ;;  %3544 = vmatpush3.bf16.msra.mxu1 %v3541_v21 }
 0x23c   : > { %v3766_v60 = vpop.eup %3765  ;;  %v1419_v40 = vadd.f32 1.0, %v3764_v38  ;;  %3520 = vmatpush3.bf16.msra.mxu0 %v3519_v11  ;;  %3546 = vmatprep.subr.bf16.mxu1 %v3545_v63 }
 0x23d   : > { %v1420_v42 = vadd.f32 1.0, %v3766_v60  ;;  %3522 = vmatprep.subr.bf16.mxu0 %v3521_v17  ;;  %v1846_v60 = vld [vmem:[%s5023_s7 + $0x140] sm:$0xff] }
 0x23e   : > { %v1435_v43 = vmul.f32 %v1419_v40, %v1371_v39  ;;  %v1847_v39 = vld [vmem:[%s5023_s7 + $0x148] sm:$0xff] }
 0x23f   : > { %v1436_v61 = vmul.f32 %v1420_v42, %v1372_v41  ;;  %3548 = vmatpush3.bf16.msra.mxu1 %v3545_v63  ;;  %v3549_v40 = vpack.c.bf16 %v1847_v39, %v1846_v60  ;;  %v1848_v41 = vld [vmem:[%s5023_s7 + $0x150] sm:$0xff]  ;;  %v1849_v42 = vld [vmem:[%s5023_s7 + $0x158] sm:$0xff] }
 0x240   : > { %v3768_v22 = vpop.eup %3767  ;;  %1623 = vmatprep.mubr.f32.mxu0 %v1435_v43  ;;  %3524 = vmatpush3.bf16.msra.mxu0 %v3523_v20  ;;  %v3553_v43 = vpack.c.bf16 %v1849_v42, %v1848_v41 }
 0x241   : > { %v1421_v45 = vadd.f32 1.0, %v3768_v22  ;;  %1624 = vmatmul.mubr.f32.gmra.mrb[60].mxu0 %v1434_v35  ;;  %3224 = vmatprep.mubr.f32.mxu1 %v1436_v61  ;;  %v1820_v35 = vld [vmem:[%s5023_s7 + $0x70] sm:$0xff]  ;;  %v1851_v22 = vld [vmem:[%s5023_s7 + $0x168] sm:$0xff] }
 0x242   : > { %3526 = vmatprep.subr.bf16.mxu0 %v3525_v26  ;;  %v3531_v38 = vpack.c.bf16 %v1821_v36, %v1820_v35  ;;  %3550 = vmatprep.subr.bf16.mxu1 %v3549_v40 }
 0x243   : > { %v1437_v47 = vmul.f32 %v1421_v45, %v1373_v44  ;;  %v3770_v48 = vpop.eup %3769  ;;  %3552 = vmatpush3.bf16.msra.mxu1 %v3549_v40  ;;  %v1852_v45 = vld [vmem:[%s5023_s7 + $0x170] sm:$0xff] }
 0x244   : > { %v1422_v51 = vadd.f32 1.0, %v3770_v48  ;;  %3528 = vmatpush3.bf16.msra.mxu0 %v3527_v30  ;;  %3554 = vmatprep.subr.bf16.mxu1 %v3553_v43 }
 0x245   : > { %1628 = vmatprep.mubr.f32.mxu0 %v1437_v47  ;;  %3530 = vmatprep.subr.bf16.mxu0 %v3529_v56  ;;  %v1853_v47 = vld [vmem:[%s5023_s7 + $0x178] sm:$0xff] }
 0x246   : > { %1629 = vmatmul.mubr.f32.gmra.mrb[62].mxu0 %v1436_v61  ;;  %v1438_v53 = vmul.f32 %v1422_v51, %v1374_v50  ;;  %v1850_v61 = vld [vmem:[%s5023_s7 + $0x160] sm:$0xff]  ;;  %v3561_v48 = vpack.c.bf16 %v1853_v47, %v1852_v45 }
 0x247   : > { %3556 = vmatpush3.bf16.msra.mxu1 %v3553_v43  ;;  %v3557_v44 = vpack.c.bf16 %v1851_v22, %v1850_v61 }
 0x248   : > { %3225 = vmatmul.mubr.f32.gmra.mrb[54].mxu1 %v1438_v53  ;;  %3532 = vmatpush3.bf16.msra.mxu0 %v3531_v38 }
 0x249   : > { %3558 = vmatprep.subr.bf16.mxu1 %v3557_v44 }
 0x24b   : > { %3560 = vmatpush3.bf16.msra.mxu1 %v3557_v44 }
 0x24c   : > { %3562 = vmatprep.subr.bf16.mxu1 %v3561_v48 }
 0x24f   : > { %3564 = vmatpush3.bf16.msra.mxu1 %v3561_v48 }
 0x2e3   : > { %v2844_v50 = vpop.f32.mrb[48].mxu0 }
 0x2e4   : > { %v2845_v51 = vpop.f32.mrb[49].mxu0 }
 0x2e5   : > { %v2846_v53 = vadd.f32 %v2845_v51, %v2844_v50 }
 0x2e7   : > { %v1596_v55 = vadd.f32 %v2846_v53, %v4697_v54 }
 0x2eb   : > { %v2847_v37 = vpop.f32.mrb[50].mxu0  ;;  %v3217_v57 = vpop.f32.mrb[48].mxu1 }
 0x2ec   : > { %v2848_v58 = vpop.f32.mrb[51].mxu0  ;;  %v1700_v59 = vpop.f32.mrb[49].mxu1 }
 0x2ed   : > { %v2849_v62 = vadd.f32 %v2848_v58, %v2847_v37  ;;  %v1701_v0 = vadd.f32 %v1700_v59, %v1596_v55 }
 0x2ef   : > { %v1601_v52 = vadd.f32 %v2849_v62, %v4697_v54  ;;  %v1747_v1 = vmul.f32 0.70710677, %v1701_v0  ;;  %v1739_v10 = vmul.f32 0.5, %v1701_v0 }
 0x2f1   : > { %v1706_v2 = vadd.f32 %v3217_v57, %v1601_v52  ;;  %3771 = verf.f32 %v1747_v1 }
 0x2f3   : > { %v1748_v34 = vmul.f32 0.70710677, %v1706_v2  ;;  %v1740_v20 = vmul.f32 0.5, %v1706_v2 }
 0x2f4   : > { %v2850_v3 = vpop.f32.mrb[52].mxu0 }
 0x2f5   : > { %v2851_v4 = vpop.f32.mrb[53].mxu0  ;;  %3773 = verf.f32 %v1748_v34 }
 0x2f6   : > { %v2852_v5 = vadd.f32 %v2851_v4, %v2850_v3 }
 0x2f8   : > { %v1606_v9 = vadd.f32 %v2852_v5, %v4697_v54 }
 0x2fb   : > { %v3772_v6 = vpop.eup %3771 }
 0x2fc   : > { %v2853_v7 = vpop.f32.mrb[54].mxu0  ;;  %v3220_v8 = vpop.f32.mrb[50].mxu1  ;;  %v1763_v11 = vadd.f32 1.0, %v3772_v6 }
 0x2fd   : > { %v2854_v49 = vpop.f32.mrb[55].mxu0  ;;  %v1710_v12 = vpop.f32.mrb[51].mxu1 }
 0x2fe   : > { %v2855_v13 = vadd.f32 %v2854_v49, %v2853_v7  ;;  %v1711_v15 = vadd.f32 %v1710_v12, %v1606_v9  ;;  %v1771_v16 = vmul.f32 %v1763_v11, %v1739_v10 }
 0x2ff   : > { %v3774_v17 = vpop.eup %3773 }
 0x300   : > { %v1611_v18 = vadd.f32 %v2855_v13, %v4697_v54  ;;  %v1749_v19 = vmul.f32 0.70710677, %v1711_v15  ;;  %1925 = vmatprep.mubr.f32.mxu0 %v1771_v16  ;;  %v1764_v14 = vadd.f32 1.0, %v3774_v17  ;;  %v1741_v63 = vmul.f32 0.5, %v1711_v15  ;;  %v2146_v13 = vld [vmem:[%s5025_s9 + $0x80] sm:$0xff]  ;;  %v2147_v15 = vld [vmem:[%s5025_s9 + $0x88] sm:$0xff] }
 0x301   : > { %1926 = vmatmul.mubr.f32.vlgmr.msra.gmra.mrb[64].mxu0 %v3875_v27  ;;  %v2130_v17 = vld [vmem:[%s5025_s9] sm:$0xff] }
 0x302   : > { %v1716_v46 = vadd.f32 %v3220_v8, %v1611_v18  ;;  %3775 = verf.f32 %v1749_v19  ;;  %v1772_v21 = vmul.f32 %v1764_v14, %v1740_v20  ;;  %v2131_v18 = vld [vmem:[%s5025_s9 + $0x8] sm:$0xff]  ;;  %v2148_v20 = vld [vmem:[%s5025_s9 + $0x90] sm:$0xff]  ;;  %v2149_v14 = vld [vmem:[%s5025_s9 + $0x98] sm:$0xff] }
 0x303   : > { %v3567_v19 = vpack.c.bf16 %v2131_v18, %v2130_v17  ;;  %v2145_v17 = vld [vmem:[%s5025_s9 + $0x78] sm:$0xff] }
 0x304   : > { %v1750_v23 = vmul.f32 0.70710677, %v1716_v46  ;;  %v2856_v24 = vpop.f32.mrb[56].mxu0  ;;  %1930 = vmatprep.mubr.f32.mxu0 %v1772_v21  ;;  %3259 = vmatprep.mubr.f32.mxu1 %v1772_v21  ;;  %v1742_v41 = vmul.f32 0.5, %v1716_v46  ;;  %v2162_v46 = vld [vmem:[%s5025_s9 + $0x100] sm:$0xff] }
 0x305   : > { %v2857_v26 = vpop.f32.mrb[57].mxu0  ;;  %1931 = vmatmul.mubr.f32.gmra.mrb[66].mxu0 %v1771_v16  ;;  %v3565_v16 = vpack.c.bf16 %v2147_v15, %v2146_v13  ;;  %v2175_v15 = vld [vmem:[%s5025_s9 + $0x168] sm:$0xff] }
 0x306   : > { %3777 = verf.f32 %v1750_v23  ;;  %v2858_v28 = vadd.f32 %v2857_v26, %v2856_v24  ;;  %v2163_v23 = vld [vmem:[%s5025_s9 + $0x108] sm:$0xff]  ;;  %v2132_v24 = vld [vmem:[%s5025_s9 + $0x10] sm:$0xff]  ;;  %v2133_v26 = vld [vmem:[%s5025_s9 + $0x18] sm:$0xff] }
 0x307   : > { %3566 = vmatprep.subr.bf16.mxu0 %v3565_v16  ;;  %v2144_v16 = vld [vmem:[%s5025_s9 + $0x70] sm:$0xff] }
 0x308   : > { %v1616_v32 = vadd.f32 %v2858_v28, %v4697_v54  ;;  %3568 = vmatpush3.bf16.msra.mxu0 %v3567_v19  ;;  %v3597_v28 = vpack.c.bf16 %v2163_v23, %v2162_v46  ;;  %v3595_v19 = vpack.c.bf16 %v2145_v17, %v2144_v16 }
 0x30a   : > { %3598 = vmatprep.subr.bf16.mxu1 %v3597_v28 }
 0x30c   : > { %v3776_v29 = vpop.eup %3775  ;;  %v2859_v30 = vpop.f32.mrb[58].mxu0 }
 0x30d   : > { %v3223_v31 = vpop.f32.mrb[52].mxu1  ;;  %v1765_v25 = vadd.f32 1.0, %v3776_v29  ;;  %v2860_v33 = vpop.f32.mrb[59].mxu0  ;;  %v3571_v29 = vpack.c.bf16 %v2133_v26, %v2132_v24 }
 0x30e   : > { %v1720_v56 = vpop.f32.mrb[53].mxu1  ;;  %v2861_v35 = vadd.f32 %v2860_v33, %v2859_v30  ;;  %v2150_v30 = vld [vmem:[%s5025_s9 + $0xa0] sm:$0xff] }
 0x30f   : > { %v1721_v36 = vadd.f32 %v1720_v56, %v1616_v32  ;;  %v1773_v38 = vmul.f32 %v1765_v25, %v1741_v63  ;;  %v2164_v32 = vld [vmem:[%s5025_s9 + $0x110] sm:$0xff]  ;;  %v2165_v25 = vld [vmem:[%s5025_s9 + $0x118] sm:$0xff]  ;;  %v2134_v33 = vld [vmem:[%s5025_s9 + $0x20] sm:$0xff] }
 0x310   : > { %v3778_v60 = vpop.eup %3777  ;;  %v1621_v39 = vadd.f32 %v2861_v35, %v4697_v54  ;;  %v2135_v56 = vld [vmem:[%s5025_s9 + $0x28] sm:$0xff]  ;;  %v3601_v35 = vpack.c.bf16 %v2165_v25, %v2164_v32 }
 0x311   : > { %v1751_v40 = vmul.f32 0.70710677, %v1721_v36  ;;  %1935 = vmatprep.mubr.f32.mxu0 %v1773_v38  ;;  %3260 = vmatmul.mubr.f32.vlgmr.msra.gmra.mrb[56].mxu1 %v1773_v38  ;;  %v1766_v42 = vadd.f32 1.0, %v3778_v60  ;;  %v1743_v57 = vmul.f32 0.5, %v1721_v36  ;;  %v3575_v36 = vpack.c.bf16 %v2135_v56, %v2134_v33  ;;  %v2153_v60 = vld [vmem:[%s5025_s9 + $0xb8] sm:$0xff] }
 0x312   : > { %v1726_v43 = vadd.f32 %v3223_v31, %v1621_v39  ;;  %1936 = vmatmul.mubr.f32.gmra.mrb[68].mxu0 %v1772_v21  ;;  %v3569_v21 = vpack.c.bf16 %v2149_v14, %v2148_v20  ;;  %v2151_v31 = vld [vmem:[%s5025_s9 + $0xa8] sm:$0xff]  ;;  %3600 = vmatpush3.bf16.msra.mxu1 %v3597_v28  ;;  %v2166_v39 = vld [vmem:[%s5025_s9 + $0x120] sm:$0xff]  ;;  %v2176_v20 = vld [vmem:[%s5025_s9 + $0x170] sm:$0xff] }
 0x313   : > { %3779 = verf.f32 %v1751_v40  ;;  %v1774_v61 = vmul.f32 %v1766_v42, %v1742_v41  ;;  %v3573_v63 = vpack.c.bf16 %v2151_v31, %v2150_v30  ;;  %3602 = vmatprep.subr.bf16.mxu1 %v3601_v35  ;;  %v2167_v41 = vld [vmem:[%s5025_s9 + $0x128] sm:$0xff]  ;;  %v2136_v42 = vld [vmem:[%s5025_s9 + $0x30] sm:$0xff]  ;;  %v2177_v14 = vld [vmem:[%s5025_s9 + $0x178] sm:$0xff] }
 0x314   : > { %v1752_v22 = vmul.f32 0.70710677, %v1726_v43  ;;  %v2862_v44 = vpop.f32.mrb[60].mxu0  ;;  %v1744_v4 = vmul.f32 0.5, %v1726_v43  ;;  %3570 = vmatprep.subr.bf16.mxu0 %v3569_v21  ;;  %v2137_v43 = vld [vmem:[%s5025_s9 + $0x38] sm:$0xff]  ;;  %v3625_v46 = vpack.c.bf16 %v2177_v14, %v2176_v20 }
 0x315   : > { %v2863_v45 = vpop.f32.mrb[61].mxu0  ;;  %1940 = vmatprep.mubr.f32.mxu0 %v1774_v61  ;;  %3262 = vmatprep.mubr.f32.mxu1 %v1774_v61  ;;  %v4856_v30 = vld [vmem:[%s5024_s8] ss:$0 sm:$0xff] }
 0x316   : > { %3781 = verf.f32 %v1752_v22  ;;  %v2864_v47 = vadd.f32 %v2863_v45, %v2862_v44  ;;  %1941 = vmatmul.mubr.f32.gmra.mrb[70].mxu0 %v1773_v38  ;;  %v2152_v38 = vld [vmem:[%s5025_s9 + $0xb0] sm:$0xff]  ;;  %3604 = vmatpush3.bf16.msra.mxu1 %v3601_v35  ;;  %v3579_v22 = vpack.c.bf16 %v2137_v43, %v2136_v42  ;;  %v2154_v44 = vld [vmem:[%s5025_s9 + $0xc0] sm:$0xff]  ;;  %v2155_v45 = vld [vmem:[%s5025_s9 + $0xc8] sm:$0xff] }
 0x317   : > { %3572 = vmatpush3.bf16.msra.mxu0 %v3571_v29  ;;  %v3577_v40 = vpack.c.bf16 %v2153_v60, %v2152_v38 }
 0x318   : > { %v1626_v37 = vadd.f32 %v2864_v47, %v4697_v54  ;;  %3574 = vmatprep.subr.bf16.mxu0 %v3573_v63  ;;  %v2168_v47 = vld [vmem:[%s5025_s9 + $0x130] sm:$0xff] }
 0x319   : > { %v2865_v48 = vpop.f32.mrb[62].mxu0 }
 0x31a   : > { %v2866_v50 = vpop.f32.mrb[63].mxu0 }
 0x31b   : > { %v2867_v51 = vadd.f32 %v2866_v50, %v2865_v48  ;;  %v3226_v55 = vpop.f32.mrb[54].mxu1  ;;  %3576 = vmatpush3.bf16.msra.mxu0 %v3575_v36  ;;  %v3581_v48 = vpack.c.bf16 %v2155_v45, %v2154_v44  ;;  %v2169_v50 = vld [vmem:[%s5025_s9 + $0x138] sm:$0xff] }
 0x31c   : > { %v1730_v62 = vpop.f32.mrb[55].mxu1  ;;  %3578 = vmatprep.subr.bf16.mxu0 %v3577_v40 }
 0x31d   : > { %v3780_v53 = vpop.eup %3779  ;;  %v1631_v59 = vadd.f32 %v2867_v51, %v4697_v54  ;;  %v1731_v0 = vadd.f32 %v1730_v62, %v1626_v37  ;;  %v2138_v51 = vld [vmem:[%s5025_s9 + $0x40] sm:$0xff] }
 0x31e   : > { %v1767_v58 = vadd.f32 1.0, %v3780_v53  ;;  %v2139_v53 = vld [vmem:[%s5025_s9 + $0x48] sm:$0xff] }
 0x31f   : > { %v1736_v52 = vadd.f32 %v3226_v55, %v1631_v59  ;;  %v1753_v34 = vmul.f32 0.70710677, %v1731_v0  ;;  %v1745_v8 = vmul.f32 0.5, %v1731_v0  ;;  %3580 = vmatpush3.bf16.msra.mxu0 %v3579_v22  ;;  %v3609_v55 = vpack.c.bf16 %v2169_v50, %v2168_v47  ;;  %v2170_v59 = vld [vmem:[%s5025_s9 + $0x140] sm:$0xff]  ;;  %v2171_v0 = vld [vmem:[%s5025_s9 + $0x148] sm:$0xff] }
 0x320   : > { %v1775_v1 = vmul.f32 %v1767_v58, %v1743_v57  ;;  %v3782_v2 = vpop.eup %3781  ;;  %v3583_v37 = vpack.c.bf16 %v2139_v53, %v2138_v51  ;;  %3582 = vmatprep.subr.bf16.mxu0 %v3581_v48  ;;  %v2156_v57 = vld [vmem:[%s5025_s9 + $0xd0] sm:$0xff]  ;;  %v2157_v58 = vld [vmem:[%s5025_s9 + $0xd8] sm:$0xff] }
 0x321   : > { %v1754_v3 = vmul.f32 0.70710677, %v1736_v52  ;;  %v1768_v5 = vadd.f32 1.0, %v3782_v2  ;;  %3783 = verf.f32 %v1753_v34  ;;  %v1746_v10 = vmul.f32 0.5, %v1736_v52  ;;  %v2140_v52 = vld [vmem:[%s5025_s9 + $0x50] sm:$0xff] }
 0x322   : > { %1945 = vmatprep.mubr.f32.mxu0 %v1775_v1  ;;  %3263 = vmatmul.mubr.f32.gmra.mrb[58].mxu1 %v1775_v1  ;;  %v3585_v62 = vpack.c.bf16 %v2157_v58, %v2156_v57  ;;  %v3613_v2 = vpack.c.bf16 %v2171_v0, %v2170_v59 }
 0x323   : > { %1946 = vmatmul.mubr.f32.gmra.mrb[72].mxu0 %v1774_v61  ;;  %3785 = verf.f32 %v1754_v3  ;;  %v1776_v6 = vmul.f32 %v1768_v5, %v1744_v4  ;;  %v3605_v61 = vpack.c.bf16 %v2167_v41, %v2166_v39  ;;  %v2158_v3 = vld [vmem:[%s5025_s9 + $0xe0] sm:$0xff]  ;;  %v2159_v4 = vld [vmem:[%s5025_s9 + $0xe8] sm:$0xff]  ;;  %v2172_v5 = vld [vmem:[%s5025_s9 + $0x150] sm:$0xff] }
 0x324   : > { %3584 = vmatpush3.bf16.msra.mxu0 %v3583_v37 }
 0x325   : > { %1950 = vmatprep.mubr.f32.mxu0 %v1776_v6  ;;  %3265 = vmatprep.mubr.f32.mxu1 %v1776_v6 }
 0x326   : > { %3606 = vmatprep.subr.bf16.mxu1 %v3605_v61  ;;  %3586 = vmatprep.subr.bf16.mxu0 %v3585_v62 }
 0x327   : > { %1951 = vmatmul.mubr.f32.gmra.mrb[74].mxu0 %v1775_v1  ;;  %3608 = vmatpush3.bf16.msra.mxu1 %v3605_v61  ;;  %v2141_v1 = vld [vmem:[%s5025_s9 + $0x58] sm:$0xff] }
 0x328   : > { %3610 = vmatprep.subr.bf16.mxu1 %v3609_v55  ;;  %v3587_v34 = vpack.c.bf16 %v2141_v1, %v2140_v52 }
 0x32a   : > { %3588 = vmatpush3.bf16.msra.mxu0 %v3587_v34 }
 0x32b   : > { %v3784_v7 = vpop.eup %3783  ;;  %3612 = vmatpush3.bf16.msra.mxu1 %v3609_v55 }
 0x32c   : > { %v1769_v9 = vadd.f32 1.0, %v3784_v7  ;;  %3614 = vmatprep.subr.bf16.mxu1 %v3613_v2  ;;  %v2173_v7 = vld [vmem:[%s5025_s9 + $0x158] sm:$0xff] }
 0x32d   : > { %v3786_v54 = vpop.eup %3785 }
 0x32e   : > { %v1770_v11 = vadd.f32 1.0, %v3786_v54  ;;  %v1777_v49 = vmul.f32 %v1769_v9, %v1745_v8  ;;  %v2142_v54 = vld [vmem:[%s5025_s9 + $0x60] sm:$0xff]  ;;  %v2143_v8 = vld [vmem:[%s5025_s9 + $0x68] sm:$0xff]  ;;  %v3617_v9 = vpack.c.bf16 %v2173_v7, %v2172_v5 }
 0x32f   : > { %3616 = vmatpush3.bf16.msra.mxu1 %v3613_v2 }
 0x330   : > { %v1778_v12 = vmul.f32 %v1770_v11, %v1746_v10  ;;  %1955 = vmatprep.mubr.f32.mxu0 %v1777_v49  ;;  %3266 = vmatmul.mubr.f32.gmra.mrb[60].mxu1 %v1777_v49  ;;  %v3591_v10 = vpack.c.bf16 %v2143_v8, %v2142_v54  ;;  %v2160_v11 = vld [vmem:[%s5025_s9 + $0xf0] sm:$0xff] }
 0x331   : > { %1956 = vmatmul.mubr.f32.gmra.mrb[76].mxu0 %v1776_v6  ;;  %v3589_v6 = vpack.c.bf16 %v2159_v4, %v2158_v3  ;;  %3618 = vmatprep.subr.bf16.mxu1 %v3617_v9 }
 0x332   : > { %3268 = vmatprep.mubr.f32.mxu1 %v1778_v12  ;;  %1960 = vmatprep.mubr.f32.mxu0 %v1778_v12  ;;  %v2174_v12 = vld [vmem:[%s5025_s9 + $0x160] sm:$0xff] }
 0x333   : > { %3590 = vmatprep.subr.bf16.mxu0 %v3589_v6  ;;  %3620 = vmatpush3.bf16.msra.mxu1 %v3617_v9  ;;  %v3621_v18 = vpack.c.bf16 %v2175_v15, %v2174_v12 }
 0x334   : > { %3269 = vmatmul.mubr.f32.gmra.mrb[62].mxu1 %v3875_v27  ;;  %3592 = vmatpush3.bf16.msra.mxu0 %v3591_v10 }
 0x335   : > { %1961 = vmatmul.mubr.f32.gmra.mrb[78].mxu0 %v1777_v49  ;;  %v2161_v49 = vld [vmem:[%s5025_s9 + $0xf8] sm:$0xff]  ;;  %3622 = vmatprep.subr.bf16.mxu1 %v3621_v18 }
 0x336   : > { %v3593_v13 = vpack.c.bf16 %v2161_v49, %v2160_v11 }
 0x337   : > { %3624 = vmatpush3.bf16.msra.mxu1 %v3621_v18 }
 0x338   : > { %3594 = vmatprep.subr.bf16.mxu0 %v3593_v13  ;;  %3626 = vmatprep.subr.bf16.mxu1 %v3625_v46 }
 0x339   : > { %3596 = vmatpush3.bf16.msra.mxu0 %v3595_v19 }
 0x33b   : > { %3628 = vmatpush3.bf16.msra.mxu1 %v3625_v46 }
 0x3d4   : > { %v2924_v21 = vpop.f32.mrb[64].mxu0 }
 0x3d5   : > { %v2925_v23 = vpop.f32.mrb[65].mxu0 }
 0x3d6   : > { %v2926_v24 = vadd.f32 %v2925_v23, %v2924_v21 }
 0x3d8   : > { %v2927_v26 = vpop.f32.mrb[66].mxu0  ;;  %v1928_v31 = vadd.f32 %v2926_v24, %v4856_v30 }
 0x3d9   : > { %v2928_v28 = vpop.f32.mrb[67].mxu0 }
 0x3da   : > { %v2929_v29 = vadd.f32 %v2928_v28, %v2927_v26 }
 0x3dc   : > { %v1933_v32 = vadd.f32 %v2929_v29, %v4856_v30 }
 0x3e4   : > { %v3261_v63 = vpop.f32.mrb[56].mxu1 }
 0x3e5   : > { %v2038_v25 = vadd.f32 %v3261_v63, %v1933_v32  ;;  %v2930_v33 = vpop.f32.mrb[68].mxu0  ;;  %v2032_v56 = vpop.f32.mrb[57].mxu1 }
 0x3e6   : > { %v2033_v35 = vadd.f32 %v2032_v56, %v1928_v31  ;;  %v2931_v36 = vpop.f32.mrb[69].mxu0 }
 0x3e7   : > { %v2080_v38 = vmul.f32 0.70710677, %v2038_v25  ;;  %v2932_v60 = vadd.f32 %v2931_v36, %v2930_v33  ;;  %v2072_v44 = vmul.f32 0.5, %v2038_v25 }
 0x3e8   : > { %v2079_v39 = vmul.f32 0.70710677, %v2033_v35  ;;  %v2071_v50 = vmul.f32 0.5, %v2033_v35 }
 0x3e9   : > { %3787 = verf.f32 %v2080_v38  ;;  %v2933_v40 = vpop.f32.mrb[70].mxu0  ;;  %v1938_v48 = vadd.f32 %v2932_v60, %v4856_v30 }
 0x3ea   : > { %3789 = verf.f32 %v2079_v39  ;;  %v2934_v41 = vpop.f32.mrb[71].mxu0 }
 0x3eb   : > { %v2935_v42 = vadd.f32 %v2934_v41, %v2933_v40 }
 0x3ed   : > { %v1943_v61 = vadd.f32 %v2935_v42, %v4856_v30 }
 0x3f3   : > { %v3788_v43 = vpop.eup %3787 }
 0x3f4   : > { %v3790_v22 = vpop.eup %3789  ;;  %v2096_v45 = vadd.f32 1.0, %v3788_v43 }
 0x3f5   : > { %v3264_v47 = vpop.f32.mrb[58].mxu1  ;;  %v2095_v51 = vadd.f32 1.0, %v3790_v22 }
 0x3f6   : > { %v2048_v53 = vadd.f32 %v3264_v47, %v1943_v61  ;;  %v2936_v55 = vpop.f32.mrb[72].mxu0  ;;  %v2042_v37 = vpop.f32.mrb[59].mxu1  ;;  %v2104_v59 = vmul.f32 %v2096_v45, %v2072_v44  ;;  %v2402_v45 = vld [vmem:[%s5027_s11 + $0x80] sm:$0xff]  ;;  %v2403_v47 = vld [vmem:[%s5027_s11 + $0x88] sm:$0xff] }
 0x3f7   : > { %v2043_v57 = vadd.f32 %v2042_v37, %v1938_v48  ;;  %v2937_v58 = vpop.f32.mrb[73].mxu0  ;;  %v2103_v52 = vmul.f32 %v2095_v51, %v2071_v50  ;;  %v2386_v48 = vld [vmem:[%s5027_s11] sm:$0xff]  ;;  %v3629_v50 = vpack.c.bf16 %v2403_v47, %v2402_v45  ;;  %v2387_v51 = vld [vmem:[%s5027_s11 + $0x8] sm:$0xff] }
 0x3f8   : > { %v2082_v62 = vmul.f32 0.70710677, %v2048_v53  ;;  %v2938_v0 = vadd.f32 %v2937_v58, %v2936_v55  ;;  %3303 = vmatprep.mubr.f32.mxu1 %v2104_v59  ;;  %v2074_v7 = vmul.f32 0.5, %v2048_v53  ;;  %v2404_v53 = vld [vmem:[%s5027_s11 + $0x90] sm:$0xff]  ;;  %v2405_v55 = vld [vmem:[%s5027_s11 + $0x98] sm:$0xff]  ;;  %v3631_v37 = vpack.c.bf16 %v2387_v51, %v2386_v48 }
 0x3f9   : > { %v2081_v1 = vmul.f32 0.70710677, %v2043_v57  ;;  %2249 = vmatprep.mubr.f32.mxu0 %v2103_v52  ;;  %v2073_v10 = vmul.f32 0.5, %v2043_v57  ;;  %v3633_v57 = vpack.c.bf16 %v2405_v55, %v2404_v53  ;;  %v2388_v58 = vld [vmem:[%s5027_s11 + $0x10] sm:$0xff]  ;;  %3630 = vmatprep.subr.bf16.mxu0 %v3629_v50  ;;  %v2417_v55 = vld [vmem:[%s5027_s11 + $0xf8] sm:$0xff] }
 0x3fa   : > { %3791 = verf.f32 %v2082_v62  ;;  %v2939_v2 = vpop.f32.mrb[74].mxu0  ;;  %2250 = vmatmul.mubr.f32.vlgmr.msra.gmra.mrb[80].mxu0 %v3875_v27  ;;  %v1948_v9 = vadd.f32 %v2938_v0, %v4856_v30  ;;  %v2406_v62 = vld [vmem:[%s5027_s11 + $0xa0] sm:$0xff]  ;;  %v2407_v0 = vld [vmem:[%s5027_s11 + $0xa8] sm:$0xff]  ;;  %v2416_v53 = vld [vmem:[%s5027_s11 + $0xf0] sm:$0xff] }
 0x3fb   : > { %3793 = verf.f32 %v2081_v1  ;;  %v2940_v34 = vpop.f32.mrb[75].mxu0  ;;  %3632 = vmatpush3.bf16.msra.mxu0 %v3631_v37  ;;  %v3637_v1 = vpack.c.bf16 %v2407_v0, %v2406_v62  ;;  %v3657_v37 = vpack.c.bf16 %v2417_v55, %v2416_v53 }
 0x3fc   : > { %v2941_v3 = vadd.f32 %v2940_v34, %v2939_v2  ;;  %3634 = vmatprep.subr.bf16.mxu0 %v3633_v57  ;;  %v2390_v2 = vld [vmem:[%s5027_s11 + $0x20] sm:$0xff]  ;;  %v2391_v34 = vld [vmem:[%s5027_s11 + $0x28] sm:$0xff]  ;;  %v2400_v57 = vld [vmem:[%s5027_s11 + $0x70] sm:$0xff] }
 0x3fe   : > { %v1953_v5 = vadd.f32 %v2941_v3, %v4856_v30  ;;  %v2408_v3 = vld [vmem:[%s5027_s11 + $0xb0] sm:$0xff] }
 0x403   : > { %v3267_v8 = vpop.f32.mrb[60].mxu1 }
 0x404   : > { %v3792_v4 = vpop.eup %3791  ;;  %v2058_v49 = vadd.f32 %v3267_v8, %v1953_v5  ;;  %v2942_v12 = vpop.f32.mrb[76].mxu0  ;;  %v3639_v5 = vpack.c.bf16 %v2391_v34, %v2390_v2  ;;  %v2410_v8 = vld [vmem:[%s5027_s11 + $0xc0] sm:$0xff] }
 0x405   : > { %v3794_v6 = vpop.eup %3793  ;;  %v2098_v54 = vadd.f32 1.0, %v3792_v4  ;;  %v2052_v13 = vpop.f32.mrb[61].mxu1  ;;  %v2409_v4 = vld [vmem:[%s5027_s11 + $0xb8] sm:$0xff] }
 0x406   : > { %v2097_v11 = vadd.f32 1.0, %v3794_v6  ;;  %v2053_v16 = vadd.f32 %v2052_v13, %v1948_v9  ;;  %v2943_v17 = vpop.f32.mrb[77].mxu0  ;;  %v2084_v18 = vmul.f32 0.70710677, %v2058_v49  ;;  %v2076_v56 = vmul.f32 0.5, %v2058_v49  ;;  %v2411_v9 = vld [vmem:[%s5027_s11 + $0xc8] sm:$0xff] }
 0x407   : > { %v2106_v15 = vmul.f32 %v2098_v54, %v2074_v7  ;;  %v2944_v27 = vadd.f32 %v2943_v17, %v2942_v12  ;;  %v3270_v14 = vpop.f32.mrb[62].mxu1  ;;  %v3641_v6 = vpack.c.bf16 %v2409_v4, %v2408_v3  ;;  %v2392_v7 = vld [vmem:[%s5027_s11 + $0x30] sm:$0xff]  ;;  %v2393_v54 = vld [vmem:[%s5027_s11 + $0x38] sm:$0xff]  ;;  %v2394_v49 = vld [vmem:[%s5027_s11 + $0x40] sm:$0xff] }
 0x408   : > { %v2105_v19 = vmul.f32 %v2097_v11, %v2073_v10  ;;  %v2083_v20 = vmul.f32 0.70710677, %v2053_v16  ;;  %3795 = verf.f32 %v2084_v18  ;;  %v2945_v46 = vpop.f32.mrb[78].mxu0  ;;  %v2062_v23 = vpop.f32.mrb[63].mxu1  ;;  %v2075_v36 = vmul.f32 0.5, %v2053_v16  ;;  %v2395_v12 = vld [vmem:[%s5027_s11 + $0x48] sm:$0xff] }
 0x409   : > { %3304 = vmatmul.mubr.f32.vlgmr.msra.gmra.mrb[64].mxu1 %v2106_v15  ;;  %v1958_v21 = vadd.f32 %v2944_v27, %v4856_v30  ;;  %v2946_v24 = vpop.f32.mrb[79].mxu0  ;;  %v3643_v10 = vpack.c.bf16 %v2393_v54, %v2392_v7  ;;  %v3645_v11 = vpack.c.bf16 %v2411_v9, %v2410_v8  ;;  %v2412_v13 = vld [vmem:[%s5027_s11 + $0xd0] sm:$0xff]  ;;  %v3647_v16 = vpack.c.bf16 %v2395_v12, %v2394_v49  ;;  %v2397_v27 = vld [vmem:[%s5027_s11 + $0x58] sm:$0xff] }
 0x40a   : > { %2254 = vmatprep.mubr.f32.mxu0 %v2105_v19  ;;  %3797 = verf.f32 %v2083_v20  ;;  %v2947_v28 = vadd.f32 %v2946_v24, %v2945_v46  ;;  %v2396_v18 = vld [vmem:[%s5027_s11 + $0x50] sm:$0xff]  ;;  %v2414_v19 = vld [vmem:[%s5027_s11 + $0xe0] sm:$0xff]  ;;  %v2415_v20 = vld [vmem:[%s5027_s11 + $0xe8] sm:$0xff] }
 0x40b   : > { %2255 = vmatmul.mubr.f32.gmra.mrb[82].mxu0 %v2104_v59  ;;  %v2063_v26 = vadd.f32 %v2062_v23, %v1958_v21  ;;  %v2389_v59 = vld [vmem:[%s5027_s11 + $0x18] sm:$0xff]  ;;  %v3653_v46 = vpack.c.bf16 %v2415_v20, %v2414_v19  ;;  %v2398_v21 = vld [vmem:[%s5027_s11 + $0x60] sm:$0xff]  ;;  %v2399_v23 = vld [vmem:[%s5027_s11 + $0x68] sm:$0xff] }
 0x40c   : > { %v1963_v31 = vadd.f32 %v2947_v28, %v4856_v30  ;;  %v3635_v52 = vpack.c.bf16 %v2389_v59, %v2388_v58  ;;  %v3655_v24 = vpack.c.bf16 %v2399_v23, %v2398_v21  ;;  %v2401_v58 = vld [vmem:[%s5027_s11 + $0x78] sm:$0xff]  ;;  %v2582_v20 = vld [vmem:[%s5028_s12] ss:$0 sm:$0xff] }
 0x40d   : > { %v2085_v29 = vmul.f32 0.70710677, %v2063_v26  ;;  %v2077_v41 = vmul.f32 0.5, %v2063_v26  ;;  %v3659_v59 = vpack.c.bf16 %v2401_v58, %v2400_v57 }
 0x40e   : > { %v2068_v32 = vadd.f32 %v3270_v14, %v1963_v31  ;;  %3636 = vmatpush3.bf16.msra.mxu0 %v3635_v52  ;;  %v3651_v14 = vpack.c.bf16 %v2397_v27, %v2396_v18 }
 0x40f   : > { %3799 = verf.f32 %v2085_v29  ;;  %3638 = vmatprep.subr.bf16.mxu0 %v3637_v1  ;;  %v2581_v29 = vld [vmem:[%s5026_s10] ss:$0 sm:$0xff] }
 0x410   : > { %v2086_v63 = vmul.f32 0.70710677, %v2068_v32  ;;  %v2078_v61 = vmul.f32 0.5, %v2068_v32 }
 0x412   : > { %v3796_v25 = vpop.eup %3795  ;;  %3801 = verf.f32 %v2086_v63  ;;  %3640 = vmatpush3.bf16.msra.mxu0 %v3639_v5 }
 0x413   : > { %v2100_v35 = vadd.f32 1.0, %v3796_v25  ;;  %3642 = vmatprep.subr.bf16.mxu0 %v3641_v6 }
 0x414   : > { %v3798_v33 = vpop.eup %3797 }
 0x415   : > { %v2099_v38 = vadd.f32 1.0, %v3798_v33  ;;  %v2108_v60 = vmul.f32 %v2100_v35, %v2076_v56 }
 0x416   : > { %3644 = vmatpush3.bf16.msra.mxu0 %v3643_v10 }
 0x417   : > { %v2107_v39 = vmul.f32 %v2099_v38, %v2075_v36  ;;  %3306 = vmatprep.mubr.f32.mxu1 %v2108_v60  ;;  %3646 = vmatprep.subr.bf16.mxu0 %v3645_v11 }
 0x419   : > { %v3800_v40 = vpop.eup %3799  ;;  %2259 = vmatprep.mubr.f32.mxu0 %v2107_v39 }
 0x41a   : > { %v2101_v42 = vadd.f32 1.0, %v3800_v40  ;;  %2260 = vmatmul.mubr.f32.gmra.mrb[84].mxu0 %v2106_v15  ;;  %v2413_v15 = vld [vmem:[%s5027_s11 + $0xd8] sm:$0xff] }
 0x41b   : > { %v3649_v17 = vpack.c.bf16 %v2413_v15, %v2412_v13  ;;  %3648 = vmatpush3.bf16.msra.mxu0 %v3647_v16 }
 0x41c   : > { %v2109_v43 = vmul.f32 %v2101_v42, %v2077_v41  ;;  %v3802_v30 = vpop.eup %3801 }
 0x41d   : > { %v2102_v22 = vadd.f32 1.0, %v3802_v30  ;;  %3650 = vmatprep.subr.bf16.mxu0 %v3649_v17 }
 0x41e   : > { %2264 = vmatprep.mubr.f32.mxu0 %v2109_v43 }
 0x41f   : > { %2265 = vmatmul.mubr.f32.gmra.mrb[86].mxu0 %v2108_v60  ;;  %v2110_v44 = vmul.f32 %v2102_v22, %v2078_v61 }
 0x420   : > { %3652 = vmatpush3.bf16.msra.mxu0 %v3651_v14 }
 0x421   : > { %3307 = vmatmul.mubr.f32.gmra.mrb[66].mxu1 %v2110_v44  ;;  %3654 = vmatprep.subr.bf16.mxu0 %v3653_v46 }
 0x424   : > { %3656 = vmatpush3.bf16.msra.mxu0 %v3655_v24 }
 0x425   : > { %3658 = vmatprep.subr.bf16.mxu0 %v3657_v37 }
 0x428   : > { %3660 = vmatpush3.bf16.msra.mxu0 %v3659_v59 }
 0x4cd   : > { %v3004_v26 = vpop.f32.mrb[80].mxu0 }
 0x4ce   : > { %v3005_v28 = vpop.f32.mrb[81].mxu0 }
 0x4cf   : > { %v3006_v31 = vadd.f32 %v3005_v28, %v3004_v26 }
 0x4d1   : > { %v2252_v32 = vadd.f32 %v3006_v31, %v2581_v29 }
 0x4dc   : > { %v3305_v63 = vpop.f32.mrb[64].mxu1 }
 0x4dd   : > { %v2336_v25 = vpop.f32.mrb[65].mxu1 }
 0x4de   : > { %v2337_v33 = vadd.f32 %v2336_v25, %v2252_v32  ;;  %v3007_v56 = vpop.f32.mrb[82].mxu0 }
 0x4df   : > { %v3008_v35 = vpop.f32.mrb[83].mxu0 }
 0x4e0   : > { %v3009_v36 = vadd.f32 %v3008_v35, %v3007_v56  ;;  %v2359_v6 = vmul.f32 0.70710677, %v2337_v33  ;;  %v2355_v11 = vmul.f32 0.5, %v2337_v33 }
 0x4e2   : > { %v2257_v38 = vadd.f32 %v3009_v36, %v2581_v29 }
 0x4e4   : > { %v2342_v60 = vadd.f32 %v3305_v63, %v2257_v38 }
 0x4e6   : > { %v2360_v61 = vmul.f32 0.70710677, %v2342_v60  ;;  %v2356_v2 = vmul.f32 0.5, %v2342_v60 }
 0x4e8   : > { %3803 = verf.f32 %v2360_v61 }
 0x4ed   : > { %v3010_v39 = vpop.f32.mrb[84].mxu0 }
 0x4ee   : > { %v3011_v40 = vpop.f32.mrb[85].mxu0 }
 0x4ef   : > { %v3012_v41 = vadd.f32 %v3011_v40, %v3010_v39 }
 0x4f1   : > { %v2262_v42 = vadd.f32 %v3012_v41, %v2581_v29 }
 0x4f2   : > { %v3013_v43 = vpop.f32.mrb[86].mxu0  ;;  %v3804_v62 = vpop.eup %3803 }
 0x4f3   : > { %v3014_v30 = vpop.f32.mrb[87].mxu0  ;;  %v2368_v0 = vadd.f32 1.0, %v3804_v62 }
 0x4f4   : > { %v3015_v22 = vadd.f32 %v3014_v30, %v3013_v43  ;;  %v3308_v44 = vpop.f32.mrb[66].mxu1 }
 0x4f5   : > { %v2346_v47 = vpop.f32.mrb[67].mxu1  ;;  %v2372_v3 = vmul.f32 %v2368_v0, %v2356_v2 }
 0x4f6   : > { %v2267_v45 = vadd.f32 %v3015_v22, %v2581_v29  ;;  %v2347_v48 = vadd.f32 %v2346_v47, %v2262_v42 }
 0x4f8   : > { %v2352_v50 = vadd.f32 %v3308_v44, %v2267_v45  ;;  %v2361_v7 = vmul.f32 0.70710677, %v2347_v48  ;;  %v2357_v49 = vmul.f32 0.5, %v2347_v48 }
 0x4fa   : > { %v2362_v51 = vmul.f32 0.70710677, %v2352_v50  ;;  %v2358_v1 = vmul.f32 0.5, %v2352_v50 }
 0x4fc   : > { %3805 = verf.f32 %v2362_v51 }
 0x4fd   : > { %3807 = verf.f32 %v2359_v6 }
 0x4fe   : > { %3809 = verf.f32 %v2361_v7 }
 0x506   : > { %v3806_v52 = vpop.eup %3805 }
 0x507   : > { %v2370_v34 = vadd.f32 1.0, %v3806_v52  ;;  %v3808_v54 = vpop.eup %3807 }
 0x508   : > { %v3810_v8 = vpop.eup %3809  ;;  %v2367_v9 = vadd.f32 1.0, %v3808_v54 }
 0x509   : > { %v2374_v4 = vmul.f32 %v2370_v34, %v2358_v1  ;;  %v2369_v10 = vadd.f32 1.0, %v3810_v8 }
 0x50a   : > { %v2371_v13 = vmul.f32 %v2367_v9, %v2355_v11 }
 0x50b   : > { %v3702_v5 = vpack.i.bf16 %v2372_v3, %v2374_v4  ;;  %v2373_v15 = vmul.f32 %v2369_v10, %v2357_v49 }
 0x50d   : > { %3703 = vrot.lane.b32.xlu0 %v3702_v5, %s3876_s17  ;;  %s3811_s17 = scalar_lea.vmem %s4976_s27, 128 }
 0x50e   : > { %p3812_p11 = scmp.ne.s32.totalorder %s4976_s27, %s3811_s17  ;;  %p3819_p1 = scmp.lt.s32.totalorder %s3817_s19, %s3811_s17 }
 0x510   : > { %p3813_p12 = pnand %p3812_p11, %p3986_p5  ;;  %p3820_p2 = por %p3819_p1, %p3818_p0 }
 0x512   : > { %p3814_p13 = pneg %p3813_p12 }
 0x514   : > { %p3821_p3 = pnand %p3820_p2, %p3814_p13 }
 0x57f   : > { %v3704_v12 = vpop.permute.xlu0 %3703 }
 0x580   : > { %v3706_v16 = vunpack.i.h.bf16 %v3704_v12  ;;  %v3705_v17 = vunpack.i.l.bf16 %v3704_v12 }
 0x582   : > { %v2385_v18 = vsel %vm2383_vm0, %v2373_v15, %v3705_v17  ;;  %v2384_v27 = vsel %vm2383_vm0, %v2371_v13, %v3706_v16 }
 0x583   : > { %2489 = vmatprep.mubr.f32.mxu0 %v2385_v18 }
 0x584   : > { %2490 = vmatmul.mubr.f32.vlgmr.msra.gmra.mrb[88].mxu0 %v2384_v27 }
 0x657   : > { %v3068_v19 = vpop.f32.mrb[88].mxu0 }
 0x658   : > { %v3069_v14 = vpop.f32.mrb[89].mxu0 }
 0x659   : > { %v3070_v46 = vadd.f32 %v3069_v14, %v3068_v19 }
 0x65b   : > { %v2492_v21 = vadd.f32 %v3070_v46, %v2582_v20 }
 0x65d   : > { %2496 = vst.msk [vmem:[%s433_s23] sm:$0xff] %vm2495_vm1, %v2492_v21 }
 0x65e   : > { %3824 = shalt.err (!%p3821_p3)
}
 0x65f   : > { %s3825_s20 = scalar_lea.hbm %s4974_s15, 128  ;;  %s3829_s23 = scalar_lea.hbm %s5029_s13, 256 }
 0x660   : > { %p3826_p4 = scmp.ne.s32.totalorder %s4974_s15, %s3825_s20  ;;  %p3830_p9 = scmp.lt.u32.totalorder %s4974_s15, %s5029_s13 }
 0x661   : > { %p3831_p10 = scmp.lt.u32.totalorder %s3829_s23, %s3825_s20  ;;  %p3833_p12 = scmp.lt.u32.totalorder %s3825_s20, %s4974_s15 }
 0x662   : > { %p3827_p7 = pnand %p3826_p4, %p3986_p5 }
 0x663   : > { %p3832_p11 = por %p3831_p10, %p3830_p9 }
 0x664   : > { %p3828_p8 = pneg %p3827_p7 }
 0x665   : > { %p3834_p13 = por %p3833_p12, %p3832_p11 }
 0x667   : > { %p3835_p0 = pnand %p3834_p13, %p3828_p8 }
 0x669   : > { %3838 = shalt.err (!%p3835_p0)
}
 0x66a   : > { %3661 = dma.vmem_to_hbm [thread:$0]  (%p3986_p5), %s4976_s27, 128, %s4974_s15, %s2498_s16  }
 0x66b PF: > { %p3667_p1 = scmp.ge.s32.totalorder %s3873_s28, 2  ;;  %s2523_s29 = sand.u32 1, %s3861_s25  }
 0x66c   : > { %s2524_s14 = scalar_lea.sflag [#allocation8], %s2523_s29 }
 0x66d   : > { %p3664_p2 = pnand %p3667_p1, %p3990_p6 }
 0x66f   : > { %3856 = dma.done.wait (!%p3664_p2), %s2524_s14, 128  }
 0x670   : > { %3858 = vsyncadd (!%p3664_p2), %s2524_s14, 4294967168  ;;  %s5041_s28 = sld [smem:[#allocation11_spill]]  ;;  %s5042_s19 = sld [smem:[#allocation10_spill]] }
 0x671   : > { %s5043_s27 = sld [smem:[#allocation12_spill]]  ;;  %s5044_s25 = smov %s3865_s26 }
 0x676   : > { %p23_p3 = scmp.ge.s32.totalorder %s5041_s28, 4   ;;  %s5045_s26 = smov %s5042_s19 }
 0x678   :  { %25 = sbr.rel (!%p23_p3) target bundleno = 3 (0x3), region = 107 }
 0x67f   :  { %2529 = vsyncpa [#allocation8], 1 }
 0x680   :  { %2531 = vsyncpa [#allocation8 + $0x1], 1 }

</bundles_post_ra>
